<compile_context>
chip_gen: v7x
topology: tpu7x:2x2x1
jax: 0.10.0
libtpu: 0.0.40
codegen_flags: <defaults>
</compile_context>

<pallas_src>
import jax
import jax.numpy as jnp
from jax import lax
from jax.experimental import pallas as pl
from jax.experimental.pallas import tpu as pltpu

IN1, H1 = 16, 128      # lstm1: 16  -> 128
IN2, H2 = 128, 7       # lstm2: 128 -> 7
HP = 128               # layer-2 hidden padded to a full 128-lane block


def _gates_to_hc(gates, c, hid):
    """PyTorch LSTM gate order (i, f, g, o); all slices are 128-lane aligned."""
    i = jax.nn.sigmoid(gates[:, 0 * hid:1 * hid])
    f = jax.nn.sigmoid(gates[:, 1 * hid:2 * hid])
    g = jnp.tanh(gates[:, 2 * hid:3 * hid])
    o = jax.nn.sigmoid(gates[:, 3 * hid:4 * hid])
    c_new = f * c + i * g
    h_new = o * jnp.tanh(c_new)
    return h_new, c_new


def decoder_kernel(x_ref, wih1_ref, whh1_ref, b1_ref, rhs2_ref, b2_ref,
                   out_ref, xp_ref):
    # x_ref  : (B, T, 16)  f32, natural batch-first layout
    # wih1   : (16, 512)   bf16      whh1: (128, 512) bf16
    # b1     : (1, 512)    f32
    # rhs2   : (256, 512)  bf16  == [W_ih2_padded ; W_hh2_padded] stacked on K
    # b2     : (1, 512)    f32 (gate-padded: gate k in lanes [k*128, k*128+7))
    # out_ref: (B, T, 7)   f32, final layout (no post-processing needed)
    # xp_ref : (B, T, 512) f32 scratch, hoisted layer-1 input projection
    B, T, _ = x_ref.shape

    # ---- hoisted layer-1 input projection: off the serial recurrent chain ----
    for b in range(B):
        xp_ref[b] = (jnp.dot(x_ref[b].astype(jnp.bfloat16), wih1_ref[...],
                             preferred_element_type=jnp.float32)
                     + b1_ref[...])                                   # (T, 512)

    h1 = jnp.zeros((B, H1), jnp.float32)
    c1 = jnp.zeros((B, H1), jnp.float32)
    h2 = jnp.zeros((B, HP), jnp.float32)
    c2 = jnp.zeros((B, HP), jnp.float32)

    # Static unrolled time loop: all indices below are compile-time constants.
    for t in range(T):
        # layer 1: only the recurrent matmul remains on the serial chain
        gates1 = xp_ref[:, t, :] + jnp.dot(h1.astype(jnp.bfloat16),
                                           whh1_ref[...],
                                           preferred_element_type=jnp.float32)
        h1, c1 = _gates_to_hc(gates1, c1, H1)

        # layer 2: single fused matmul, K=256 ([h1_new, h2] @ [W_ih2; W_hh2])
        lhs2 = jnp.concatenate([h1, h2], axis=-1).astype(jnp.bfloat16)  # (B,256)
        gates2 = (jnp.dot(lhs2, rhs2_ref[...],
                          preferred_element_type=jnp.float32)
                  + b2_ref[...])                                        # (B,512)
        h2, c2 = _gates_to_hc(gates2, c2, HP)

        out_ref[:, t, :] = h2[:, :H2]        # compact store: only the 7 real lanes


def decoder_forward(x, kparams):
    """x: (B, T, 16) float32 -> (B, T, 7) float32. No wrapper-side layout ops."""
    B, T, _ = x.shape
    vmem = pl.BlockSpec(memory_space=pltpu.MemorySpace.VMEM)
    return pl.pallas_call(
        decoder_kernel,
        out_shape=jax.ShapeDtypeStruct((B, T, H2), jnp.float32),
        in_specs=[vmem] * 6,
        out_specs=vmem,
        scratch_shapes=[pltpu.VMEM((B, T, 4 * H1), jnp.float32)],
    )(x, kparams["wih1_t"], kparams["whh1_t"], kparams["b1"],
      kparams["rhs2"], kparams["b2"])


def init_params(key):
    """Deterministic PyTorch-style init: U(-1/sqrt(H), 1/sqrt(H)); raw layout."""
    def make(key, in_dim, hid):
        k1, k2, k3, k4 = jax.random.split(key, 4)
        bound = 1.0 / (hid ** 0.5)
        w_ih = jax.random.uniform(k1, (4 * hid, in_dim), jnp.float32, -bound, bound)
        w_hh = jax.random.uniform(k2, (4 * hid, hid), jnp.float32, -bound, bound)
        b_ih = jax.random.uniform(k3, (4 * hid,), jnp.float32, -bound, bound)
        b_hh = jax.random.uniform(k4, (4 * hid,), jnp.float32, -bound, bound)
        return w_ih, w_hh, b_ih, b_hh

    ka, kb = jax.random.split(key)
    w_ih1, w_hh1, b_ih1, b_hh1 = make(ka, IN1, H1)
    w_ih2, w_hh2, b_ih2, b_hh2 = make(kb, IN2, H2)
    return dict(w_ih1=w_ih1, w_hh1=w_hh1, b_ih1=b_ih1, b_hh1=b_hh1,
                w_ih2=w_ih2, w_hh2=w_hh2, b_ih2=b_ih2, b_hh2=b_hh2)


def prepare_kernel_params(p):
    """Transpose to (in, 4*hid), fuse biases, lane-pad layer-2 gates to 128,
    stack the two layer-2 weight matrices on K, and pre-cast MXU operands to bf16."""
    wih1_t = p["w_ih1"].T.astype(jnp.bfloat16)              # (16, 512)
    whh1_t = p["w_hh1"].T.astype(jnp.bfloat16)              # (128, 512)
    b1 = (p["b_ih1"] + p["b_hh1"]).reshape(1, 4 * H1)       # (1, 512) f32

    wih2_t = p["w_ih2"].T                                   # (128, 28)
    whh2_t = p["w_hh2"].T                                   # (7, 28)
    b2 = p["b_ih2"] + p["b_hh2"]                            # (28,)

    wih2_p = jnp.zeros((IN2, 4 * HP), jnp.float32)
    whh2_p = jnp.zeros((HP, 4 * HP), jnp.float32)
    b2_p = jnp.zeros((1, 4 * HP), jnp.float32)
    for k in range(4):                        # gate k -> lanes [k*128, k*128+7)
        wih2_p = wih2_p.at[:, k * HP:k * HP + H2].set(wih2_t[:, k * H2:(k + 1) * H2])
        whh2_p = whh2_p.at[:H2, k * HP:k * HP + H2].set(whh2_t[:, k * H2:(k + 1) * H2])
        b2_p = b2_p.at[0, k * HP:k * HP + H2].set(b2[k * H2:(k + 1) * H2])

    rhs2 = jnp.concatenate([wih2_p, whh2_p], axis=0).astype(jnp.bfloat16)  # (256, 512)
    return dict(wih1_t=wih1_t, whh1_t=whh1_t, b1=b1, rhs2=rhs2, b2=b2_p)


def decoder_reference(x, p):
    """Pure-JAX f32 reference (lax.scan) with unpadded PyTorch semantics."""
    def cell(x_t, h, c, w_ih, w_hh, b, hid):
        gates = x_t @ w_ih.T + h @ w_hh.T + b
        i = jax.nn.sigmoid(gates[:, 0 * hid:1 * hid])
        f = jax.nn.sigmoid(gates[:, 1 * hid:2 * hid])
        g = jnp.tanh(gates[:, 2 * hid:3 * hid])
        o = jax.nn.sigmoid(gates[:, 3 * hid:4 * hid])
        c = f * c + i * g
        return o * jnp.tanh(c), c

    B = x.shape[0]
    x_tm = jnp.transpose(x, (1, 0, 2)).astype(jnp.float32)
    b1 = p["b_ih1"] + p["b_hh1"]
    b2 = p["b_ih2"] + p["b_hh2"]

    def step(carry, x_t):
        h1, c1, h2, c2 = carry
        h1, c1 = cell(x_t, h1, c1, p["w_ih1"], p["w_hh1"], b1, H1)
        h2, c2 = cell(h1, h2, c2, p["w_ih2"], p["w_hh2"], b2, H2)
        return (h1, c1, h2, c2), h2

    init = (jnp.zeros((B, H1), jnp.float32), jnp.zeros((B, H1), jnp.float32),
            jnp.zeros((B, H2), jnp.float32), jnp.zeros((B, H2), jnp.float32))
    _, out_tm = lax.scan(step, init, x_tm)
    return jnp.transpose(out_tm, (1, 0, 2))


if __name__ == "__main__":
    key = jax.random.PRNGKey(0)
    k_param, k_x = jax.random.split(key)
    params = init_params(k_param)
    kparams = prepare_kernel_params(params)

    B, T = 2, 8
    x = jax.random.normal(k_x, (B, T, IN1), dtype=jnp.float32)

    out = jax.block_until_ready(decoder_forward(x, kparams))
    ref = jax.block_until_ready(decoder_reference(x, params))

    assert out.shape == (B, T, H2), out.shape
    # bf16 MXU operands (f32 accumulation) -> relaxed tolerance vs f32 reference.
    max_err = float(jnp.max(jnp.abs(out - ref)))
    assert max_err < 5e-2, f"mismatch vs reference: max|diff|={max_err}"

    print("KERNEL_OK")
</pallas_src>

<mosaic_0001>
module attributes {stable_mosaic.version = 11 : i64} {
  func.func @decoder_kernel(%arg0: memref<2x8x16xf32, #tpu.memory_space<vmem>>, %arg1: memref<16x512xbf16, #tpu.memory_space<vmem>>, %arg2: memref<128x512xbf16, #tpu.memory_space<vmem>>, %arg3: memref<1x512xf32, #tpu.memory_space<vmem>>, %arg4: memref<256x512xbf16, #tpu.memory_space<vmem>>, %arg5: memref<1x512xf32, #tpu.memory_space<vmem>>, %arg6: memref<2x8x7xf32, #tpu.memory_space<vmem>>, %arg7: memref<2x8x512xf32, #tpu.memory_space<vmem>>) attributes {dimension_semantics = [], scalar_prefetch = 0 : i64, scratch_operands = 1 : i64, tpu.core_type = #tpu.core_type<tc>} {
    %c0 = arith.constant 0 : index
    %c0_0 = arith.constant 0 : index
    %c0_1 = arith.constant 0 : index
    %0 = vector.load %arg0[%c0, %c0_0, %c0_1] : memref<2x8x16xf32, #tpu.memory_space<vmem>>, vector<1x8x16xf32>
    %1 = vector.shape_cast %0 : vector<1x8x16xf32> to vector<8x16xf32>
    %2 = arith.truncf %1 : vector<8x16xf32> to vector<8x16xbf16>
    %c0_2 = arith.constant 0 : index
    %c0_3 = arith.constant 0 : index
    %3 = vector.load %arg1[%c0_2, %c0_3] : memref<16x512xbf16, #tpu.memory_space<vmem>>, vector<16x512xbf16>
    %cst = arith.constant dense<0.000000e+00> : vector<8x512xf32>
    %4 = tpu.matmul %2, %3, %cst {dimension_numbers = #tpu.dot_dimension_numbers<[1], [0], [0], [1], [0, 0, 1, 1], [], []>} : vector<8x16xbf16>, vector<16x512xbf16>, vector<8x512xf32> -> vector<8x512xf32>
    %c0_4 = arith.constant 0 : index
    %c0_5 = arith.constant 0 : index
    %5 = vector.load %arg3[%c0_4, %c0_5] : memref<1x512xf32, #tpu.memory_space<vmem>>, vector<1x512xf32>
    %6 = vector.broadcast %5 : vector<1x512xf32> to vector<8x512xf32>
    %7 = arith.addf %4, %6 : vector<8x512xf32>
    %c0_6 = arith.constant 0 : index
    %c0_7 = arith.constant 0 : index
    %c0_8 = arith.constant 0 : index
    %8 = vector.load %arg7[%c0_6, %c0_7, %c0_8] : memref<2x8x512xf32, #tpu.memory_space<vmem>>, vector<1x8x512xf32>
    %9 = vector.shape_cast %8 : vector<1x8x512xf32> to vector<8x512xf32>
    %10 = vector.shape_cast %7 : vector<8x512xf32> to vector<1x8x512xf32>
    tpu.vector_store %arg7[%c0_6, %c0_7, %c0_8], %10 {strides = array<i32>} : memref<2x8x512xf32, #tpu.memory_space<vmem>>, vector<1x8x512xf32>,
    %c1 = arith.constant 1 : index
    %c0_9 = arith.constant 0 : index
    %c0_10 = arith.constant 0 : index
    %11 = vector.load %arg0[%c1, %c0_9, %c0_10] : memref<2x8x16xf32, #tpu.memory_space<vmem>>, vector<1x8x16xf32>
    %12 = vector.shape_cast %11 : vector<1x8x16xf32> to vector<8x16xf32>
    %13 = arith.truncf %12 : vector<8x16xf32> to vector<8x16xbf16>
    %c0_11 = arith.constant 0 : index
    %c0_12 = arith.constant 0 : index
    %14 = vector.load %arg1[%c0_11, %c0_12] : memref<16x512xbf16, #tpu.memory_space<vmem>>, vector<16x512xbf16>
    %cst_13 = arith.constant dense<0.000000e+00> : vector<8x512xf32>
    %15 = tpu.matmul %13, %14, %cst_13 {dimension_numbers = #tpu.dot_dimension_numbers<[1], [0], [0], [1], [0, 0, 1, 1], [], []>} : vector<8x16xbf16>, vector<16x512xbf16>, vector<8x512xf32> -> vector<8x512xf32>
    %c0_14 = arith.constant 0 : index
    %c0_15 = arith.constant 0 : index
    %16 = vector.load %arg3[%c0_14, %c0_15] : memref<1x512xf32, #tpu.memory_space<vmem>>, vector<1x512xf32>
    %17 = vector.broadcast %16 : vector<1x512xf32> to vector<8x512xf32>
    %18 = arith.addf %15, %17 : vector<8x512xf32>
    %c1_16 = arith.constant 1 : index
    %c0_17 = arith.constant 0 : index
    %c0_18 = arith.constant 0 : index
    %19 = vector.load %arg7[%c1_16, %c0_17, %c0_18] : memref<2x8x512xf32, #tpu.memory_space<vmem>>, vector<1x8x512xf32>
    %20 = vector.shape_cast %19 : vector<1x8x512xf32> to vector<8x512xf32>
    %21 = vector.shape_cast %18 : vector<8x512xf32> to vector<1x8x512xf32>
    tpu.vector_store %arg7[%c1_16, %c0_17, %c0_18], %21 {strides = array<i32>} : memref<2x8x512xf32, #tpu.memory_space<vmem>>, vector<1x8x512xf32>,
    %cst_19 = arith.constant 0.000000e+00 : f32
    %22 = vector.broadcast %cst_19 : f32 to vector<2x128xf32>
    %cst_20 = arith.constant 0.000000e+00 : f32
    %23 = vector.broadcast %cst_20 : f32 to vector<2x128xf32>
    %cst_21 = arith.constant 0.000000e+00 : f32
    %24 = vector.broadcast %cst_21 : f32 to vector<2x128xf32>
    %cst_22 = arith.constant 0.000000e+00 : f32
    %25 = vector.broadcast %cst_22 : f32 to vector<2x128xf32>
    %c0_23 = arith.constant 0 : index
    %c0_24 = arith.constant 0 : index
    %c0_25 = arith.constant 0 : index
    %26 = vector.load %arg7[%c0_23, %c0_24, %c0_25] : memref<2x8x512xf32, #tpu.memory_space<vmem>>, vector<2x1x512xf32>
    %27 = vector.shape_cast %26 : vector<2x1x512xf32> to vector<2x512xf32>
    %28 = arith.truncf %22 : vector<2x128xf32> to vector<2x128xbf16>
    %c0_26 = arith.constant 0 : index
    %c0_27 = arith.constant 0 : index
    %29 = vector.load %arg2[%c0_26, %c0_27] : memref<128x512xbf16, #tpu.memory_space<vmem>>, vector<128x512xbf16>
    %cst_28 = arith.constant dense<0.000000e+00> : vector<2x512xf32>
    %30 = tpu.matmul %28, %29, %cst_28 {dimension_numbers = #tpu.dot_dimension_numbers<[1], [0], [0], [1], [0, 0, 1, 1], [], []>} : vector<2x128xbf16>, vector<128x512xbf16>, vector<2x512xf32> -> vector<2x512xf32>
    %31 = arith.addf %27, %30 : vector<2x512xf32>
    %32 = vector.extract_strided_slice %31 {offsets = [0, 0], sizes = [2, 128], strides = [1, 1]} : vector<2x512xf32> to vector<2x128xf32>
    %33 = arith.negf %32 : vector<2x128xf32>
    %34 = math.exp %33 : vector<2x128xf32>
    %cst_29 = arith.constant 1.000000e+00 : f32
    %35 = vector.broadcast %cst_29 : f32 to vector<2x128xf32>
    %36 = arith.addf %35, %34 : vector<2x128xf32>
    %37 = arith.divf %35, %36 : vector<2x128xf32>
    %38 = vector.extract_strided_slice %31 {offsets = [0, 128], sizes = [2, 128], strides = [1, 1]} : vector<2x512xf32> to vector<2x128xf32>
    %39 = arith.negf %38 : vector<2x128xf32>
    %40 = math.exp %39 : vector<2x128xf32>
    %cst_30 = arith.constant 1.000000e+00 : f32
    %41 = vector.broadcast %cst_30 : f32 to vector<2x128xf32>
    %42 = arith.addf %41, %40 : vector<2x128xf32>
    %43 = arith.divf %41, %42 : vector<2x128xf32>
    %44 = vector.extract_strided_slice %31 {offsets = [0, 256], sizes = [2, 128], strides = [1, 1]} : vector<2x512xf32> to vector<2x128xf32>
    %45 = math.tanh %44 : vector<2x128xf32>
    %46 = vector.extract_strided_slice %31 {offsets = [0, 384], sizes = [2, 128], strides = [1, 1]} : vector<2x512xf32> to vector<2x128xf32>
    %47 = arith.negf %46 : vector<2x128xf32>
    %48 = math.exp %47 : vector<2x128xf32>
    %cst_31 = arith.constant 1.000000e+00 : f32
    %49 = vector.broadcast %cst_31 : f32 to vector<2x128xf32>
    %50 = arith.addf %49, %48 : vector<2x128xf32>
    %51 = arith.divf %49, %50 : vector<2x128xf32>
    %52 = arith.mulf %43, %23 : vector<2x128xf32>
    %53 = arith.mulf %37, %45 : vector<2x128xf32>
    %54 = arith.addf %52, %53 : vector<2x128xf32>
    %55 = math.tanh %54 : vector<2x128xf32>
    %56 = arith.mulf %51, %55 : vector<2x128xf32>
    %57 = tpu.concatenate %56, %24 in 1 : vector<2x128xf32>, vector<2x128xf32> -> vector<2x256xf32>
    %58 = arith.truncf %57 : vector<2x256xf32> to vector<2x256xbf16>
    %c0_32 = arith.constant 0 : index
    %c0_33 = arith.constant 0 : index
    %59 = vector.load %arg4[%c0_32, %c0_33] : memref<256x512xbf16, #tpu.memory_space<vmem>>, vector<256x512xbf16>
    %cst_34 = arith.constant dense<0.000000e+00> : vector<2x512xf32>
    %60 = tpu.matmul %58, %59, %cst_34 {dimension_numbers = #tpu.dot_dimension_numbers<[1], [0], [0], [1], [0, 0, 1, 1], [], []>} : vector<2x256xbf16>, vector<256x512xbf16>, vector<2x512xf32> -> vector<2x512xf32>
    %c0_35 = arith.constant 0 : index
    %c0_36 = arith.constant 0 : index
    %61 = vector.load %arg5[%c0_35, %c0_36] : memref<1x512xf32, #tpu.memory_space<vmem>>, vector<1x512xf32>
    %62 = vector.broadcast %61 : vector<1x512xf32> to vector<2x512xf32>
    %63 = arith.addf %60, %62 : vector<2x512xf32>
    %64 = vector.extract_strided_slice %63 {offsets = [0, 0], sizes = [2, 128], strides = [1, 1]} : vector<2x512xf32> to vector<2x128xf32>
    %65 = arith.negf %64 : vector<2x128xf32>
    %66 = math.exp %65 : vector<2x128xf32>
    %cst_37 = arith.constant 1.000000e+00 : f32
    %67 = vector.broadcast %cst_37 : f32 to vector<2x128xf32>
    %68 = arith.addf %67, %66 : vector<2x128xf32>
    %69 = arith.divf %67, %68 : vector<2x128xf32>
    %70 = vector.extract_strided_slice %63 {offsets = [0, 128], sizes = [2, 128], strides = [1, 1]} : vector<2x512xf32> to vector<2x128xf32>
    %71 = arith.negf %70 : vector<2x128xf32>
    %72 = math.exp %71 : vector<2x128xf32>
    %cst_38 = arith.constant 1.000000e+00 : f32
    %73 = vector.broadcast %cst_38 : f32 to vector<2x128xf32>
    %74 = arith.addf %73, %72 : vector<2x128xf32>
    %75 = arith.divf %73, %74 : vector<2x128xf32>
    %76 = vector.extract_strided_slice %63 {offsets = [0, 256], sizes = [2, 128], strides = [1, 1]} : vector<2x512xf32> to vector<2x128xf32>
    %77 = math.tanh %76 : vector<2x128xf32>
    %78 = vector.extract_strided_slice %63 {offsets = [0, 384], sizes = [2, 128], strides = [1, 1]} : vector<2x512xf32> to vector<2x128xf32>
    %79 = arith.negf %78 : vector<2x128xf32>
    %80 = math.exp %79 : vector<2x128xf32>
    %cst_39 = arith.constant 1.000000e+00 : f32
    %81 = vector.broadcast %cst_39 : f32 to vector<2x128xf32>
    %82 = arith.addf %81, %80 : vector<2x128xf32>
    %83 = arith.divf %81, %82 : vector<2x128xf32>
    %84 = arith.mulf %75, %25 : vector<2x128xf32>
    %85 = arith.mulf %69, %77 : vector<2x128xf32>
    %86 = arith.addf %84, %85 : vector<2x128xf32>
    %87 = math.tanh %86 : vector<2x128xf32>
    %88 = arith.mulf %83, %87 : vector<2x128xf32>
    %89 = vector.extract_strided_slice %88 {offsets = [0, 0], sizes = [2, 7], strides = [1, 1]} : vector<2x128xf32> to vector<2x7xf32>
    %c0_40 = arith.constant 0 : index
    %c0_41 = arith.constant 0 : index
    %c0_42 = arith.constant 0 : index
    %90 = vector.load %arg6[%c0_40, %c0_41, %c0_42] : memref<2x8x7xf32, #tpu.memory_space<vmem>>, vector<2x1x7xf32>
    %91 = vector.shape_cast %90 : vector<2x1x7xf32> to vector<2x7xf32>
    %92 = vector.shape_cast %89 : vector<2x7xf32> to vector<2x1x7xf32>
    tpu.vector_store %arg6[%c0_40, %c0_41, %c0_42], %92 {strides = array<i32>} : memref<2x8x7xf32, #tpu.memory_space<vmem>>, vector<2x1x7xf32>,
    %c0_43 = arith.constant 0 : index
    %c1_44 = arith.constant 1 : index
    %c0_45 = arith.constant 0 : index
    %93 = vector.load %arg7[%c0_43, %c1_44, %c0_45] : memref<2x8x512xf32, #tpu.memory_space<vmem>>, vector<2x1x512xf32>
    %94 = vector.shape_cast %93 : vector<2x1x512xf32> to vector<2x512xf32>
    %95 = arith.truncf %56 : vector<2x128xf32> to vector<2x128xbf16>
    %c0_46 = arith.constant 0 : index
    %c0_47 = arith.constant 0 : index
    %96 = vector.load %arg2[%c0_46, %c0_47] : memref<128x512xbf16, #tpu.memory_space<vmem>>, vector<128x512xbf16>
    %cst_48 = arith.constant dense<0.000000e+00> : vector<2x512xf32>
    %97 = tpu.matmul %95, %96, %cst_48 {dimension_numbers = #tpu.dot_dimension_numbers<[1], [0], [0], [1], [0, 0, 1, 1], [], []>} : vector<2x128xbf16>, vector<128x512xbf16>, vector<2x512xf32> -> vector<2x512xf32>
    %98 = arith.addf %94, %97 : vector<2x512xf32>
    %99 = vector.extract_strided_slice %98 {offsets = [0, 0], sizes = [2, 128], strides = [1, 1]} : vector<2x512xf32> to vector<2x128xf32>
    %100 = arith.negf %99 : vector<2x128xf32>
    %101 = math.exp %100 : vector<2x128xf32>
    %cst_49 = arith.constant 1.000000e+00 : f32
    %102 = vector.broadcast %cst_49 : f32 to vector<2x128xf32>
    %103 = arith.addf %102, %101 : vector<2x128xf32>
    %104 = arith.divf %102, %103 : vector<2x128xf32>
    %105 = vector.extract_strided_slice %98 {offsets = [0, 128], sizes = [2, 128], strides = [1, 1]} : vector<2x512xf32> to vector<2x128xf32>
    %106 = arith.negf %105 : vector<2x128xf32>
    %107 = math.exp %106 : vector<2x128xf32>
    %cst_50 = arith.constant 1.000000e+00 : f32
    %108 = vector.broadcast %cst_50 : f32 to vector<2x128xf32>
    %109 = arith.addf %108, %107 : vector<2x128xf32>
    %110 = arith.divf %108, %109 : vector<2x128xf32>
    %111 = vector.extract_strided_slice %98 {offsets = [0, 256], sizes = [2, 128], strides = [1, 1]} : vector<2x512xf32> to vector<2x128xf32>
    %112 = math.tanh %111 : vector<2x128xf32>
    %113 = vector.extract_strided_slice %98 {offsets = [0, 384], sizes = [2, 128], strides = [1, 1]} : vector<2x512xf32> to vector<2x128xf32>
    %114 = arith.negf %113 : vector<2x128xf32>
    %115 = math.exp %114 : vector<2x128xf32>
    %cst_51 = arith.constant 1.000000e+00 : f32
    %116 = vector.broadcast %cst_51 : f32 to vector<2x128xf32>
    %117 = arith.addf %116, %115 : vector<2x128xf32>
    %118 = arith.divf %116, %117 : vector<2x128xf32>
    %119 = arith.mulf %110, %54 : vector<2x128xf32>
    %120 = arith.mulf %104, %112 : vector<2x128xf32>
    %121 = arith.addf %119, %120 : vector<2x128xf32>
    %122 = math.tanh %121 : vector<2x128xf32>
    %123 = arith.mulf %118, %122 : vector<2x128xf32>
    %124 = tpu.concatenate %123, %88 in 1 : vector<2x128xf32>, vector<2x128xf32> -> vector<2x256xf32>
    %125 = arith.truncf %124 : vector<2x256xf32> to vector<2x256xbf16>
    %c0_52 = arith.constant 0 : index
    %c0_53 = arith.constant 0 : index
    %126 = vector.load %arg4[%c0_52, %c0_53] : memref<256x512xbf16, #tpu.memory_space<vmem>>, vector<256x512xbf16>
    %cst_54 = arith.constant dense<0.000000e+00> : vector<2x512xf32>
    %127 = tpu.matmul %125, %126, %cst_54 {dimension_numbers = #tpu.dot_dimension_numbers<[1], [0], [0], [1], [0, 0, 1, 1], [], []>} : vector<2x256xbf16>, vector<256x512xbf16>, vector<2x512xf32> -> vector<2x512xf32>
    %c0_55 = arith.constant 0 : index
    %c0_56 = arith.constant 0 : index
    %128 = vector.load %arg5[%c0_55, %c0_56] : memref<1x512xf32, #tpu.memory_space<vmem>>, vector<1x512xf32>
    %129 = vector.broadcast %128 : vector<1x512xf32> to vector<2x512xf32>
    %130 = arith.addf %127, %129 : vector<2x512xf32>
    %131 = vector.extract_strided_slice %130 {offsets = [0, 0], sizes = [2, 128], strides = [1, 1]} : vector<2x512xf32> to vector<2x128xf32>
    %132 = arith.negf %131 : vector<2x128xf32>
    %133 = math.exp %132 : vector<2x128xf32>
    %cst_57 = arith.constant 1.000000e+00 : f32
    %134 = vector.broadcast %cst_57 : f32 to vector<2x128xf32>
    %135 = arith.addf %134, %133 : vector<2x128xf32>
    %136 = arith.divf %134, %135 : vector<2x128xf32>
    %137 = vector.extract_strided_slice %130 {offsets = [0, 128], sizes = [2, 128], strides = [1, 1]} : vector<2x512xf32> to vector<2x128xf32>
    %138 = arith.negf %137 : vector<2x128xf32>
    %139 = math.exp %138 : vector<2x128xf32>
    %cst_58 = arith.constant 1.000000e+00 : f32
    %140 = vector.broadcast %cst_58 : f32 to vector<2x128xf32>
    %141 = arith.addf %140, %139 : vector<2x128xf32>
    %142 = arith.divf %140, %141 : vector<2x128xf32>
    %143 = vector.extract_strided_slice %130 {offsets = [0, 256], sizes = [2, 128], strides = [1, 1]} : vector<2x512xf32> to vector<2x128xf32>
    %144 = math.tanh %143 : vector<2x128xf32>
    %145 = vector.extract_strided_slice %130 {offsets = [0, 384], sizes = [2, 128], strides = [1, 1]} : vector<2x512xf32> to vector<2x128xf32>
    %146 = arith.negf %145 : vector<2x128xf32>
    %147 = math.exp %146 : vector<2x128xf32>
    %cst_59 = arith.constant 1.000000e+00 : f32
    %148 = vector.broadcast %cst_59 : f32 to vector<2x128xf32>
    %149 = arith.addf %148, %147 : vector<2x128xf32>
    %150 = arith.divf %148, %149 : vector<2x128xf32>
    %151 = arith.mulf %142, %86 : vector<2x128xf32>
    %152 = arith.mulf %136, %144 : vector<2x128xf32>
    %153 = arith.addf %151, %152 : vector<2x128xf32>
    %154 = math.tanh %153 : vector<2x128xf32>
    %155 = arith.mulf %150, %154 : vector<2x128xf32>
    %156 = vector.extract_strided_slice %155 {offsets = [0, 0], sizes = [2, 7], strides = [1, 1]} : vector<2x128xf32> to vector<2x7xf32>
    %c0_60 = arith.constant 0 : index
    %c1_61 = arith.constant 1 : index
    %c0_62 = arith.constant 0 : index
    %157 = vector.load %arg6[%c0_60, %c1_61, %c0_62] : memref<2x8x7xf32, #tpu.memory_space<vmem>>, vector<2x1x7xf32>
    %158 = vector.shape_cast %157 : vector<2x1x7xf32> to vector<2x7xf32>
    %159 = vector.shape_cast %156 : vector<2x7xf32> to vector<2x1x7xf32>
    tpu.vector_store %arg6[%c0_60, %c1_61, %c0_62], %159 {strides = array<i32>} : memref<2x8x7xf32, #tpu.memory_space<vmem>>, vector<2x1x7xf32>,
    %c0_63 = arith.constant 0 : index
    %c2 = arith.constant 2 : index
    %c0_64 = arith.constant 0 : index
    %160 = vector.load %arg7[%c0_63, %c2, %c0_64] : memref<2x8x512xf32, #tpu.memory_space<vmem>>, vector<2x1x512xf32>
    %161 = vector.shape_cast %160 : vector<2x1x512xf32> to vector<2x512xf32>
    %162 = arith.truncf %123 : vector<2x128xf32> to vector<2x128xbf16>
    %c0_65 = arith.constant 0 : index
    %c0_66 = arith.constant 0 : index
    %163 = vector.load %arg2[%c0_65, %c0_66] : memref<128x512xbf16, #tpu.memory_space<vmem>>, vector<128x512xbf16>
    %cst_67 = arith.constant dense<0.000000e+00> : vector<2x512xf32>
    %164 = tpu.matmul %162, %163, %cst_67 {dimension_numbers = #tpu.dot_dimension_numbers<[1], [0], [0], [1], [0, 0, 1, 1], [], []>} : vector<2x128xbf16>, vector<128x512xbf16>, vector<2x512xf32> -> vector<2x512xf32>
    %165 = arith.addf %161, %164 : vector<2x512xf32>
    %166 = vector.extract_strided_slice %165 {offsets = [0, 0], sizes = [2, 128], strides = [1, 1]} : vector<2x512xf32> to vector<2x128xf32>
    %167 = arith.negf %166 : vector<2x128xf32>
    %168 = math.exp %167 : vector<2x128xf32>
    %cst_68 = arith.constant 1.000000e+00 : f32
    %169 = vector.broadcast %cst_68 : f32 to vector<2x128xf32>
    %170 = arith.addf %169, %168 : vector<2x128xf32>
    %171 = arith.divf %169, %170 : vector<2x128xf32>
    %172 = vector.extract_strided_slice %165 {offsets = [0, 128], sizes = [2, 128], strides = [1, 1]} : vector<2x512xf32> to vector<2x128xf32>
    %173 = arith.negf %172 : vector<2x128xf32>
    %174 = math.exp %173 : vector<2x128xf32>
    %cst_69 = arith.constant 1.000000e+00 : f32
    %175 = vector.broadcast %cst_69 : f32 to vector<2x128xf32>
    %176 = arith.addf %175, %174 : vector<2x128xf32>
    %177 = arith.divf %175, %176 : vector<2x128xf32>
    %178 = vector.extract_strided_slice %165 {offsets = [0, 256], sizes = [2, 128], strides = [1, 1]} : vector<2x512xf32> to vector<2x128xf32>
    %179 = math.tanh %178 : vector<2x128xf32>
    %180 = vector.extract_strided_slice %165 {offsets = [0, 384], sizes = [2, 128], strides = [1, 1]} : vector<2x512xf32> to vector<2x128xf32>
    %181 = arith.negf %180 : vector<2x128xf32>
    %182 = math.exp %181 : vector<2x128xf32>
    %cst_70 = arith.constant 1.000000e+00 : f32
    %183 = vector.broadcast %cst_70 : f32 to vector<2x128xf32>
    %184 = arith.addf %183, %182 : vector<2x128xf32>
    %185 = arith.divf %183, %184 : vector<2x128xf32>
    %186 = arith.mulf %177, %121 : vector<2x128xf32>
    %187 = arith.mulf %171, %179 : vector<2x128xf32>
    %188 = arith.addf %186, %187 : vector<2x128xf32>
    %189 = math.tanh %188 : vector<2x128xf32>
    %190 = arith.mulf %185, %189 : vector<2x128xf32>
    %191 = tpu.concatenate %190, %155 in 1 : vector<2x128xf32>, vector<2x128xf32> -> vector<2x256xf32>
    %192 = arith.truncf %191 : vector<2x256xf32> to vector<2x256xbf16>
    %c0_71 = arith.constant 0 : index
    %c0_72 = arith.constant 0 : index
    %193 = vector.load %arg4[%c0_71, %c0_72] : memref<256x512xbf16, #tpu.memory_space<vmem>>, vector<256x512xbf16>
    %cst_73 = arith.constant dense<0.000000e+00> : vector<2x512xf32>
    %194 = tpu.matmul %192, %193, %cst_73 {dimension_numbers = #tpu.dot_dimension_numbers<[1], [0], [0], [1], [0, 0, 1, 1], [], []>} : vector<2x256xbf16>, vector<256x512xbf16>, vector<2x512xf32> -> vector<2x512xf32>
    %c0_74 = arith.constant 0 : index
    %c0_75 = arith.constant 0 : index
    %195 = vector.load %arg5[%c0_74, %c0_75] : memref<1x512xf32, #tpu.memory_space<vmem>>, vector<1x512xf32>
    %196 = vector.broadcast %195 : vector<1x512xf32> to vector<2x512xf32>
    %197 = arith.addf %194, %196 : vector<2x512xf32>
    %198 = vector.extract_strided_slice %197 {offsets = [0, 0], sizes = [2, 128], strides = [1, 1]} : vector<2x512xf32> to vector<2x128xf32>
    %199 = arith.negf %198 : vector<2x128xf32>
    %200 = math.exp %199 : vector<2x128xf32>
    %cst_76 = arith.constant 1.000000e+00 : f32
    %201 = vector.broadcast %cst_76 : f32 to vector<2x128xf32>
    %202 = arith.addf %201, %200 : vector<2x128xf32>
    %203 = arith.divf %201, %202 : vector<2x128xf32>
    %204 = vector.extract_strided_slice %197 {offsets = [0, 128], sizes = [2, 128], strides = [1, 1]} : vector<2x512xf32> to vector<2x128xf32>
    %205 = arith.negf %204 : vector<2x128xf32>
    %206 = math.exp %205 : vector<2x128xf32>
    %cst_77 = arith.constant 1.000000e+00 : f32
    %207 = vector.broadcast %cst_77 : f32 to vector<2x128xf32>
    %208 = arith.addf %207, %206 : vector<2x128xf32>
    %209 = arith.divf %207, %208 : vector<2x128xf32>
    %210 = vector.extract_strided_slice %197 {offsets = [0, 256], sizes = [2, 128], strides = [1, 1]} : vector<2x512xf32> to vector<2x128xf32>
    %211 = math.tanh %210 : vector<2x128xf32>
    %212 = vector.extract_strided_slice %197 {offsets = [0, 384], sizes = [2, 128], strides = [1, 1]} : vector<2x512xf32> to vector<2x128xf32>
    %213 = arith.negf %212 : vector<2x128xf32>
    %214 = math.exp %213 : vector<2x128xf32>
    %cst_78 = arith.constant 1.000000e+00 : f32
    %215 = vector.broadcast %cst_78 : f32 to vector<2x128xf32>
    %216 = arith.addf %215, %214 : vector<2x128xf32>
    %217 = arith.divf %215, %216 : vector<2x128xf32>
    %218 = arith.mulf %209, %153 : vector<2x128xf32>
    %219 = arith.mulf %203, %211 : vector<2x128xf32>
    %220 = arith.addf %218, %219 : vector<2x128xf32>
    %221 = math.tanh %220 : vector<2x128xf32>
    %222 = arith.mulf %217, %221 : vector<2x128xf32>
    %223 = vector.extract_strided_slice %222 {offsets = [0, 0], sizes = [2, 7], strides = [1, 1]} : vector<2x128xf32> to vector<2x7xf32>
    %c0_79 = arith.constant 0 : index
    %c2_80 = arith.constant 2 : index
    %c0_81 = arith.constant 0 : index
    %224 = vector.load %arg6[%c0_79, %c2_80, %c0_81] : memref<2x8x7xf32, #tpu.memory_space<vmem>>, vector<2x1x7xf32>
    %225 = vector.shape_cast %224 : vector<2x1x7xf32> to vector<2x7xf32>
    %226 = vector.shape_cast %223 : vector<2x7xf32> to vector<2x1x7xf32>
    tpu.vector_store %arg6[%c0_79, %c2_80, %c0_81], %226 {strides = array<i32>} : memref<2x8x7xf32, #tpu.memory_space<vmem>>, vector<2x1x7xf32>,
    %c0_82 = arith.constant 0 : index
    %c3 = arith.constant 3 : index
    %c0_83 = arith.constant 0 : index
    %227 = vector.load %arg7[%c0_82, %c3, %c0_83] : memref<2x8x512xf32, #tpu.memory_space<vmem>>, vector<2x1x512xf32>
    %228 = vector.shape_cast %227 : vector<2x1x512xf32> to vector<2x512xf32>
    %229 = arith.truncf %190 : vector<2x128xf32> to vector<2x128xbf16>
    %c0_84 = arith.constant 0 : index
    %c0_85 = arith.constant 0 : index
    %230 = vector.load %arg2[%c0_84, %c0_85] : memref<128x512xbf16, #tpu.memory_space<vmem>>, vector<128x512xbf16>
    %cst_86 = arith.constant dense<0.000000e+00> : vector<2x512xf32>
    %231 = tpu.matmul %229, %230, %cst_86 {dimension_numbers = #tpu.dot_dimension_numbers<[1], [0], [0], [1], [0, 0, 1, 1], [], []>} : vector<2x128xbf16>, vector<128x512xbf16>, vector<2x512xf32> -> vector<2x512xf32>
    %232 = arith.addf %228, %231 : vector<2x512xf32>
    %233 = vector.extract_strided_slice %232 {offsets = [0, 0], sizes = [2, 128], strides = [1, 1]} : vector<2x512xf32> to vector<2x128xf32>
    %234 = arith.negf %233 : vector<2x128xf32>
    %235 = math.exp %234 : vector<2x128xf32>
    %cst_87 = arith.constant 1.000000e+00 : f32
    %236 = vector.broadcast %cst_87 : f32 to vector<2x128xf32>
    %237 = arith.addf %236, %235 : vector<2x128xf32>
    %238 = arith.divf %236, %237 : vector<2x128xf32>
    %239 = vector.extract_strided_slice %232 {offsets = [0, 128], sizes = [2, 128], strides = [1, 1]} : vector<2x512xf32> to vector<2x128xf32>
    %240 = arith.negf %239 : vector<2x128xf32>
    %241 = math.exp %240 : vector<2x128xf32>
    %cst_88 = arith.constant 1.000000e+00 : f32
    %242 = vector.broadcast %cst_88 : f32 to vector<2x128xf32>
    %243 = arith.addf %242, %241 : vector<2x128xf32>
    %244 = arith.divf %242, %243 : vector<2x128xf32>
    %245 = vector.extract_strided_slice %232 {offsets = [0, 256], sizes = [2, 128], strides = [1, 1]} : vector<2x512xf32> to vector<2x128xf32>
    %246 = math.tanh %245 : vector<2x128xf32>
    %247 = vector.extract_strided_slice %232 {offsets = [0, 384], sizes = [2, 128], strides = [1, 1]} : vector<2x512xf32> to vector<2x128xf32>
    %248 = arith.negf %247 : vector<2x128xf32>
    %249 = math.exp %248 : vector<2x128xf32>
    %cst_89 = arith.constant 1.000000e+00 : f32
    %250 = vector.broadcast %cst_89 : f32 to vector<2x128xf32>
    %251 = arith.addf %250, %249 : vector<2x128xf32>
    %252 = arith.divf %250, %251 : vector<2x128xf32>
    %253 = arith.mulf %244, %188 : vector<2x128xf32>
    %254 = arith.mulf %238, %246 : vector<2x128xf32>
    %255 = arith.addf %253, %254 : vector<2x128xf32>
    %256 = math.tanh %255 : vector<2x128xf32>
    %257 = arith.mulf %252, %256 : vector<2x128xf32>
    %258 = tpu.concatenate %257, %222 in 1 : vector<2x128xf32>, vector<2x128xf32> -> vector<2x256xf32>
    %259 = arith.truncf %258 : vector<2x256xf32> to vector<2x256xbf16>
    %c0_90 = arith.constant 0 : index
    %c0_91 = arith.constant 0 : index
    %260 = vector.load %arg4[%c0_90, %c0_91] : memref<256x512xbf16, #tpu.memory_space<vmem>>, vector<256x512xbf16>
    %cst_92 = arith.constant dense<0.000000e+00> : vector<2x512xf32>
    %261 = tpu.matmul %259, %260, %cst_92 {dimension_numbers = #tpu.dot_dimension_numbers<[1], [0], [0], [1], [0, 0, 1, 1], [], []>} : vector<2x256xbf16>, vector<256x512xbf16>, vector<2x512xf32> -> vector<2x512xf32>
    %c0_93 = arith.constant 0 : index
    %c0_94 = arith.constant 0 : index
    %262 = vector.load %arg5[%c0_93, %c0_94] : memref<1x512xf32, #tpu.memory_space<vmem>>, vector<1x512xf32>
    %263 = vector.broadcast %262 : vector<1x512xf32> to vector<2x512xf32>
    %264 = arith.addf %261, %263 : vector<2x512xf32>
    %265 = vector.extract_strided_slice %264 {offsets = [0, 0], sizes = [2, 128], strides = [1, 1]} : vector<2x512xf32> to vector<2x128xf32>
    %266 = arith.negf %265 : vector<2x128xf32>
    %267 = math.exp %266 : vector<2x128xf32>
    %cst_95 = arith.constant 1.000000e+00 : f32
    %268 = vector.broadcast %cst_95 : f32 to vector<2x128xf32>
    %269 = arith.addf %268, %267 : vector<2x128xf32>
    %270 = arith.divf %268, %269 : vector<2x128xf32>
    %271 = vector.extract_strided_slice %264 {offsets = [0, 128], sizes = [2, 128], strides = [1, 1]} : vector<2x512xf32> to vector<2x128xf32>
    %272 = arith.negf %271 : vector<2x128xf32>
    %273 = math.exp %272 : vector<2x128xf32>
    %cst_96 = arith.constant 1.000000e+00 : f32
    %274 = vector.broadcast %cst_96 : f32 to vector<2x128xf32>
    %275 = arith.addf %274, %273 : vector<2x128xf32>
    %276 = arith.divf %274, %275 : vector<2x128xf32>
    %277 = vector.extract_strided_slice %264 {offsets = [0, 256], sizes = [2, 128], strides = [1, 1]} : vector<2x512xf32> to vector<2x128xf32>
    %278 = math.tanh %277 : vector<2x128xf32>
    %279 = vector.extract_strided_slice %264 {offsets = [0, 384], sizes = [2, 128], strides = [1, 1]} : vector<2x512xf32> to vector<2x128xf32>
    %280 = arith.negf %279 : vector<2x128xf32>
    %281 = math.exp %280 : vector<2x128xf32>
    %cst_97 = arith.constant 1.000000e+00 : f32
    %282 = vector.broadcast %cst_97 : f32 to vector<2x128xf32>
    %283 = arith.addf %282, %281 : vector<2x128xf32>
    %284 = arith.divf %282, %283 : vector<2x128xf32>
    %285 = arith.mulf %276, %220 : vector<2x128xf32>
    %286 = arith.mulf %270, %278 : vector<2x128xf32>
    %287 = arith.addf %285, %286 : vector<2x128xf32>
    %288 = math.tanh %287 : vector<2x128xf32>
    %289 = arith.mulf %284, %288 : vector<2x128xf32>
    %290 = vector.extract_strided_slice %289 {offsets = [0, 0], sizes = [2, 7], strides = [1, 1]} : vector<2x128xf32> to vector<2x7xf32>
    %c0_98 = arith.constant 0 : index
    %c3_99 = arith.constant 3 : index
    %c0_100 = arith.constant 0 : index
    %291 = vector.load %arg6[%c0_98, %c3_99, %c0_100] : memref<2x8x7xf32, #tpu.memory_space<vmem>>, vector<2x1x7xf32>
    %292 = vector.shape_cast %291 : vector<2x1x7xf32> to vector<2x7xf32>
    %293 = vector.shape_cast %290 : vector<2x7xf32> to vector<2x1x7xf32>
    tpu.vector_store %arg6[%c0_98, %c3_99, %c0_100], %293 {strides = array<i32>} : memref<2x8x7xf32, #tpu.memory_space<vmem>>, vector<2x1x7xf32>,
    %c0_101 = arith.constant 0 : index
    %c4 = arith.constant 4 : index
    %c0_102 = arith.constant 0 : index
    %294 = vector.load %arg7[%c0_101, %c4, %c0_102] : memref<2x8x512xf32, #tpu.memory_space<vmem>>, vector<2x1x512xf32>
    %295 = vector.shape_cast %294 : vector<2x1x512xf32> to vector<2x512xf32>
    %296 = arith.truncf %257 : vector<2x128xf32> to vector<2x128xbf16>
    %c0_103 = arith.constant 0 : index
    %c0_104 = arith.constant 0 : index
    %297 = vector.load %arg2[%c0_103, %c0_104] : memref<128x512xbf16, #tpu.memory_space<vmem>>, vector<128x512xbf16>
    %cst_105 = arith.constant dense<0.000000e+00> : vector<2x512xf32>
    %298 = tpu.matmul %296, %297, %cst_105 {dimension_numbers = #tpu.dot_dimension_numbers<[1], [0], [0], [1], [0, 0, 1, 1], [], []>} : vector<2x128xbf16>, vector<128x512xbf16>, vector<2x512xf32> -> vector<2x512xf32>
    %299 = arith.addf %295, %298 : vector<2x512xf32>
    %300 = vector.extract_strided_slice %299 {offsets = [0, 0], sizes = [2, 128], strides = [1, 1]} : vector<2x512xf32> to vector<2x128xf32>
    %301 = arith.negf %300 : vector<2x128xf32>
    %302 = math.exp %301 : vector<2x128xf32>
    %cst_106 = arith.constant 1.000000e+00 : f32
    %303 = vector.broadcast %cst_106 : f32 to vector<2x128xf32>
    %304 = arith.addf %303, %302 : vector<2x128xf32>
    %305 = arith.divf %303, %304 : vector<2x128xf32>
    %306 = vector.extract_strided_slice %299 {offsets = [0, 128], sizes = [2, 128], strides = [1, 1]} : vector<2x512xf32> to vector<2x128xf32>
    %307 = arith.negf %306 : vector<2x128xf32>
    %308 = math.exp %307 : vector<2x128xf32>
    %cst_107 = arith.constant 1.000000e+00 : f32
    %309 = vector.broadcast %cst_107 : f32 to vector<2x128xf32>
    %310 = arith.addf %309, %308 : vector<2x128xf32>
    %311 = arith.divf %309, %310 : vector<2x128xf32>
    %312 = vector.extract_strided_slice %299 {offsets = [0, 256], sizes = [2, 128], strides = [1, 1]} : vector<2x512xf32> to vector<2x128xf32>
    %313 = math.tanh %312 : vector<2x128xf32>
    %314 = vector.extract_strided_slice %299 {offsets = [0, 384], sizes = [2, 128], strides = [1, 1]} : vector<2x512xf32> to vector<2x128xf32>
    %315 = arith.negf %314 : vector<2x128xf32>
    %316 = math.exp %315 : vector<2x128xf32>
    %cst_108 = arith.constant 1.000000e+00 : f32
    %317 = vector.broadcast %cst_108 : f32 to vector<2x128xf32>
    %318 = arith.addf %317, %316 : vector<2x128xf32>
    %319 = arith.divf %317, %318 : vector<2x128xf32>
    %320 = arith.mulf %311, %255 : vector<2x128xf32>
    %321 = arith.mulf %305, %313 : vector<2x128xf32>
    %322 = arith.addf %320, %321 : vector<2x128xf32>
    %323 = math.tanh %322 : vector<2x128xf32>
    %324 = arith.mulf %319, %323 : vector<2x128xf32>
    %325 = tpu.concatenate %324, %289 in 1 : vector<2x128xf32>, vector<2x128xf32> -> vector<2x256xf32>
    %326 = arith.truncf %325 : vector<2x256xf32> to vector<2x256xbf16>
    %c0_109 = arith.constant 0 : index
    %c0_110 = arith.constant 0 : index
    %327 = vector.load %arg4[%c0_109, %c0_110] : memref<256x512xbf16, #tpu.memory_space<vmem>>, vector<256x512xbf16>
    %cst_111 = arith.constant dense<0.000000e+00> : vector<2x512xf32>
    %328 = tpu.matmul %326, %327, %cst_111 {dimension_numbers = #tpu.dot_dimension_numbers<[1], [0], [0], [1], [0, 0, 1, 1], [], []>} : vector<2x256xbf16>, vector<256x512xbf16>, vector<2x512xf32> -> vector<2x512xf32>
    %c0_112 = arith.constant 0 : index
    %c0_113 = arith.constant 0 : index
    %329 = vector.load %arg5[%c0_112, %c0_113] : memref<1x512xf32, #tpu.memory_space<vmem>>, vector<1x512xf32>
    %330 = vector.broadcast %329 : vector<1x512xf32> to vector<2x512xf32>
    %331 = arith.addf %328, %330 : vector<2x512xf32>
    %332 = vector.extract_strided_slice %331 {offsets = [0, 0], sizes = [2, 128], strides = [1, 1]} : vector<2x512xf32> to vector<2x128xf32>
    %333 = arith.negf %332 : vector<2x128xf32>
    %334 = math.exp %333 : vector<2x128xf32>
    %cst_114 = arith.constant 1.000000e+00 : f32
    %335 = vector.broadcast %cst_114 : f32 to vector<2x128xf32>
    %336 = arith.addf %335, %334 : vector<2x128xf32>
    %337 = arith.divf %335, %336 : vector<2x128xf32>
    %338 = vector.extract_strided_slice %331 {offsets = [0, 128], sizes = [2, 128], strides = [1, 1]} : vector<2x512xf32> to vector<2x128xf32>
    %339 = arith.negf %338 : vector<2x128xf32>
    %340 = math.exp %339 : vector<2x128xf32>
    %cst_115 = arith.constant 1.000000e+00 : f32
    %341 = vector.broadcast %cst_115 : f32 to vector<2x128xf32>
    %342 = arith.addf %341, %340 : vector<2x128xf32>
    %343 = arith.divf %341, %342 : vector<2x128xf32>
    %344 = vector.extract_strided_slice %331 {offsets = [0, 256], sizes = [2, 128], strides = [1, 1]} : vector<2x512xf32> to vector<2x128xf32>
    %345 = math.tanh %344 : vector<2x128xf32>
    %346 = vector.extract_strided_slice %331 {offsets = [0, 384], sizes = [2, 128], strides = [1, 1]} : vector<2x512xf32> to vector<2x128xf32>
    %347 = arith.negf %346 : vector<2x128xf32>
    %348 = math.exp %347 : vector<2x128xf32>
    %cst_116 = arith.constant 1.000000e+00 : f32
    %349 = vector.broadcast %cst_116 : f32 to vector<2x128xf32>
    %350 = arith.addf %349, %348 : vector<2x128xf32>
    %351 = arith.divf %349, %350 : vector<2x128xf32>
    %352 = arith.mulf %343, %287 : vector<2x128xf32>
    %353 = arith.mulf %337, %345 : vector<2x128xf32>
    %354 = arith.addf %352, %353 : vector<2x128xf32>
    %355 = math.tanh %354 : vector<2x128xf32>
    %356 = arith.mulf %351, %355 : vector<2x128xf32>
    %357 = vector.extract_strided_slice %356 {offsets = [0, 0], sizes = [2, 7], strides = [1, 1]} : vector<2x128xf32> to vector<2x7xf32>
    %c0_117 = arith.constant 0 : index
    %c4_118 = arith.constant 4 : index
    %c0_119 = arith.constant 0 : index
    %358 = vector.load %arg6[%c0_117, %c4_118, %c0_119] : memref<2x8x7xf32, #tpu.memory_space<vmem>>, vector<2x1x7xf32>
    %359 = vector.shape_cast %358 : vector<2x1x7xf32> to vector<2x7xf32>
    %360 = vector.shape_cast %357 : vector<2x7xf32> to vector<2x1x7xf32>
    tpu.vector_store %arg6[%c0_117, %c4_118, %c0_119], %360 {strides = array<i32>} : memref<2x8x7xf32, #tpu.memory_space<vmem>>, vector<2x1x7xf32>,
    %c0_120 = arith.constant 0 : index
    %c5 = arith.constant 5 : index
    %c0_121 = arith.constant 0 : index
    %361 = vector.load %arg7[%c0_120, %c5, %c0_121] : memref<2x8x512xf32, #tpu.memory_space<vmem>>, vector<2x1x512xf32>
    %362 = vector.shape_cast %361 : vector<2x1x512xf32> to vector<2x512xf32>
    %363 = arith.truncf %324 : vector<2x128xf32> to vector<2x128xbf16>
    %c0_122 = arith.constant 0 : index
    %c0_123 = arith.constant 0 : index
    %364 = vector.load %arg2[%c0_122, %c0_123] : memref<128x512xbf16, #tpu.memory_space<vmem>>, vector<128x512xbf16>
    %cst_124 = arith.constant dense<0.000000e+00> : vector<2x512xf32>
    %365 = tpu.matmul %363, %364, %cst_124 {dimension_numbers = #tpu.dot_dimension_numbers<[1], [0], [0], [1], [0, 0, 1, 1], [], []>} : vector<2x128xbf16>, vector<128x512xbf16>, vector<2x512xf32> -> vector<2x512xf32>
    %366 = arith.addf %362, %365 : vector<2x512xf32>
    %367 = vector.extract_strided_slice %366 {offsets = [0, 0], sizes = [2, 128], strides = [1, 1]} : vector<2x512xf32> to vector<2x128xf32>
    %368 = arith.negf %367 : vector<2x128xf32>
    %369 = math.exp %368 : vector<2x128xf32>
    %cst_125 = arith.constant 1.000000e+00 : f32
    %370 = vector.broadcast %cst_125 : f32 to vector<2x128xf32>
    %371 = arith.addf %370, %369 : vector<2x128xf32>
    %372 = arith.divf %370, %371 : vector<2x128xf32>
    %373 = vector.extract_strided_slice %366 {offsets = [0, 128], sizes = [2, 128], strides = [1, 1]} : vector<2x512xf32> to vector<2x128xf32>
    %374 = arith.negf %373 : vector<2x128xf32>
    %375 = math.exp %374 : vector<2x128xf32>
    %cst_126 = arith.constant 1.000000e+00 : f32
    %376 = vector.broadcast %cst_126 : f32 to vector<2x128xf32>
    %377 = arith.addf %376, %375 : vector<2x128xf32>
    %378 = arith.divf %376, %377 : vector<2x128xf32>
    %379 = vector.extract_strided_slice %366 {offsets = [0, 256], sizes = [2, 128], strides = [1, 1]} : vector<2x512xf32> to vector<2x128xf32>
    %380 = math.tanh %379 : vector<2x128xf32>
    %381 = vector.extract_strided_slice %366 {offsets = [0, 384], sizes = [2, 128], strides = [1, 1]} : vector<2x512xf32> to vector<2x128xf32>
    %382 = arith.negf %381 : vector<2x128xf32>
    %383 = math.exp %382 : vector<2x128xf32>
    %cst_127 = arith.constant 1.000000e+00 : f32
    %384 = vector.broadcast %cst_127 : f32 to vector<2x128xf32>
    %385 = arith.addf %384, %383 : vector<2x128xf32>
    %386 = arith.divf %384, %385 : vector<2x128xf32>
    %387 = arith.mulf %378, %322 : vector<2x128xf32>
    %388 = arith.mulf %372, %380 : vector<2x128xf32>
    %389 = arith.addf %387, %388 : vector<2x128xf32>
    %390 = math.tanh %389 : vector<2x128xf32>
    %391 = arith.mulf %386, %390 : vector<2x128xf32>
    %392 = tpu.concatenate %391, %356 in 1 : vector<2x128xf32>, vector<2x128xf32> -> vector<2x256xf32>
    %393 = arith.truncf %392 : vector<2x256xf32> to vector<2x256xbf16>
    %c0_128 = arith.constant 0 : index
    %c0_129 = arith.constant 0 : index
    %394 = vector.load %arg4[%c0_128, %c0_129] : memref<256x512xbf16, #tpu.memory_space<vmem>>, vector<256x512xbf16>
    %cst_130 = arith.constant dense<0.000000e+00> : vector<2x512xf32>
    %395 = tpu.matmul %393, %394, %cst_130 {dimension_numbers = #tpu.dot_dimension_numbers<[1], [0], [0], [1], [0, 0, 1, 1], [], []>} : vector<2x256xbf16>, vector<256x512xbf16>, vector<2x512xf32> -> vector<2x512xf32>
    %c0_131 = arith.constant 0 : index
    %c0_132 = arith.constant 0 : index
    %396 = vector.load %arg5[%c0_131, %c0_132] : memref<1x512xf32, #tpu.memory_space<vmem>>, vector<1x512xf32>
    %397 = vector.broadcast %396 : vector<1x512xf32> to vector<2x512xf32>
    %398 = arith.addf %395, %397 : vector<2x512xf32>
    %399 = vector.extract_strided_slice %398 {offsets = [0, 0], sizes = [2, 128], strides = [1, 1]} : vector<2x512xf32> to vector<2x128xf32>
    %400 = arith.negf %399 : vector<2x128xf32>
    %401 = math.exp %400 : vector<2x128xf32>
    %cst_133 = arith.constant 1.000000e+00 : f32
    %402 = vector.broadcast %cst_133 : f32 to vector<2x128xf32>
    %403 = arith.addf %402, %401 : vector<2x128xf32>
    %404 = arith.divf %402, %403 : vector<2x128xf32>
    %405 = vector.extract_strided_slice %398 {offsets = [0, 128], sizes = [2, 128], strides = [1, 1]} : vector<2x512xf32> to vector<2x128xf32>
    %406 = arith.negf %405 : vector<2x128xf32>
    %407 = math.exp %406 : vector<2x128xf32>
    %cst_134 = arith.constant 1.000000e+00 : f32
    %408 = vector.broadcast %cst_134 : f32 to vector<2x128xf32>
    %409 = arith.addf %408, %407 : vector<2x128xf32>
    %410 = arith.divf %408, %409 : vector<2x128xf32>
    %411 = vector.extract_strided_slice %398 {offsets = [0, 256], sizes = [2, 128], strides = [1, 1]} : vector<2x512xf32> to vector<2x128xf32>
    %412 = math.tanh %411 : vector<2x128xf32>
    %413 = vector.extract_strided_slice %398 {offsets = [0, 384], sizes = [2, 128], strides = [1, 1]} : vector<2x512xf32> to vector<2x128xf32>
    %414 = arith.negf %413 : vector<2x128xf32>
    %415 = math.exp %414 : vector<2x128xf32>
    %cst_135 = arith.constant 1.000000e+00 : f32
    %416 = vector.broadcast %cst_135 : f32 to vector<2x128xf32>
    %417 = arith.addf %416, %415 : vector<2x128xf32>
    %418 = arith.divf %416, %417 : vector<2x128xf32>
    %419 = arith.mulf %410, %354 : vector<2x128xf32>
    %420 = arith.mulf %404, %412 : vector<2x128xf32>
    %421 = arith.addf %419, %420 : vector<2x128xf32>
    %422 = math.tanh %421 : vector<2x128xf32>
    %423 = arith.mulf %418, %422 : vector<2x128xf32>
    %424 = vector.extract_strided_slice %423 {offsets = [0, 0], sizes = [2, 7], strides = [1, 1]} : vector<2x128xf32> to vector<2x7xf32>
    %c0_136 = arith.constant 0 : index
    %c5_137 = arith.constant 5 : index
    %c0_138 = arith.constant 0 : index
    %425 = vector.load %arg6[%c0_136, %c5_137, %c0_138] : memref<2x8x7xf32, #tpu.memory_space<vmem>>, vector<2x1x7xf32>
    %426 = vector.shape_cast %425 : vector<2x1x7xf32> to vector<2x7xf32>
    %427 = vector.shape_cast %424 : vector<2x7xf32> to vector<2x1x7xf32>
    tpu.vector_store %arg6[%c0_136, %c5_137, %c0_138], %427 {strides = array<i32>} : memref<2x8x7xf32, #tpu.memory_space<vmem>>, vector<2x1x7xf32>,
    %c0_139 = arith.constant 0 : index
    %c6 = arith.constant 6 : index
    %c0_140 = arith.constant 0 : index
    %428 = vector.load %arg7[%c0_139, %c6, %c0_140] : memref<2x8x512xf32, #tpu.memory_space<vmem>>, vector<2x1x512xf32>
    %429 = vector.shape_cast %428 : vector<2x1x512xf32> to vector<2x512xf32>
    %430 = arith.truncf %391 : vector<2x128xf32> to vector<2x128xbf16>
    %c0_141 = arith.constant 0 : index
    %c0_142 = arith.constant 0 : index
    %431 = vector.load %arg2[%c0_141, %c0_142] : memref<128x512xbf16, #tpu.memory_space<vmem>>, vector<128x512xbf16>
    %cst_143 = arith.constant dense<0.000000e+00> : vector<2x512xf32>
    %432 = tpu.matmul %430, %431, %cst_143 {dimension_numbers = #tpu.dot_dimension_numbers<[1], [0], [0], [1], [0, 0, 1, 1], [], []>} : vector<2x128xbf16>, vector<128x512xbf16>, vector<2x512xf32> -> vector<2x512xf32>
    %433 = arith.addf %429, %432 : vector<2x512xf32>
    %434 = vector.extract_strided_slice %433 {offsets = [0, 0], sizes = [2, 128], strides = [1, 1]} : vector<2x512xf32> to vector<2x128xf32>
    %435 = arith.negf %434 : vector<2x128xf32>
    %436 = math.exp %435 : vector<2x128xf32>
    %cst_144 = arith.constant 1.000000e+00 : f32
    %437 = vector.broadcast %cst_144 : f32 to vector<2x128xf32>
    %438 = arith.addf %437, %436 : vector<2x128xf32>
    %439 = arith.divf %437, %438 : vector<2x128xf32>
    %440 = vector.extract_strided_slice %433 {offsets = [0, 128], sizes = [2, 128], strides = [1, 1]} : vector<2x512xf32> to vector<2x128xf32>
    %441 = arith.negf %440 : vector<2x128xf32>
    %442 = math.exp %441 : vector<2x128xf32>
    %cst_145 = arith.constant 1.000000e+00 : f32
    %443 = vector.broadcast %cst_145 : f32 to vector<2x128xf32>
    %444 = arith.addf %443, %442 : vector<2x128xf32>
    %445 = arith.divf %443, %444 : vector<2x128xf32>
    %446 = vector.extract_strided_slice %433 {offsets = [0, 256], sizes = [2, 128], strides = [1, 1]} : vector<2x512xf32> to vector<2x128xf32>
    %447 = math.tanh %446 : vector<2x128xf32>
    %448 = vector.extract_strided_slice %433 {offsets = [0, 384], sizes = [2, 128], strides = [1, 1]} : vector<2x512xf32> to vector<2x128xf32>
    %449 = arith.negf %448 : vector<2x128xf32>
    %450 = math.exp %449 : vector<2x128xf32>
    %cst_146 = arith.constant 1.000000e+00 : f32
    %451 = vector.broadcast %cst_146 : f32 to vector<2x128xf32>
    %452 = arith.addf %451, %450 : vector<2x128xf32>
    %453 = arith.divf %451, %452 : vector<2x128xf32>
    %454 = arith.mulf %445, %389 : vector<2x128xf32>
    %455 = arith.mulf %439, %447 : vector<2x128xf32>
    %456 = arith.addf %454, %455 : vector<2x128xf32>
    %457 = math.tanh %456 : vector<2x128xf32>
    %458 = arith.mulf %453, %457 : vector<2x128xf32>
    %459 = tpu.concatenate %458, %423 in 1 : vector<2x128xf32>, vector<2x128xf32> -> vector<2x256xf32>
    %460 = arith.truncf %459 : vector<2x256xf32> to vector<2x256xbf16>
    %c0_147 = arith.constant 0 : index
    %c0_148 = arith.constant 0 : index
    %461 = vector.load %arg4[%c0_147, %c0_148] : memref<256x512xbf16, #tpu.memory_space<vmem>>, vector<256x512xbf16>
    %cst_149 = arith.constant dense<0.000000e+00> : vector<2x512xf32>
    %462 = tpu.matmul %460, %461, %cst_149 {dimension_numbers = #tpu.dot_dimension_numbers<[1], [0], [0], [1], [0, 0, 1, 1], [], []>} : vector<2x256xbf16>, vector<256x512xbf16>, vector<2x512xf32> -> vector<2x512xf32>
    %c0_150 = arith.constant 0 : index
    %c0_151 = arith.constant 0 : index
    %463 = vector.load %arg5[%c0_150, %c0_151] : memref<1x512xf32, #tpu.memory_space<vmem>>, vector<1x512xf32>
    %464 = vector.broadcast %463 : vector<1x512xf32> to vector<2x512xf32>
    %465 = arith.addf %462, %464 : vector<2x512xf32>
    %466 = vector.extract_strided_slice %465 {offsets = [0, 0], sizes = [2, 128], strides = [1, 1]} : vector<2x512xf32> to vector<2x128xf32>
    %467 = arith.negf %466 : vector<2x128xf32>
    %468 = math.exp %467 : vector<2x128xf32>
    %cst_152 = arith.constant 1.000000e+00 : f32
    %469 = vector.broadcast %cst_152 : f32 to vector<2x128xf32>
    %470 = arith.addf %469, %468 : vector<2x128xf32>
    %471 = arith.divf %469, %470 : vector<2x128xf32>
    %472 = vector.extract_strided_slice %465 {offsets = [0, 128], sizes = [2, 128], strides = [1, 1]} : vector<2x512xf32> to vector<2x128xf32>
    %473 = arith.negf %472 : vector<2x128xf32>
    %474 = math.exp %473 : vector<2x128xf32>
    %cst_153 = arith.constant 1.000000e+00 : f32
    %475 = vector.broadcast %cst_153 : f32 to vector<2x128xf32>
    %476 = arith.addf %475, %474 : vector<2x128xf32>
    %477 = arith.divf %475, %476 : vector<2x128xf32>
    %478 = vector.extract_strided_slice %465 {offsets = [0, 256], sizes = [2, 128], strides = [1, 1]} : vector<2x512xf32> to vector<2x128xf32>
    %479 = math.tanh %478 : vector<2x128xf32>
    %480 = vector.extract_strided_slice %465 {offsets = [0, 384], sizes = [2, 128], strides = [1, 1]} : vector<2x512xf32> to vector<2x128xf32>
    %481 = arith.negf %480 : vector<2x128xf32>
    %482 = math.exp %481 : vector<2x128xf32>
    %cst_154 = arith.constant 1.000000e+00 : f32
    %483 = vector.broadcast %cst_154 : f32 to vector<2x128xf32>
    %484 = arith.addf %483, %482 : vector<2x128xf32>
    %485 = arith.divf %483, %484 : vector<2x128xf32>
    %486 = arith.mulf %477, %421 : vector<2x128xf32>
    %487 = arith.mulf %471, %479 : vector<2x128xf32>
    %488 = arith.addf %486, %487 : vector<2x128xf32>
    %489 = math.tanh %488 : vector<2x128xf32>
    %490 = arith.mulf %485, %489 : vector<2x128xf32>
    %491 = vector.extract_strided_slice %490 {offsets = [0, 0], sizes = [2, 7], strides = [1, 1]} : vector<2x128xf32> to vector<2x7xf32>
    %c0_155 = arith.constant 0 : index
    %c6_156 = arith.constant 6 : index
    %c0_157 = arith.constant 0 : index
    %492 = vector.load %arg6[%c0_155, %c6_156, %c0_157] : memref<2x8x7xf32, #tpu.memory_space<vmem>>, vector<2x1x7xf32>
    %493 = vector.shape_cast %492 : vector<2x1x7xf32> to vector<2x7xf32>
    %494 = vector.shape_cast %491 : vector<2x7xf32> to vector<2x1x7xf32>
    tpu.vector_store %arg6[%c0_155, %c6_156, %c0_157], %494 {strides = array<i32>} : memref<2x8x7xf32, #tpu.memory_space<vmem>>, vector<2x1x7xf32>,
    %c0_158 = arith.constant 0 : index
    %c7 = arith.constant 7 : index
    %c0_159 = arith.constant 0 : index
    %495 = vector.load %arg7[%c0_158, %c7, %c0_159] : memref<2x8x512xf32, #tpu.memory_space<vmem>>, vector<2x1x512xf32>
    %496 = vector.shape_cast %495 : vector<2x1x512xf32> to vector<2x512xf32>
    %497 = arith.truncf %458 : vector<2x128xf32> to vector<2x128xbf16>
    %c0_160 = arith.constant 0 : index
    %c0_161 = arith.constant 0 : index
    %498 = vector.load %arg2[%c0_160, %c0_161] : memref<128x512xbf16, #tpu.memory_space<vmem>>, vector<128x512xbf16>
    %cst_162 = arith.constant dense<0.000000e+00> : vector<2x512xf32>
    %499 = tpu.matmul %497, %498, %cst_162 {dimension_numbers = #tpu.dot_dimension_numbers<[1], [0], [0], [1], [0, 0, 1, 1], [], []>} : vector<2x128xbf16>, vector<128x512xbf16>, vector<2x512xf32> -> vector<2x512xf32>
    %500 = arith.addf %496, %499 : vector<2x512xf32>
    %501 = vector.extract_strided_slice %500 {offsets = [0, 0], sizes = [2, 128], strides = [1, 1]} : vector<2x512xf32> to vector<2x128xf32>
    %502 = arith.negf %501 : vector<2x128xf32>
    %503 = math.exp %502 : vector<2x128xf32>
    %cst_163 = arith.constant 1.000000e+00 : f32
    %504 = vector.broadcast %cst_163 : f32 to vector<2x128xf32>
    %505 = arith.addf %504, %503 : vector<2x128xf32>
    %506 = arith.divf %504, %505 : vector<2x128xf32>
    %507 = vector.extract_strided_slice %500 {offsets = [0, 128], sizes = [2, 128], strides = [1, 1]} : vector<2x512xf32> to vector<2x128xf32>
    %508 = arith.negf %507 : vector<2x128xf32>
    %509 = math.exp %508 : vector<2x128xf32>
    %cst_164 = arith.constant 1.000000e+00 : f32
    %510 = vector.broadcast %cst_164 : f32 to vector<2x128xf32>
    %511 = arith.addf %510, %509 : vector<2x128xf32>
    %512 = arith.divf %510, %511 : vector<2x128xf32>
    %513 = vector.extract_strided_slice %500 {offsets = [0, 256], sizes = [2, 128], strides = [1, 1]} : vector<2x512xf32> to vector<2x128xf32>
    %514 = math.tanh %513 : vector<2x128xf32>
    %515 = vector.extract_strided_slice %500 {offsets = [0, 384], sizes = [2, 128], strides = [1, 1]} : vector<2x512xf32> to vector<2x128xf32>
    %516 = arith.negf %515 : vector<2x128xf32>
    %517 = math.exp %516 : vector<2x128xf32>
    %cst_165 = arith.constant 1.000000e+00 : f32
    %518 = vector.broadcast %cst_165 : f32 to vector<2x128xf32>
    %519 = arith.addf %518, %517 : vector<2x128xf32>
    %520 = arith.divf %518, %519 : vector<2x128xf32>
    %521 = arith.mulf %512, %456 : vector<2x128xf32>
    %522 = arith.mulf %506, %514 : vector<2x128xf32>
    %523 = arith.addf %521, %522 : vector<2x128xf32>
    %524 = math.tanh %523 : vector<2x128xf32>
    %525 = arith.mulf %520, %524 : vector<2x128xf32>
    %526 = tpu.concatenate %525, %490 in 1 : vector<2x128xf32>, vector<2x128xf32> -> vector<2x256xf32>
    %527 = arith.truncf %526 : vector<2x256xf32> to vector<2x256xbf16>
    %c0_166 = arith.constant 0 : index
    %c0_167 = arith.constant 0 : index
    %528 = vector.load %arg4[%c0_166, %c0_167] : memref<256x512xbf16, #tpu.memory_space<vmem>>, vector<256x512xbf16>
    %cst_168 = arith.constant dense<0.000000e+00> : vector<2x512xf32>
    %529 = tpu.matmul %527, %528, %cst_168 {dimension_numbers = #tpu.dot_dimension_numbers<[1], [0], [0], [1], [0, 0, 1, 1], [], []>} : vector<2x256xbf16>, vector<256x512xbf16>, vector<2x512xf32> -> vector<2x512xf32>
    %c0_169 = arith.constant 0 : index
    %c0_170 = arith.constant 0 : index
    %530 = vector.load %arg5[%c0_169, %c0_170] : memref<1x512xf32, #tpu.memory_space<vmem>>, vector<1x512xf32>
    %531 = vector.broadcast %530 : vector<1x512xf32> to vector<2x512xf32>
    %532 = arith.addf %529, %531 : vector<2x512xf32>
    %533 = vector.extract_strided_slice %532 {offsets = [0, 0], sizes = [2, 128], strides = [1, 1]} : vector<2x512xf32> to vector<2x128xf32>
    %534 = arith.negf %533 : vector<2x128xf32>
    %535 = math.exp %534 : vector<2x128xf32>
    %cst_171 = arith.constant 1.000000e+00 : f32
    %536 = vector.broadcast %cst_171 : f32 to vector<2x128xf32>
    %537 = arith.addf %536, %535 : vector<2x128xf32>
    %538 = arith.divf %536, %537 : vector<2x128xf32>
    %539 = vector.extract_strided_slice %532 {offsets = [0, 128], sizes = [2, 128], strides = [1, 1]} : vector<2x512xf32> to vector<2x128xf32>
    %540 = arith.negf %539 : vector<2x128xf32>
    %541 = math.exp %540 : vector<2x128xf32>
    %cst_172 = arith.constant 1.000000e+00 : f32
    %542 = vector.broadcast %cst_172 : f32 to vector<2x128xf32>
    %543 = arith.addf %542, %541 : vector<2x128xf32>
    %544 = arith.divf %542, %543 : vector<2x128xf32>
    %545 = vector.extract_strided_slice %532 {offsets = [0, 256], sizes = [2, 128], strides = [1, 1]} : vector<2x512xf32> to vector<2x128xf32>
    %546 = math.tanh %545 : vector<2x128xf32>
    %547 = vector.extract_strided_slice %532 {offsets = [0, 384], sizes = [2, 128], strides = [1, 1]} : vector<2x512xf32> to vector<2x128xf32>
    %548 = arith.negf %547 : vector<2x128xf32>
    %549 = math.exp %548 : vector<2x128xf32>
    %cst_173 = arith.constant 1.000000e+00 : f32
    %550 = vector.broadcast %cst_173 : f32 to vector<2x128xf32>
    %551 = arith.addf %550, %549 : vector<2x128xf32>
    %552 = arith.divf %550, %551 : vector<2x128xf32>
    %553 = arith.mulf %544, %488 : vector<2x128xf32>
    %554 = arith.mulf %538, %546 : vector<2x128xf32>
    %555 = arith.addf %553, %554 : vector<2x128xf32>
    %556 = math.tanh %555 : vector<2x128xf32>
    %557 = arith.mulf %552, %556 : vector<2x128xf32>
    %558 = vector.extract_strided_slice %557 {offsets = [0, 0], sizes = [2, 7], strides = [1, 1]} : vector<2x128xf32> to vector<2x7xf32>
    %c0_174 = arith.constant 0 : index
    %c7_175 = arith.constant 7 : index
    %c0_176 = arith.constant 0 : index
    %559 = vector.load %arg6[%c0_174, %c7_175, %c0_176] : memref<2x8x7xf32, #tpu.memory_space<vmem>>, vector<2x1x7xf32>
    %560 = vector.shape_cast %559 : vector<2x1x7xf32> to vector<2x7xf32>
    %561 = vector.shape_cast %558 : vector<2x7xf32> to vector<2x1x7xf32>
    tpu.vector_store %arg6[%c0_174, %c7_175, %c0_176], %561 {strides = array<i32>} : memref<2x8x7xf32, #tpu.memory_space<vmem>>, vector<2x1x7xf32>,
    return
  }
}

</mosaic_0001>

<bundles_post_ra>
// kernel: tpu_custom_call.1
= control target key start
LH: loop header
LB: loop body
LE: loop exit
PB: predicated region body
PF: predicated region fallthrough
CT: control target
= control target key end

     0   :  { %11 = vsyncpa [#allocation4], 0  ;;  %s11756_s0 = inlined_call_operand.hbm [shape: f32[2,8,16], index: 0, kind: input, shape index: {}]   ;;  %s11757_s1 = inlined_call_operand.hbm [shape: bf16[16,512], index: 1, kind: input, shape index: {}]   ;;  %s11758_s2 = inlined_call_operand.hbm [shape: bf16[128,512], index: 2, kind: input, shape index: {}]   ;;  %s11759_s3 = inlined_call_operand.vmem [shape: f32[1,512], index: 3, kind: input, shape index: {}]   ;;  %s11760_s4 = inlined_call_operand.hbm [shape: bf16[256,512], index: 4, kind: input, shape index: {}]   ;;  %s11761_s5 = inlined_call_operand.vmem [shape: f32[1,512], index: 5, kind: input, shape index: {}]   ;;  %s11762_s6 = inlined_call_operand.vmem [shape: f32[2,8,7], index: 6, kind: output, shape index: {}]  }
   0x1   :  { %12 = vsyncpa [#allocation6], 0 }
   0x2   :  { %13 = vsyncpa [#allocation9], 0  ;;  %s9901_s21 = smov [#allocation5]   ;;  %s9807_s25 = scalar_lea.hbm %s11757_s1, 512 }
   0x3   :  { %s31_s22 = sshll.u32 %s9901_s21, 4  ;;  %p9808_p0 = scmp.ne.s32.totalorder %s11757_s1, %s9807_s25  ;;  %s32_s22 = int_to_ptr.vmem [resolvable:$true] %s31_s22 }
   0x4   :  { %p9811_p1 = scmp.lt.u32.totalorder %s9807_s25, %s11757_s1 }
   0x6   :  { %p9813_p2 = pnand %p9811_p1, %p9808_p0 }
   0x8   :  { %9816 = shalt.err (!%p9813_p2)
}
   0x9   :  { %s9817_s30 = scalar_lea.vmem %s32_s22, 512  ;;  %p9822_p4 = scmp.lt.s32.totalorder %s32_s22, %s32_s22 }
   0xa   :  { %p9818_p3 = scmp.ne.s32.totalorder %s32_s22, %s9817_s30  ;;  %p9823_p5 = scmp.lt.s32.totalorder %s9817_s30, %s9817_s30 }
   0xc   :  { %p9824_p6 = por %p9823_p5, %p9822_p4 }
   0xe   :  { %p9825_p7 = pnand %p9824_p6, %p9818_p3 }
  0x10   :  { %9828 = shalt.err (!%p9825_p7)
}
  0x11   :  { %s9902_s7 = smov 256   ;;  %s9903_s8 = smov 16  }
  0x12   :  { %37 = dma.hbm_to_vmem [thread:$0]  %s11757_s1, 512, %s32_s22, [#allocation6], %s9902_s7, %s9902_s7, %s9903_s8  }
  0x13   :  { %s9904_s11 = smov [#allocation3]   ;;  %s9829_s15 = scalar_lea.hbm %s11756_s0, 256 }
  0x14   :  { %s19_s12 = sshll.u32 %s9904_s11, 4  ;;  %p9830_p8 = scmp.ne.s32.totalorder %s11756_s0, %s9829_s15  ;;  %s20_s12 = int_to_ptr.vmem [resolvable:$true] %s19_s12 }
  0x15   :  { %p9833_p9 = scmp.lt.u32.totalorder %s9829_s15, %s11756_s0 }
  0x17   :  { %p9835_p10 = pnand %p9833_p9, %p9830_p8 }
  0x19   :  { %9838 = shalt.err (!%p9835_p10)
}
  0x1a   :  { %s9839_s20 = scalar_lea.vmem %s20_s12, 256  ;;  %p9844_p12 = scmp.lt.s32.totalorder %s20_s12, %s20_s12 }
  0x1b   :  { %p9840_p11 = scmp.ne.s32.totalorder %s20_s12, %s9839_s20  ;;  %p9845_p13 = scmp.lt.s32.totalorder %s9839_s20, %s9839_s20 }
  0x1d   :  { %p9846_p0 = por %p9845_p13, %p9844_p12 }
  0x1f   :  { %p9847_p1 = pnand %p9846_p0, %p9840_p11 }
  0x21   :  { %9850 = shalt.err (!%p9847_p1)
}
  0x22   :  { %s9905_s1 = smov 128   ;;  %s9906_s21 = smov 8  }
  0x23   :  { %25 = dma.hbm_to_vmem [thread:$0]  %s11756_s0, 256, %s20_s12, [#allocation4], %s9905_s1, %s9905_s1, %s9906_s21  }
  0x24   :  { %s9907_s24 = smov [#allocation7]   ;;  %s9908_s26 = smov [#allocation8]  }
  0x25   :  { %s43_s25 = sshll.u32 %s9907_s24, 4  ;;  %s57_s27 = sshll.u32 %s9908_s26, 4  ;;  %s44_s25 = int_to_ptr.vmem [resolvable:$true] %s43_s25  ;;  %s9974_s27 = int_to_ptr.vmem [resolvable:$true] %s57_s27 }
  0x26   :  { %s9851_s30 = scalar_lea.hbm %s11758_s2, 4096 }
  0x27   :  { %p9852_p2 = scmp.ne.s32.totalorder %s11758_s2, %s9851_s30  ;;  %p9855_p3 = scmp.lt.u32.totalorder %s9851_s30, %s11758_s2 }
  0x29   :  { %p9857_p4 = pnand %p9855_p3, %p9852_p2 }
  0x2b   :  { %9860 = shalt.err (!%p9857_p4)
}
  0x2c   :  { %s9861_s0 = scalar_lea.vmem %s44_s25, 4096  ;;  %p9866_p6 = scmp.lt.s32.totalorder %s44_s25, %s44_s25 }
  0x2d   :  { %p9862_p5 = scmp.ne.s32.totalorder %s44_s25, %s9861_s0  ;;  %p9867_p7 = scmp.lt.s32.totalorder %s9861_s0, %s9861_s0 }
  0x2f   :  { %p9868_p8 = por %p9867_p7, %p9866_p6 }
  0x31   :  { %p9869_p9 = pnand %p9868_p8, %p9862_p5 }
  0x33   :  { %9872 = shalt.err (!%p9869_p9)
}
  0x34   :  { %49 = dma.hbm_to_vmem [thread:$0]  %s11758_s2, 4096, %s44_s25, [#allocation6], %s9902_s7, %s9902_s7, %s9903_s8  }
  0x35   :  { %s9873_s17 = scalar_lea.hbm %s11760_s4, 8192 }
  0x36   :  { %p9874_p10 = scmp.ne.s32.totalorder %s11760_s4, %s9873_s17  ;;  %p9877_p11 = scmp.lt.u32.totalorder %s9873_s17, %s11760_s4 }
  0x38   :  { %p9879_p12 = pnand %p9877_p11, %p9874_p10 }
  0x3a   :  { %9882 = shalt.err (!%p9879_p12)
}
  0x3b   :  { %s9883_s21 = scalar_lea.vmem %s9974_s27, 8192  ;;  %p9888_p0 = scmp.lt.s32.totalorder %s9974_s27, %s9974_s27 }
  0x3c   :  { %p9884_p13 = scmp.ne.s32.totalorder %s9974_s27, %s9883_s21  ;;  %p9889_p1 = scmp.lt.s32.totalorder %s9883_s21, %s9883_s21 }
  0x3e   :  { %p9890_p2 = por %p9889_p1, %p9888_p0 }
  0x40   :  { %p9891_p3 = pnand %p9890_p2, %p9884_p13 }
  0x42   :  { %9894 = shalt.err (!%p9891_p3)
}
  0x43   :  { %63 = dma.hbm_to_vmem [thread:$0]  %s11760_s4, 8192, %s9974_s27, [#allocation9], %s9902_s7, %s9902_s7, %s9903_s8  }
  0x44   :  { %9895 = dma.done.wait [#allocation4], 256  }
  0x45   :  { %9896 = vsyncadd [#allocation4], 4294967040 }
  0x46   :  { %9897 = dma.done.wait [#allocation6], 4608  }
  0x47   :  { %9898 = vsyncadd [#allocation6], 4294962688 }
  0x48   :  { %9899 = dma.done.wait [#allocation9], 8192  }
  0x49   :  { %9900 = vsyncadd [#allocation9], 4294959104  ;;  %v11763_v0 = vmov 0   ;;  %v8809_v1 = vld [vmem:[#allocation5 + $0x4] ss:$16 sps:$4 sm:$0xff]   ;;  %vm127_vm0 = vcmask 130048  }
  0x4a   :  { %163 = vmatprep.mubr.bf16.mxu0 %v11763_v0  ;;  %204 = vmatprep.mubr.bf16.mxu1 %v11763_v0  ;;  %v8811_v2 = vld [vmem:[#allocation5 + $0xc] ss:$16 sps:$4 sm:$0xff]   ;;  %v8813_v3 = vld [vmem:[#allocation5] ss:$16 sps:$4 sm:$0xff]   ;;  %v8814_v4 = vld [vmem:[#allocation5 + $0x8] ss:$16 sps:$4 sm:$0xff]  }
  0x4b   :  { %131 = vmatprep.subr.bf16.mxu0 %v8809_v1  ;;  %v79_v5 = vld [vmem:[#allocation3] sm:$0xff]  ;;  %172 = vmatprep.subr.bf16.mxu1 %v8811_v2  ;;  %v8820_v8 = vld [vmem:[#allocation7 + $0xc] ss:$16 sps:$4 sm:$0xff]   ;;  %v8818_v12 = vld [vmem:[#allocation7 + $0x8] ss:$16 sps:$4 sm:$0xff]   ;;  %vm1338_vm1 = vcmask 1041409  }
  0x4c   :  { %v80_v6 = vpack.c.bf16 %v79_v5, %v79_v5  ;;  %132 = vmatpush1.bf16.msra.mxu0 %v8813_v3  ;;  %173 = vmatpush1.bf16.msra.mxu1 %v8814_v4  ;;  %v8817_v7 = vld [vmem:[#allocation7 + $0x4] ss:$16 sps:$4 sm:$0xff]   ;;  %v218_v9 = vld [vmem:[#allocation3 + $0x8] sm:$0xff]  ;;  %v8815_v11 = vld [vmem:[#allocation7] ss:$16 sps:$4 sm:$0xff]   ;;  %vm1292_vm2 = vcmask 49152  }
  0x4d   :  { %269 = vmatprep.subr.bf16.mxu0 %v8809_v1  ;;  %310 = vmatprep.subr.bf16.mxu1 %v8811_v2  ;;  %v219_v10 = vpack.c.bf16 %v218_v9, %v218_v9  ;;  %v8823_v13 = vld [vmem:[#allocation7 + $0x24] ss:$16 sps:$4 sm:$0xff]   ;;  %v8826_v14 = vld [vmem:[#allocation7 + $0x2c] ss:$16 sps:$4 sm:$0xff]   ;;  %v8821_v15 = vld [vmem:[#allocation7 + $0x20] ss:$16 sps:$4 sm:$0xff]  }
  0x4e   :  { %v8824_v16 = vld [vmem:[#allocation7 + $0x28] ss:$16 sps:$4 sm:$0xff]   ;;  %v8829_v17 = vld [vmem:[#allocation7 + $0x44] ss:$16 sps:$4 sm:$0xff]   ;;  %v8832_v18 = vld [vmem:[#allocation7 + $0x4c] ss:$16 sps:$4 sm:$0xff]  }
  0x4f   :  { %7950 = vmatmul.mubr.msk.bf16.vlgmr.msra.gmra.mrb[0].mxu0 %vm127_vm0, %v80_v6  ;;  %7951 = vmatmul.mubr.msk.bf16.vlgmr.msra.gmra.mrb[0].mxu1 %vm127_vm0, %v80_v6  ;;  %v8827_v19 = vld [vmem:[#allocation7 + $0x40] ss:$16 sps:$4 sm:$0xff]   ;;  %v8830_v20 = vld [vmem:[#allocation7 + $0x48] ss:$16 sps:$4 sm:$0xff]   ;;  %v8835_v21 = vld [vmem:[#allocation7 + $0x64] ss:$16 sps:$4 sm:$0xff]  }
  0x50   :  { %270 = vmatpush1.bf16.msra.mxu0 %v8813_v3  ;;  %311 = vmatpush1.bf16.msra.mxu1 %v8814_v4  ;;  %v8838_v22 = vld [vmem:[#allocation7 + $0x6c] ss:$16 sps:$4 sm:$0xff]   ;;  %v8833_v23 = vld [vmem:[#allocation7 + $0x60] ss:$16 sps:$4 sm:$0xff]   ;;  %v8836_v24 = vld [vmem:[#allocation7 + $0x68] ss:$16 sps:$4 sm:$0xff]  }
  0x51   :  { %301 = vmatprep.mubr.bf16.mxu0 %v11763_v0  ;;  %342 = vmatprep.mubr.bf16.mxu1 %v11763_v0  ;;  %v8841_v25 = vld [vmem:[#allocation7 + $0x84] ss:$16 sps:$4 sm:$0xff]   ;;  %v8844_v26 = vld [vmem:[#allocation7 + $0x8c] ss:$16 sps:$4 sm:$0xff]   ;;  %v8839_v27 = vld [vmem:[#allocation7 + $0x80] ss:$16 sps:$4 sm:$0xff]  }
  0x52   :  { %551 = vmatprep.subr.bf16.mxu0 %v8817_v7  ;;  %592 = vmatprep.subr.bf16.mxu1 %v8820_v8  ;;  %v8842_v28 = vld [vmem:[#allocation7 + $0x88] ss:$16 sps:$4 sm:$0xff]   ;;  %v8847_v29 = vld [vmem:[#allocation7 + $0xa4] ss:$16 sps:$4 sm:$0xff]   ;;  %v8850_v30 = vld [vmem:[#allocation7 + $0xac] ss:$16 sps:$4 sm:$0xff]  }
  0x53   :  { %v8845_v31 = vld [vmem:[#allocation7 + $0xa0] ss:$16 sps:$4 sm:$0xff]   ;;  %v8848_v32 = vld [vmem:[#allocation7 + $0xa8] ss:$16 sps:$4 sm:$0xff]   ;;  %v8853_v33 = vld [vmem:[#allocation7 + $0xc4] ss:$16 sps:$4 sm:$0xff]  }
  0x54   :  { %v8856_v34 = vld [vmem:[#allocation7 + $0xcc] ss:$16 sps:$4 sm:$0xff]   ;;  %v8851_v35 = vld [vmem:[#allocation7 + $0xc0] ss:$16 sps:$4 sm:$0xff]   ;;  %v8854_v36 = vld [vmem:[#allocation7 + $0xc8] ss:$16 sps:$4 sm:$0xff]  }
  0x55   :  { %v8859_v37 = vld [vmem:[#allocation7 + $0xe4] ss:$16 sps:$4 sm:$0xff]   ;;  %v8862_v38 = vld [vmem:[#allocation7 + $0xec] ss:$16 sps:$4 sm:$0xff]   ;;  %v8857_v39 = vld [vmem:[#allocation7 + $0xe0] ss:$16 sps:$4 sm:$0xff]  }
  0x56   :  { %v8860_v40 = vld [vmem:[#allocation7 + $0xe8] ss:$16 sps:$4 sm:$0xff]   ;;  %v10023_v41 = vld [vmem:[#allocation8 + $0x4] ss:$16 sps:$4 sm:$0xff]   ;;  %v10025_v42 = vld [vmem:[#allocation8 + $0xc] ss:$16 sps:$4 sm:$0xff]  }
  0x57   :  { %7956 = vmatmul.mubr.msk.bf16.vlgmr.msra.gmra.mrb[4].mxu0 %vm127_vm0, %v219_v10  ;;  %7957 = vmatmul.mubr.msk.bf16.vlgmr.msra.gmra.mrb[4].mxu1 %vm127_vm0, %v219_v10  ;;  %v10027_v43 = vld [vmem:[#allocation8] ss:$16 sps:$4 sm:$0xff]   ;;  %v10029_v44 = vld [vmem:[#allocation8 + $0x8] ss:$16 sps:$4 sm:$0xff]   ;;  %v10035_v45 = vld [vmem:[#allocation8 + $0x24] ss:$16 sps:$4 sm:$0xff]  }
  0x58   :  { %552 = vmatpush1.bf16.msra.mxu0 %v8815_v11  ;;  %593 = vmatpush1.bf16.msra.mxu1 %v8818_v12  ;;  %v10037_v46 = vld [vmem:[#allocation8 + $0x2c] ss:$16 sps:$4 sm:$0xff]   ;;  %v10039_v47 = vld [vmem:[#allocation8 + $0x20] ss:$16 sps:$4 sm:$0xff]   ;;  %v10041_v48 = vld [vmem:[#allocation8 + $0x28] ss:$16 sps:$4 sm:$0xff]  }
  0x59   :  { %553 = vmatprep.subr.bf16.mxu0 %v8823_v13  ;;  %594 = vmatprep.subr.bf16.mxu1 %v8826_v14  ;;  %v10047_v49 = vld [vmem:[#allocation8 + $0x44] ss:$16 sps:$4 sm:$0xff]   ;;  %v10049_v50 = vld [vmem:[#allocation8 + $0x4c] ss:$16 sps:$4 sm:$0xff]   ;;  %v10051_v51 = vld [vmem:[#allocation8 + $0x40] ss:$16 sps:$4 sm:$0xff]  }
  0x5a   :  { %583 = vmatprep.mubr.bf16.mxu0 %v11763_v0  ;;  %624 = vmatprep.mubr.bf16.mxu1 %v11763_v0  ;;  %v10053_v52 = vld [vmem:[#allocation8 + $0x48] ss:$16 sps:$4 sm:$0xff]   ;;  %v10059_v53 = vld [vmem:[#allocation8 + $0x64] ss:$16 sps:$4 sm:$0xff]   ;;  %v10061_v54 = vld [vmem:[#allocation8 + $0x6c] ss:$16 sps:$4 sm:$0xff]  }
  0x5b   :  { %v10063_v55 = vld [vmem:[#allocation8 + $0x60] ss:$16 sps:$4 sm:$0xff]   ;;  %v10065_v56 = vld [vmem:[#allocation8 + $0x68] ss:$16 sps:$4 sm:$0xff]   ;;  %v10071_v57 = vld [vmem:[#allocation8 + $0x84] ss:$16 sps:$4 sm:$0xff]  }
  0x5c   :  { %554 = vmatpush1.bf16.msra.mxu0 %v8821_v15  ;;  %595 = vmatpush1.bf16.msra.mxu1 %v8824_v16  ;;  %v10073_v58 = vld [vmem:[#allocation8 + $0x8c] ss:$16 sps:$4 sm:$0xff]   ;;  %v10075_v59 = vld [vmem:[#allocation8 + $0x80] ss:$16 sps:$4 sm:$0xff]   ;;  %v10077_v60 = vld [vmem:[#allocation8 + $0x88] ss:$16 sps:$4 sm:$0xff]  }
  0x5d   :  { %555 = vmatprep.subr.bf16.mxu0 %v8829_v17  ;;  %596 = vmatprep.subr.bf16.mxu1 %v8832_v18  ;;  %v10083_v61 = vld [vmem:[#allocation8 + $0xa4] ss:$16 sps:$4 sm:$0xff]   ;;  %v10085_v62 = vld [vmem:[#allocation8 + $0xac] ss:$16 sps:$4 sm:$0xff]   ;;  %v10087_v63 = vld [vmem:[#allocation8 + $0xa0] ss:$16 sps:$4 sm:$0xff]  }
  0x5e   :  { %v10089_v1 = vld [vmem:[#allocation8 + $0xa8] ss:$16 sps:$4 sm:$0xff]   ;;  %v10095_v2 = vld [vmem:[#allocation8 + $0xc4] ss:$16 sps:$4 sm:$0xff]   ;;  %v10097_v3 = vld [vmem:[#allocation8 + $0xcc] ss:$16 sps:$4 sm:$0xff]  }
  0x5f   :  { %v10099_v4 = vld [vmem:[#allocation8 + $0xc0] ss:$16 sps:$4 sm:$0xff]   ;;  %v10101_v5 = vld [vmem:[#allocation8 + $0xc8] ss:$16 sps:$4 sm:$0xff]   ;;  %v10107_v6 = vld [vmem:[#allocation8 + $0xe4] ss:$16 sps:$4 sm:$0xff]  }
  0x60   :  { %556 = vmatpush1.bf16.msra.mxu0 %v8827_v19  ;;  %597 = vmatpush1.bf16.msra.mxu1 %v8830_v20  ;;  %v10109_v7 = vld [vmem:[#allocation8 + $0xec] ss:$16 sps:$4 sm:$0xff]   ;;  %v10111_v8 = vld [vmem:[#allocation8 + $0xe0] ss:$16 sps:$4 sm:$0xff]   ;;  %v10113_v9 = vld [vmem:[#allocation8 + $0xe8] ss:$16 sps:$4 sm:$0xff]  }
  0x61   :  { %557 = vmatprep.subr.bf16.mxu0 %v8835_v21  ;;  %598 = vmatprep.subr.bf16.mxu1 %v8838_v22  ;;  %v10119_v10 = vld [vmem:[#allocation8 + $0x104] ss:$16 sps:$4 sm:$0xff]   ;;  %v10121_v11 = vld [vmem:[#allocation8 + $0x10c] ss:$16 sps:$4 sm:$0xff]   ;;  %v10123_v12 = vld [vmem:[#allocation8 + $0x100] ss:$16 sps:$4 sm:$0xff]  }
  0x62   :  { %v10125_v13 = vld [vmem:[#allocation8 + $0x108] ss:$16 sps:$4 sm:$0xff]   ;;  %v10131_v14 = vld [vmem:[#allocation8 + $0x124] ss:$16 sps:$4 sm:$0xff]   ;;  %v10133_v15 = vld [vmem:[#allocation8 + $0x12c] ss:$16 sps:$4 sm:$0xff]  }
  0x63   :  { %v10135_v16 = vld [vmem:[#allocation8 + $0x120] ss:$16 sps:$4 sm:$0xff]   ;;  %v10137_v17 = vld [vmem:[#allocation8 + $0x128] ss:$16 sps:$4 sm:$0xff]   ;;  %v10145_v19 = vld [vmem:[#allocation8 + $0x144] ss:$16 sps:$4 sm:$0xff]  }
  0x64   :  { %558 = vmatpush1.bf16.msra.mxu0 %v8833_v23  ;;  %599 = vmatpush1.bf16.msra.mxu1 %v8836_v24  ;;  %v10143_v18 = vld [vmem:[#allocation8 + $0x140] ss:$16 sps:$4 sm:$0xff]   ;;  %v10147_v20 = vld [vmem:[#allocation8 + $0x148] ss:$16 sps:$4 sm:$0xff]   ;;  %v10149_v21 = vld [vmem:[#allocation8 + $0x14c] ss:$16 sps:$4 sm:$0xff]  }
  0x65   :  { %559 = vmatprep.subr.bf16.mxu0 %v8841_v25  ;;  %600 = vmatprep.subr.bf16.mxu1 %v8844_v26  ;;  %11975 = vst [vmem:[#allocation13_spill] sm:$0xff] %v10143_v18  ;;  %11976 = vst [vmem:[#allocation14_spill] sm:$0xff] %v10147_v20  ;;  %v10151_v22 = vld [vmem:[#allocation8 + $0x164] ss:$16 sps:$4 sm:$0xff]   ;;  %v10154_v23 = vld [vmem:[#allocation8 + $0x16c] ss:$16 sps:$4 sm:$0xff]  }
  0x66   :  { %11977 = vst [vmem:[#allocation15_spill] sm:$0xff] %v10149_v21  ;;  %11978 = vst [vmem:[#allocation16_spill] sm:$0xff] %v10151_v22  ;;  %v10158_v24 = vld [vmem:[#allocation8 + $0x160] ss:$16 sps:$4 sm:$0xff]   ;;  %v10162_v25 = vld [vmem:[#allocation8 + $0x168] ss:$16 sps:$4 sm:$0xff]  }
  0x67   :  { %11979 = vst [vmem:[#allocation17_spill] sm:$0xff] %v10154_v23  ;;  %11980 = vst [vmem:[#allocation18_spill] sm:$0xff] %v10158_v24  ;;  %v10164_v26 = vld [vmem:[#allocation8 + $0x184] ss:$16 sps:$4 sm:$0xff]  }
  0x68   :  { %560 = vmatpush1.bf16.msra.mxu0 %v8839_v27  ;;  %601 = vmatpush1.bf16.msra.mxu1 %v8842_v28  ;;  %11981 = vst [vmem:[#allocation19_spill] sm:$0xff] %v10162_v25  ;;  %11982 = vst [vmem:[#allocation20_spill] sm:$0xff] %v10164_v26  ;;  %v10167_v27 = vld [vmem:[#allocation8 + $0x18c] ss:$16 sps:$4 sm:$0xff]   ;;  %v10170_v28 = vld [vmem:[#allocation8 + $0x180] ss:$16 sps:$4 sm:$0xff]  }
  0x69   :  { %561 = vmatprep.subr.bf16.mxu0 %v8847_v29  ;;  %602 = vmatprep.subr.bf16.mxu1 %v8850_v30  ;;  %11983 = vst [vmem:[#allocation21_spill] sm:$0xff] %v10167_v27  ;;  %11984 = vst [vmem:[#allocation22_spill] sm:$0xff] %v10170_v28  ;;  %v10174_v29 = vld [vmem:[#allocation8 + $0x188] ss:$16 sps:$4 sm:$0xff]   ;;  %v10176_v30 = vld [vmem:[#allocation8 + $0x1a4] ss:$16 sps:$4 sm:$0xff]  }
  0x6a   :  { %11985 = vst [vmem:[#allocation23_spill] sm:$0xff] %v10174_v29  ;;  %11986 = vst [vmem:[#allocation24_spill] sm:$0xff] %v10176_v30 }
  0x6c   :  { %562 = vmatpush1.bf16.msra.mxu0 %v8845_v31  ;;  %603 = vmatpush1.bf16.msra.mxu1 %v8848_v32  ;;  %v10179_v31 = vld [vmem:[#allocation8 + $0x1ac] ss:$16 sps:$4 sm:$0xff]   ;;  %v9910_v32 = vmov 0.0|0.0  }
  0x6d   :  { %563 = vmatprep.subr.bf16.mxu0 %v8853_v33  ;;  %604 = vmatprep.subr.bf16.mxu1 %v8856_v34  ;;  %11987 = vst [vmem:[#allocation25_spill] sm:$0xff] %v10179_v31  ;;  %v10182_v33 = vld [vmem:[#allocation8 + $0x1a0] ss:$16 sps:$4 sm:$0xff]   ;;  %v10186_v34 = vld [vmem:[#allocation8 + $0x1a8] ss:$16 sps:$4 sm:$0xff]  }
  0x6e   :  { %11988 = vst [vmem:[#allocation26_spill] sm:$0xff] %v10182_v33  ;;  %11989 = vst [vmem:[#allocation27_spill] sm:$0xff] %v10186_v34 }
  0x70   :  { %564 = vmatpush1.bf16.msra.mxu0 %v8851_v35  ;;  %605 = vmatpush1.bf16.msra.mxu1 %v8854_v36  ;;  %v10188_v35 = vld [vmem:[#allocation8 + $0x1c4] ss:$16 sps:$4 sm:$0xff]   ;;  %v10191_v36 = vld [vmem:[#allocation8 + $0x1cc] ss:$16 sps:$4 sm:$0xff]  }
  0x71   :  { %565 = vmatprep.subr.bf16.mxu0 %v8859_v37  ;;  %606 = vmatprep.subr.bf16.mxu1 %v8862_v38  ;;  %11990 = vst [vmem:[#allocation28_spill] sm:$0xff] %v10188_v35  ;;  %11991 = vst [vmem:[#allocation29_spill] sm:$0xff] %v10191_v36  ;;  %v10194_v37 = vld [vmem:[#allocation8 + $0x1c0] ss:$16 sps:$4 sm:$0xff]   ;;  %v10198_v38 = vld [vmem:[#allocation8 + $0x1c8] ss:$16 sps:$4 sm:$0xff]  }
  0x72   :  { %11992 = vst [vmem:[#allocation30_spill] sm:$0xff] %v10194_v37  ;;  %11993 = vst [vmem:[#allocation31_spill] sm:$0xff] %v10198_v38 }
  0x74   :  { %566 = vmatpush1.bf16.msra.mxu0 %v8857_v39  ;;  %607 = vmatpush1.bf16.msra.mxu1 %v8860_v40  ;;  %v10200_v39 = vld [vmem:[#allocation8 + $0x1e4] ss:$16 sps:$4 sm:$0xff]   ;;  %v10203_v40 = vld [vmem:[#allocation8 + $0x1ec] ss:$16 sps:$4 sm:$0xff]  }
  0x75   :  { %1161 = vmatprep.subr.bf16.mxu0 %v10023_v41  ;;  %1202 = vmatprep.subr.bf16.mxu1 %v10025_v42  ;;  %11994 = vst [vmem:[#allocation32_spill] sm:$0xff] %v10200_v39  ;;  %11995 = vst [vmem:[#allocation33_spill] sm:$0xff] %v10203_v40 }
  0x77   :  { %584 = vmatmul.mubr.bf16.vlgmr.msra.gmra.mrb[8].mxu0 %v11763_v0  ;;  %625 = vmatmul.mubr.bf16.vlgmr.msra.gmra.mrb[8].mxu1 %v11763_v0  ;;  %v10210_v0 = vld [vmem:[#allocation8 + $0x1e8] ss:$16 sps:$4 sm:$0xff]  }
  0x78   :  { %1162 = vmatpush1.bf16.msra.mxu0 %v10027_v43  ;;  %1203 = vmatpush1.bf16.msra.mxu1 %v10029_v44  ;;  %11997 = vst [vmem:[#allocation35_spill] sm:$0xff] %v10210_v0 }
  0x79   :  { %1163 = vmatprep.subr.bf16.mxu0 %v10035_v45  ;;  %1204 = vmatprep.subr.bf16.mxu1 %v10037_v46 }
  0x7a   :  { %1193 = vmatprep.mubr.bf16.mxu0 %v9910_v32  ;;  %1234 = vmatprep.mubr.bf16.mxu1 %v9910_v32  ;;  %v10206_v32 = vld [vmem:[#allocation8 + $0x1e0] ss:$16 sps:$4 sm:$0xff]  }
  0x7b   :  { %11996 = vst [vmem:[#allocation34_spill] sm:$0xff] %v10206_v32 }
  0x7c   :  { %1164 = vmatpush1.bf16.msra.mxu0 %v10039_v47  ;;  %1205 = vmatpush1.bf16.msra.mxu1 %v10041_v48 }
  0x7d   :  { %1165 = vmatprep.subr.bf16.mxu0 %v10047_v49  ;;  %1206 = vmatprep.subr.bf16.mxu1 %v10049_v50 }
  0x80   :  { %1166 = vmatpush1.bf16.msra.mxu0 %v10051_v51  ;;  %1207 = vmatpush1.bf16.msra.mxu1 %v10053_v52 }
  0x81   :  { %1167 = vmatprep.subr.bf16.mxu0 %v10059_v53  ;;  %1208 = vmatprep.subr.bf16.mxu1 %v10061_v54 }
  0x84   :  { %1168 = vmatpush1.bf16.msra.mxu0 %v10063_v55  ;;  %1209 = vmatpush1.bf16.msra.mxu1 %v10065_v56 }
  0x85   :  { %1169 = vmatprep.subr.bf16.mxu0 %v10071_v57  ;;  %1210 = vmatprep.subr.bf16.mxu1 %v10073_v58 }
  0x88   :  { %1170 = vmatpush1.bf16.msra.mxu0 %v10075_v59  ;;  %1211 = vmatpush1.bf16.msra.mxu1 %v10077_v60 }
  0x89   :  { %1171 = vmatprep.subr.bf16.mxu0 %v10083_v61  ;;  %1212 = vmatprep.subr.bf16.mxu1 %v10085_v62 }
  0x8c   :  { %1172 = vmatpush1.bf16.msra.mxu0 %v10087_v63  ;;  %1213 = vmatpush1.bf16.msra.mxu1 %v10089_v1 }
  0x8d   :  { %1173 = vmatprep.subr.bf16.mxu0 %v10095_v2  ;;  %1214 = vmatprep.subr.bf16.mxu1 %v10097_v3 }
  0x90   :  { %1174 = vmatpush1.bf16.msra.mxu0 %v10099_v4  ;;  %1215 = vmatpush1.bf16.msra.mxu1 %v10101_v5 }
  0x91   :  { %1175 = vmatprep.subr.bf16.mxu0 %v10107_v6  ;;  %1216 = vmatprep.subr.bf16.mxu1 %v10109_v7 }
  0x94   :  { %1176 = vmatpush1.bf16.msra.mxu0 %v10111_v8  ;;  %1217 = vmatpush1.bf16.msra.mxu1 %v10113_v9 }
  0x95   :  { %1177 = vmatprep.subr.bf16.mxu0 %v10119_v10  ;;  %1218 = vmatprep.subr.bf16.mxu1 %v10121_v11 }
  0x98   :  { %1178 = vmatpush1.bf16.msra.mxu0 %v10123_v12  ;;  %1219 = vmatpush1.bf16.msra.mxu1 %v10125_v13 }
  0x99   :  { %1179 = vmatprep.subr.bf16.mxu0 %v10131_v14  ;;  %1220 = vmatprep.subr.bf16.mxu1 %v10133_v15 }
  0x9c   :  { %1180 = vmatpush1.bf16.msra.mxu0 %v10135_v16  ;;  %1221 = vmatpush1.bf16.msra.mxu1 %v10137_v17 }
  0x9d   :  { %1181 = vmatprep.subr.bf16.mxu0 %v10145_v19  ;;  %1222 = vmatprep.subr.bf16.mxu1 %v10149_v21 }
  0xa0   :  { %1182 = vmatpush1.bf16.msra.mxu0 %v10143_v18  ;;  %1223 = vmatpush1.bf16.msra.mxu1 %v10147_v20  ;;  %v224_v20 = vld [vmem:[%s11759_s3] sm:$0xf] }
  0xa1   :  { %1183 = vmatprep.subr.bf16.mxu0 %v10151_v22  ;;  %1224 = vmatprep.subr.bf16.mxu1 %v10154_v23 }
  0xa4   :  { %1184 = vmatpush1.bf16.msra.mxu0 %v10158_v24  ;;  %1225 = vmatpush1.bf16.msra.mxu1 %v10162_v25 }
  0xa5   :  { %1185 = vmatprep.subr.bf16.mxu0 %v10164_v26  ;;  %1226 = vmatprep.subr.bf16.mxu1 %v10167_v27 }
  0xa8   :  { %1186 = vmatpush1.bf16.msra.mxu0 %v10170_v28  ;;  %1227 = vmatpush1.bf16.msra.mxu1 %v10174_v29 }
  0xa9   :  { %1187 = vmatprep.subr.bf16.mxu0 %v10176_v30  ;;  %1228 = vmatprep.subr.bf16.mxu1 %v10179_v31 }
  0xac   :  { %1188 = vmatpush1.bf16.msra.mxu0 %v10182_v33  ;;  %1229 = vmatpush1.bf16.msra.mxu1 %v10186_v34  ;;  %v87_v34 = vlaneseq }
  0xad   :  { %1189 = vmatprep.subr.bf16.mxu0 %v10188_v35  ;;  %1230 = vmatprep.subr.bf16.mxu1 %v10191_v36  ;;  %v9775_v35 = vld [vmem:[#allocation7 + $0x4] ss:$16 sps:$4 sm:$0xff]   ;;  %v9776_v36 = vld [vmem:[#allocation7 + $0xc] ss:$16 sps:$4 sm:$0xff]  }
  0xb0   :  { %1190 = vmatpush1.bf16.msra.mxu0 %v10194_v37  ;;  %1231 = vmatpush1.bf16.msra.mxu1 %v10198_v38  ;;  %v88_v37 = vshrl.u32 %v87_v34, 7 }
  0xb1   :  { %1191 = vmatprep.subr.bf16.mxu0 %v10200_v39  ;;  %1232 = vmatprep.subr.bf16.mxu1 %v10203_v40  ;;  %v85_v39 = vld [vmem:[%s11759_s3] sm:$0xf] }
  0xb2   :  { %v10215_v33 = vsub.s32 0, %v88_v37  ;;  %v10217_v31 = vsub.s32 2, %v88_v37  ;;  %v10222_v38 = vsub.s32 1, %v88_v37  ;;  %v10224_v40 = vsub.s32 3, %v88_v37 }
  0xb4   :  { %1192 = vmatpush1.bf16.msra.mxu0 %v10206_v32  ;;  %1233 = vmatpush1.bf16.msra.mxu1 %v10210_v0  ;;  %11998 = vst [vmem:[#allocation36_spill] sm:$0xff] %v10215_v33  ;;  %11999 = vst [vmem:[#allocation37_spill] sm:$0xff] %v10217_v31  ;;  %v90_v0 = vrot.slane %v85_v39, %v10215_v33  ;;  %v102_v34 = vrot.slane %v85_v39, %v10224_v40 }
  0xb5   :  { %1502 = vmatprep.subr.bf16.mxu0 %v9775_v35  ;;  %1543 = vmatprep.subr.bf16.mxu1 %v9776_v36  ;;  %12000 = vst [vmem:[#allocation38_spill] sm:$0xff] %v10222_v38  ;;  %12001 = vst [vmem:[#allocation39_spill] sm:$0xff] %v10224_v40  ;;  %v98_v35 = vrot.slane %v85_v39, %v10217_v31  ;;  %v94_v36 = vrot.slane %v85_v39, %v10222_v38 }
  0xb6   :  { %v229_v39 = vrot.slane %v224_v20, %v10215_v33 }
 0x122   :  { %v165_v32 = vpop.f32.mrb[0].mxu0  ;;  %v206_v30 = vpop.f32.mrb[0].mxu1 }
 0x123   :  { %v166_v29 = vadd.f32 %v165_v32, %v90_v0  ;;  %v207_v28 = vadd.f32 %v206_v30, %v98_v35  ;;  %v167_v27 = vpop.f32.mrb[1].mxu0  ;;  %v208_v26 = vpop.f32.mrb[1].mxu1  ;;  %v237_v0 = vrot.slane %v224_v20, %v10217_v31  ;;  %v233_v30 = vrot.slane %v224_v20, %v10222_v38 }
 0x124   :  { %v168_v25 = vadd.f32 %v167_v27, %v94_v36  ;;  %v209_v24 = vadd.f32 %v208_v26, %v102_v34  ;;  %v169_v23 = vpop.f32.mrb[2].mxu0  ;;  %v210_v22 = vpop.f32.mrb[2].mxu1  ;;  %v241_v26 = vrot.slane %v224_v20, %v10224_v40  ;;  %v9911_v34 = vmov 1966171168  }
 0x125   :  { %213 = vst [vmem:[#allocation2] sm:$0xff] %v166_v29  ;;  %215 = vst [vmem:[#allocation2 + $0x10] sm:$0xff] %v207_v28  ;;  %v170_v18 = vpop.f32.mrb[3].mxu0  ;;  %v211_v21 = vpop.f32.mrb[3].mxu1  ;;  %v640_v31 = vunpack.c.l.s4 %v9911_v34 }
 0x126   :  { %214 = vst [vmem:[#allocation2 + $0x8] sm:$0xff] %v168_v25  ;;  %216 = vst [vmem:[#allocation2 + $0x18] sm:$0xff] %v209_v24 }
 0x127   :  { %v641_v38 = vunpack.c.0.s8 %v640_v31 }
 0x129   :  { %v10237_v20 = vsub.s32 %v641_v38, %v88_v37 }
 0x12a   :  { %v303_v23 = vpop.f32.mrb[4].mxu0  ;;  %v344_v22 = vpop.f32.mrb[4].mxu1 }
 0x12b   :  { %v304_v27 = vadd.f32 %v303_v23, %v229_v39  ;;  %v345_v32 = vadd.f32 %v344_v22, %v237_v0  ;;  %v305_v35 = vpop.f32.mrb[5].mxu0  ;;  %v346_v36 = vpop.f32.mrb[5].mxu1 }
 0x12c   :  { %v306_v29 = vadd.f32 %v305_v35, %v233_v30  ;;  %v347_v28 = vadd.f32 %v346_v36, %v241_v26  ;;  %v307_v18 = vpop.f32.mrb[6].mxu0  ;;  %v348_v21 = vpop.f32.mrb[6].mxu1 }
 0x12d   :  { %352 = vst [vmem:[#allocation2 + $0x20] sm:$0xff] %v304_v27  ;;  %354 = vst [vmem:[#allocation2 + $0x30] sm:$0xff] %v345_v32  ;;  %v308_v24 = vpop.f32.mrb[7].mxu0  ;;  %v349_v25 = vpop.f32.mrb[7].mxu1 }
 0x12e   :  { %353 = vst [vmem:[#allocation2 + $0x28] sm:$0xff] %v306_v29  ;;  %355 = vst [vmem:[#allocation2 + $0x38] sm:$0xff] %v347_v28  ;;  %v356_v38 = vld [vmem:[#allocation2] ss:$8 sm:$0xf] }
 0x135   :  { %v358_v21 = vld [vmem:[#allocation2 + $0x20] ss:$8 sm:$0xf] }
 0x14a   :  { %v585_v40 = vpop.f32.mrb[8].mxu0  ;;  %v626_v39 = vpop.f32.mrb[8].mxu1 }
 0x14b   :  { %v587_v0 = vpop.f32.mrb[9].mxu0  ;;  %v628_v23 = vpop.f32.mrb[9].mxu1 }
 0x14c   :  { %v637_v22 = vcombine.low %v585_v40, %v587_v0  ;;  %v638_v30 = vcombine.low %v626_v39, %v628_v23  ;;  %v589_v26 = vpop.f32.mrb[10].mxu0  ;;  %v630_v35 = vpop.f32.mrb[10].mxu1 }
 0x14d   :  { %v590_v36 = vpop.f32.mrb[11].mxu0  ;;  %v631_v27 = vpop.f32.mrb[11].mxu1 }
 0x14e   :  { %v645_v32 = vrot.slane %v637_v22, %v10237_v20  ;;  %v652_v29 = vrot.slane %v638_v30, %v10237_v20 }
 0x150   :  { %v653_v28 = vcombine.low %v645_v32, %v652_v29  ;;  %v654_v18 = vcombine.high %v645_v32, %v652_v29 }
 0x152   :  { %v661_v31 = vrot.slane %v653_v28, %v10237_v20  ;;  %v668_v37 = vrot.slane %v654_v18, %v10237_v20 }
 0x154   :  { %v671_v24 = vadd.f32 %v661_v31, %v356_v38  ;;  %v672_v25 = vadd.f32 %v668_v37, %v358_v21 }
 0x156   :  { %v7990_v40 = vmul.f32 -1.442695, %v671_v24  ;;  %v7991_v34 = vmul.f32 -1.442695, %v672_v25  ;;  %v687_v39 = vrot.slane %v671_v24, 1  ;;  %v688_v0 = vrot.slane %v672_v25, 1 }
 0x157   :  { %v709_v22 = vrot.slane %v671_v24, 3  ;;  %v710_v30 = vrot.slane %v672_v25, 3  ;;  %v703_v35 = vrot.slane %v671_v24, 2  ;;  %v704_v36 = vrot.slane %v672_v25, 2 }
 0x158   :  { %9391 = vpow2.f32 %v7990_v40  ;;  %v7992_v23 = vmul.f32 -1.442695, %v687_v39  ;;  %v7993_v26 = vmul.f32 -1.442695, %v688_v0 }
 0x159   :  { %9393 = vpow2.f32 %v7991_v34  ;;  %v7994_v27 = vmul.f32 -1.442695, %v709_v22  ;;  %v7995_v32 = vmul.f32 -1.442695, %v710_v30 }
 0x15a   :  { %9395 = vpow2.f32 %v7992_v23 }
 0x15b   :  { %9397 = vpow2.f32 %v7993_v26 }
 0x15c   :  { %9399 = vtanh.f32 %v703_v35 }
 0x15d   :  { %9401 = vtanh.f32 %v704_v36 }
 0x15e   :  { %9403 = vpow2.f32 %v7994_v27 }
 0x15f   :  { %9405 = vpow2.f32 %v7995_v32 }
 0x162   :  { %v9392_v29 = vpop.eup %9391 }
 0x163   :  { %v9394_v28 = vpop.eup %9393  ;;  %v679_v18 = vadd.f32 1.0, %v9392_v29 }
 0x164   :  { %v9396_v31 = vpop.eup %9395  ;;  %v680_v37 = vadd.f32 1.0, %v9394_v28 }
 0x165   :  { %v9398_v38 = vpop.eup %9397  ;;  %9407 = vrcp.f32 %v679_v18  ;;  %v697_v21 = vadd.f32 1.0, %v9396_v31 }
 0x166   :  { %9409 = vrcp.f32 %v680_v37  ;;  %v698_v40 = vadd.f32 1.0, %v9398_v38  ;;  %v9400_v24 = vpop.eup %9399 }
 0x167   :  { %9411 = vrcp.f32 %v697_v21  ;;  %v9402_v25 = vpop.eup %9401 }
 0x168   :  { %9413 = vrcp.f32 %v698_v40  ;;  %v9404_v34 = vpop.eup %9403 }
 0x169   :  { %v9406_v39 = vpop.eup %9405  ;;  %v719_v26 = vadd.f32 1.0, %v9404_v34 }
 0x16a   :  { %v720_v30 = vadd.f32 1.0, %v9406_v39 }
 0x16b   :  { %9415 = vrcp.f32 %v719_v26 }
 0x16c   :  { %9417 = vrcp.f32 %v720_v30 }
 0x16f   :  { %v9408_v0 = vpop.eup %9407 }
 0x170   :  { %v9410_v23 = vpop.eup %9409  ;;  %v727_v27 = vmul.f32 %v9408_v0, %v9400_v24 }
 0x171   :  { %v9412_v22 = vpop.eup %9411  ;;  %v728_v29 = vmul.f32 %v9410_v23, %v9402_v25 }
 0x172   :  { %v9414_v35 = vpop.eup %9413  ;;  %v725_v36 = vmul.f32 0.0, %v9412_v22 }
 0x173   :  { %v726_v32 = vmul.f32 0.0, %v9414_v35 }
 0x174   :  { %v10243_v28 = vadd.f32 %v727_v27, %v725_v36  ;;  %v9777_v27 = vld [vmem:[#allocation7] ss:$16 sps:$4 sm:$0xff]  }
 0x175   :  { %v10245_v18 = vadd.f32 %v728_v29, %v726_v32  ;;  %v9416_v31 = vpop.eup %9415  ;;  %v9778_v32 = vld [vmem:[#allocation7 + $0x8] ss:$16 sps:$4 sm:$0xff]   ;;  %v9779_v29 = vld [vmem:[#allocation7 + $0x24] ss:$16 sps:$4 sm:$0xff]  }
 0x176   :  { %9419 = vtanh.f32 %v10243_v28  ;;  %v9418_v37 = vpop.eup %9417 }
 0x177   :  { %9421 = vtanh.f32 %v10245_v18 }
 0x180   :  { %v9420_v38 = vpop.eup %9419 }
 0x181   :  { %v9422_v21 = vpop.eup %9421  ;;  %v733_v40 = vmul.f32 %v9420_v38, %v9416_v31  ;;  %v9780_v31 = vld [vmem:[#allocation7 + $0x2c] ss:$16 sps:$4 sm:$0xff]   ;;  %v9781_v38 = vld [vmem:[#allocation7 + $0x20] ss:$16 sps:$4 sm:$0xff]  }
 0x182   :  { %v734_v34 = vmul.f32 %v9422_v21, %v9418_v37  ;;  %v12002_v37 = vmov 0   ;;  %v9782_v21 = vld [vmem:[#allocation7 + $0x28] ss:$16 sps:$4 sm:$0xff]  }
 0x183   :  { %v1299_v24 = vpack.c.bf16 %v733_v40, %v733_v40 }
 0x184   :  { %v737_v39 = vcombine.low %v733_v40, %v734_v34  ;;  %v1300_v0 = vpack.c.bf16 %v734_v34, %v734_v34  ;;  %v9783_v40 = vld [vmem:[#allocation7 + $0x44] ss:$16 sps:$4 sm:$0xff]   ;;  %v9784_v34 = vld [vmem:[#allocation7 + $0x4c] ss:$16 sps:$4 sm:$0xff]  }
 0x185   :  { %v1335_v22 = vunpack.c.l.b16 %v1299_v24  ;;  %v9786_v24 = vld [vmem:[#allocation7 + $0x48] ss:$16 sps:$4 sm:$0xff]  }
 0x186   :  { %v744_v25 = vrot.slane %v737_v39, %v10237_v20  ;;  %v1336_v23 = vunpack.c.l.b16 %v1300_v0  ;;  %v9785_v39 = vld [vmem:[#allocation7 + $0x40] ss:$16 sps:$4 sm:$0xff]   ;;  %v9787_v0 = vld [vmem:[#allocation7 + $0x64] ss:$16 sps:$4 sm:$0xff]  }
 0x188   :  { %v751_v26 = vrot.slane %v744_v25, %v10237_v20  ;;  %v1337_v30 = vrot.slane %v1336_v23, 7  ;;  %v9788_v25 = vld [vmem:[#allocation7 + $0x6c] ss:$16 sps:$4 sm:$0xff]   ;;  %v9789_v23 = vld [vmem:[#allocation7 + $0x60] ss:$16 sps:$4 sm:$0xff]  }
 0x18a   :  { %v753_v35 = vpack.c.bf16 %v751_v26, %v751_v26  ;;  %v10252_v36 = vsel %vm1338_vm1, %v1337_v30, %v1335_v22  ;;  %v9790_v26 = vld [vmem:[#allocation7 + $0x68] ss:$16 sps:$4 sm:$0xff]   ;;  %v9791_v22 = vld [vmem:[#allocation7 + $0x84] ss:$16 sps:$4 sm:$0xff]   ;;  %v9792_v30 = vld [vmem:[#allocation7 + $0x8c] ss:$16 sps:$4 sm:$0xff]  }
 0x18c   :  { %1194 = vmatmul.mubr.bf16.vlgmr.msra.gmra.mrb[12].mxu0 %v753_v35  ;;  %1235 = vmatmul.mubr.bf16.vlgmr.msra.gmra.mrb[12].mxu1 %v753_v35  ;;  %v9793_v35 = vld [vmem:[#allocation7 + $0x80] ss:$16 sps:$4 sm:$0xff]  }
 0x18d   :  { %1503 = vmatpush1.bf16.msra.mxu0 %v9777_v27  ;;  %1544 = vmatpush1.bf16.msra.mxu1 %v9778_v32  ;;  %v9794_v27 = vld [vmem:[#allocation7 + $0x88] ss:$16 sps:$4 sm:$0xff]   ;;  %v9795_v32 = vld [vmem:[#allocation7 + $0xa4] ss:$16 sps:$4 sm:$0xff]  }
 0x18e   :  { %1504 = vmatprep.subr.bf16.mxu0 %v9779_v29  ;;  %1545 = vmatprep.subr.bf16.mxu1 %v9780_v31  ;;  %v9796_v29 = vld [vmem:[#allocation7 + $0xac] ss:$16 sps:$4 sm:$0xff]   ;;  %v9797_v31 = vld [vmem:[#allocation7 + $0xa0] ss:$16 sps:$4 sm:$0xff]  }
 0x18f   :  { %1534 = vmatprep.mubr.bf16.mxu0 %v12002_v37  ;;  %1575 = vmatprep.mubr.bf16.mxu1 %v12002_v37 }
 0x191   :  { %1505 = vmatpush1.bf16.msra.mxu0 %v9781_v38  ;;  %1546 = vmatpush1.bf16.msra.mxu1 %v9782_v21  ;;  %v9798_v38 = vld [vmem:[#allocation7 + $0xa8] ss:$16 sps:$4 sm:$0xff]   ;;  %v9799_v21 = vld [vmem:[#allocation7 + $0xc4] ss:$16 sps:$4 sm:$0xff]  }
 0x192   :  { %1506 = vmatprep.subr.bf16.mxu0 %v9783_v40  ;;  %1547 = vmatprep.subr.bf16.mxu1 %v9784_v34  ;;  %v9800_v40 = vld [vmem:[#allocation7 + $0xcc] ss:$16 sps:$4 sm:$0xff]   ;;  %v9801_v34 = vld [vmem:[#allocation7 + $0xc0] ss:$16 sps:$4 sm:$0xff]  }
 0x195   :  { %1507 = vmatpush1.bf16.msra.mxu0 %v9785_v39  ;;  %1548 = vmatpush1.bf16.msra.mxu1 %v9786_v24  ;;  %v9802_v39 = vld [vmem:[#allocation7 + $0xc8] ss:$16 sps:$4 sm:$0xff]   ;;  %v9803_v24 = vld [vmem:[#allocation7 + $0xe4] ss:$16 sps:$4 sm:$0xff]  }
 0x196   :  { %1508 = vmatprep.subr.bf16.mxu0 %v9787_v0  ;;  %1549 = vmatprep.subr.bf16.mxu1 %v9788_v25  ;;  %v9804_v0 = vld [vmem:[#allocation7 + $0xec] ss:$16 sps:$4 sm:$0xff]   ;;  %v9805_v25 = vld [vmem:[#allocation7 + $0xe0] ss:$16 sps:$4 sm:$0xff]  }
 0x199   :  { %1509 = vmatpush1.bf16.msra.mxu0 %v9789_v23  ;;  %1550 = vmatpush1.bf16.msra.mxu1 %v9790_v26  ;;  %v9806_v23 = vld [vmem:[#allocation7 + $0xe8] ss:$16 sps:$4 sm:$0xff]   ;;  %v1340_v26 = vpack.c.b16 %v10252_v36, %v10252_v36  ;;  %v12027_v36 = vld [vmem:[#allocation39_spill] sm:$0xff] }
 0x19a   :  { %1510 = vmatprep.subr.bf16.mxu0 %v9791_v22  ;;  %1551 = vmatprep.subr.bf16.mxu1 %v9792_v30  ;;  %v12028_v30 = vld [vmem:[#allocation37_spill] sm:$0xff] }
 0x19d   :  { %1511 = vmatpush1.bf16.msra.mxu0 %v9793_v35  ;;  %1552 = vmatpush1.bf16.msra.mxu1 %v9794_v27 }
 0x19e   :  { %1512 = vmatprep.subr.bf16.mxu0 %v9795_v32  ;;  %1553 = vmatprep.subr.bf16.mxu1 %v9796_v29 }
 0x1a1   :  { %1513 = vmatpush1.bf16.msra.mxu0 %v9797_v31  ;;  %1554 = vmatpush1.bf16.msra.mxu1 %v9798_v38 }
 0x1a2   :  { %1514 = vmatprep.subr.bf16.mxu0 %v9799_v21  ;;  %1555 = vmatprep.subr.bf16.mxu1 %v9800_v40 }
 0x1a5   :  { %1515 = vmatpush1.bf16.msra.mxu0 %v9801_v34  ;;  %1556 = vmatpush1.bf16.msra.mxu1 %v9802_v39 }
 0x1a6   :  { %1516 = vmatprep.subr.bf16.mxu0 %v9803_v24  ;;  %1557 = vmatprep.subr.bf16.mxu1 %v9804_v0 }
 0x1a9   :  { %1517 = vmatpush1.bf16.msra.mxu0 %v9805_v25  ;;  %1558 = vmatpush1.bf16.msra.mxu1 %v9806_v23 }
 0x1aa   :  { %2112 = vmatprep.subr.bf16.mxu0 %v10023_v41  ;;  %2153 = vmatprep.subr.bf16.mxu1 %v10025_v42  ;;  %v12003_v41 = vld [vmem:[#allocation15_spill] sm:$0xff]  ;;  %v12004_v42 = vld [vmem:[#allocation13_spill] sm:$0xff] }
 0x1ac   :  { %1535 = vmatmul.mubr.bf16.vlgmr.msra.gmra.mrb[16].mxu0 %v1340_v26  ;;  %1576 = vmatmul.mubr.bf16.vlgmr.msra.gmra.mrb[16].mxu1 %v1340_v26 }
 0x1ad   :  { %2113 = vmatpush1.bf16.msra.mxu0 %v10027_v43  ;;  %2154 = vmatpush1.bf16.msra.mxu1 %v10029_v44  ;;  %v12005_v43 = vld [vmem:[#allocation14_spill] sm:$0xff]  ;;  %v12006_v44 = vld [vmem:[#allocation16_spill] sm:$0xff] }
 0x1ae   :  { %2114 = vmatprep.subr.bf16.mxu0 %v10035_v45  ;;  %2155 = vmatprep.subr.bf16.mxu1 %v10037_v46  ;;  %v12007_v45 = vld [vmem:[#allocation17_spill] sm:$0xff]  ;;  %v12008_v46 = vld [vmem:[#allocation18_spill] sm:$0xff] }
 0x1b1   :  { %2115 = vmatpush1.bf16.msra.mxu0 %v10039_v47  ;;  %2156 = vmatpush1.bf16.msra.mxu1 %v10041_v48  ;;  %v12009_v47 = vld [vmem:[#allocation19_spill] sm:$0xff]  ;;  %v12010_v48 = vld [vmem:[#allocation20_spill] sm:$0xff] }
 0x1b2   :  { %2116 = vmatprep.subr.bf16.mxu0 %v10047_v49  ;;  %2157 = vmatprep.subr.bf16.mxu1 %v10049_v50  ;;  %v12011_v49 = vld [vmem:[#allocation21_spill] sm:$0xff]  ;;  %v12012_v50 = vld [vmem:[#allocation22_spill] sm:$0xff] }
 0x1b5   :  { %2117 = vmatpush1.bf16.msra.mxu0 %v10051_v51  ;;  %2158 = vmatpush1.bf16.msra.mxu1 %v10053_v52  ;;  %v12013_v51 = vld [vmem:[#allocation23_spill] sm:$0xff]  ;;  %v12014_v52 = vld [vmem:[#allocation24_spill] sm:$0xff] }
 0x1b6   :  { %2118 = vmatprep.subr.bf16.mxu0 %v10059_v53  ;;  %2159 = vmatprep.subr.bf16.mxu1 %v10061_v54  ;;  %v12015_v53 = vld [vmem:[#allocation25_spill] sm:$0xff]  ;;  %v12016_v54 = vld [vmem:[#allocation26_spill] sm:$0xff] }
 0x1b9   :  { %2119 = vmatpush1.bf16.msra.mxu0 %v10063_v55  ;;  %2160 = vmatpush1.bf16.msra.mxu1 %v10065_v56  ;;  %v12017_v55 = vld [vmem:[#allocation27_spill] sm:$0xff]  ;;  %v12018_v56 = vld [vmem:[#allocation28_spill] sm:$0xff] }
 0x1ba   :  { %2120 = vmatprep.subr.bf16.mxu0 %v10071_v57  ;;  %2161 = vmatprep.subr.bf16.mxu1 %v10073_v58  ;;  %v12019_v57 = vld [vmem:[#allocation29_spill] sm:$0xff]  ;;  %v12020_v58 = vld [vmem:[#allocation30_spill] sm:$0xff] }
 0x1bd   :  { %2121 = vmatpush1.bf16.msra.mxu0 %v10075_v59  ;;  %2162 = vmatpush1.bf16.msra.mxu1 %v10077_v60  ;;  %v12021_v59 = vld [vmem:[#allocation31_spill] sm:$0xff]  ;;  %v12022_v60 = vld [vmem:[#allocation32_spill] sm:$0xff] }
 0x1be   :  { %2122 = vmatprep.subr.bf16.mxu0 %v10083_v61  ;;  %2163 = vmatprep.subr.bf16.mxu1 %v10085_v62  ;;  %v12023_v61 = vld [vmem:[#allocation33_spill] sm:$0xff]  ;;  %v12024_v62 = vld [vmem:[#allocation34_spill] sm:$0xff] }
 0x1c1   :  { %2123 = vmatpush1.bf16.msra.mxu0 %v10087_v63  ;;  %2164 = vmatpush1.bf16.msra.mxu1 %v10089_v1  ;;  %v12025_v63 = vld [vmem:[#allocation35_spill] sm:$0xff] }
 0x1c2   :  { %2124 = vmatprep.subr.bf16.mxu0 %v10095_v2  ;;  %2165 = vmatprep.subr.bf16.mxu1 %v10097_v3  ;;  %v10322_v1 = vld [vmem:[#allocation7 + $0x4] ss:$16 sps:$4 sm:$0xff]   ;;  %v10324_v2 = vld [vmem:[#allocation7 + $0xc] ss:$16 sps:$4 sm:$0xff]   ;;  %v819_v3 = vld [vmem:[%s11761_s5] sm:$0xf] }
 0x1c3   :  { %v836_v22 = vrot.slane %v819_v3, %v12027_v36  ;;  %v832_v35 = vrot.slane %v819_v3, %v12028_v30 }
 0x1c5   :  { %2125 = vmatpush1.bf16.msra.mxu0 %v10099_v4  ;;  %2166 = vmatpush1.bf16.msra.mxu1 %v10101_v5  ;;  %v824_v4 = vrot.slane %v819_v3, %v10215_v33  ;;  %v12026_v5 = vld [vmem:[#allocation38_spill] sm:$0xff] }
 0x1c6   :  { %2126 = vmatprep.subr.bf16.mxu0 %v10107_v6  ;;  %2167 = vmatprep.subr.bf16.mxu1 %v10109_v7  ;;  %v828_v6 = vrot.slane %v819_v3, %v12026_v5 }
 0x1c9   :  { %2127 = vmatpush1.bf16.msra.mxu0 %v10111_v8  ;;  %2168 = vmatpush1.bf16.msra.mxu1 %v10113_v9 }
 0x1ca   :  { %2128 = vmatprep.subr.bf16.mxu0 %v10119_v10  ;;  %2169 = vmatprep.subr.bf16.mxu1 %v10121_v11 }
 0x1cd   :  { %2129 = vmatpush1.bf16.msra.mxu0 %v10123_v12  ;;  %2170 = vmatpush1.bf16.msra.mxu1 %v10125_v13 }
 0x1ce   :  { %2130 = vmatprep.subr.bf16.mxu0 %v10131_v14  ;;  %2171 = vmatprep.subr.bf16.mxu1 %v10133_v15 }
 0x1d1   :  { %2131 = vmatpush1.bf16.msra.mxu0 %v10135_v16  ;;  %2172 = vmatpush1.bf16.msra.mxu1 %v10137_v17 }
 0x1d2   :  { %2132 = vmatprep.subr.bf16.mxu0 %v10145_v19  ;;  %2173 = vmatprep.subr.bf16.mxu1 %v12003_v41 }
 0x1d5   :  { %2133 = vmatpush1.bf16.msra.mxu0 %v12004_v42  ;;  %2174 = vmatpush1.bf16.msra.mxu1 %v12005_v43 }
 0x1d6   :  { %2134 = vmatprep.subr.bf16.mxu0 %v12006_v44  ;;  %2175 = vmatprep.subr.bf16.mxu1 %v12007_v45 }
 0x1d9   :  { %2135 = vmatpush1.bf16.msra.mxu0 %v12008_v46  ;;  %2176 = vmatpush1.bf16.msra.mxu1 %v12009_v47 }
 0x1da   :  { %2136 = vmatprep.subr.bf16.mxu0 %v12010_v48  ;;  %2177 = vmatprep.subr.bf16.mxu1 %v12011_v49 }
 0x1dd   :  { %2137 = vmatpush1.bf16.msra.mxu0 %v12012_v50  ;;  %2178 = vmatpush1.bf16.msra.mxu1 %v12013_v51 }
 0x1de   :  { %2138 = vmatprep.subr.bf16.mxu0 %v12014_v52  ;;  %2179 = vmatprep.subr.bf16.mxu1 %v12015_v53 }
 0x1e1   :  { %2139 = vmatpush1.bf16.msra.mxu0 %v12016_v54  ;;  %2180 = vmatpush1.bf16.msra.mxu1 %v12017_v55 }
 0x1e2   :  { %2140 = vmatprep.subr.bf16.mxu0 %v12018_v56  ;;  %2181 = vmatprep.subr.bf16.mxu1 %v12019_v57 }
 0x1e5   :  { %2141 = vmatpush1.bf16.msra.mxu0 %v12020_v58  ;;  %2182 = vmatpush1.bf16.msra.mxu1 %v12021_v59  ;;  %v1296_v58 = vld [vmem:[#allocation2 + $0x1] ss:$8 sm:$0xf] }
 0x1e6   :  { %2142 = vmatprep.subr.bf16.mxu0 %v12022_v60  ;;  %2183 = vmatprep.subr.bf16.mxu1 %v12023_v61  ;;  %v1298_v59 = vld [vmem:[#allocation2 + $0x21] ss:$8 sm:$0xf] }
 0x1e9   :  { %2143 = vmatpush1.bf16.msra.mxu0 %v12024_v62  ;;  %2184 = vmatpush1.bf16.msra.mxu1 %v12025_v63 }
 0x1ea   :  { %2451 = vmatprep.subr.bf16.mxu0 %v10322_v1  ;;  %2492 = vmatprep.subr.bf16.mxu1 %v10324_v2 }
 0x25f   :  { %v1195_v7 = vpop.f32.mrb[12].mxu0  ;;  %v1236_v8 = vpop.f32.mrb[12].mxu1 }
 0x260   :  { %v1196_v9 = vadd.f32 %v1195_v7, %v824_v4  ;;  %v1197_v10 = vpop.f32.mrb[13].mxu0  ;;  %v1238_v11 = vpop.f32.mrb[13].mxu1  ;;  %v1237_v32 = vadd.f32 %v1236_v8, %v832_v35 }
 0x261   :  { %v1198_v12 = vadd.f32 %v1197_v10, %v828_v6  ;;  %v1199_v13 = vpop.f32.mrb[14].mxu0  ;;  %v1240_v14 = vpop.f32.mrb[14].mxu1  ;;  %v1239_v27 = vadd.f32 %v1238_v11, %v836_v22 }
 0x262   :  { %v8060_v15 = vmul.f32 -1.442695, %v1196_v9  ;;  %v1200_v16 = vpop.f32.mrb[15].mxu0  ;;  %v1241_v17 = vpop.f32.mrb[15].mxu1 }
 0x263   :  { %v8061_v19 = vmul.f32 -1.442695, %v1198_v12  ;;  %v8062_v29 = vmul.f32 -1.442695, %v1239_v27 }
 0x264   :  { %9423 = vpow2.f32 %v8060_v15 }
 0x265   :  { %9425 = vpow2.f32 %v8061_v19 }
 0x266   :  { %9427 = vtanh.f32 %v1237_v32 }
 0x267   :  { %9429 = vpow2.f32 %v8062_v29 }
 0x26e   :  { %v9424_v31 = vpop.eup %9423 }
 0x26f   :  { %v9426_v38 = vpop.eup %9425  ;;  %v1246_v21 = vadd.f32 1.0, %v9424_v31 }
 0x270   :  { %v1252_v40 = vadd.f32 1.0, %v9426_v38  ;;  %v9428_v34 = vpop.eup %9427 }
 0x271   :  { %9431 = vrcp.f32 %v1246_v21  ;;  %v9430_v39 = vpop.eup %9429 }
 0x272   :  { %9433 = vrcp.f32 %v1252_v40  ;;  %v1259_v26 = vadd.f32 1.0, %v9430_v39 }
 0x27b   :  { %v9432_v24 = vpop.eup %9431 }
 0x27c   :  { %v9434_v0 = vpop.eup %9433  ;;  %v1263_v25 = vmul.f32 %v9432_v24, %v9428_v34 }
 0x27d   :  { %v1262_v23 = vmul.f32 0.0, %v9434_v0 }
 0x27f   :  { %v10335_v41 = vadd.f32 %v1263_v25, %v1262_v23  ;;  %v1536_v42 = vpop.f32.mrb[16].mxu0  ;;  %v1577_v43 = vpop.f32.mrb[16].mxu1 }
 0x280   :  { %v1538_v44 = vpop.f32.mrb[17].mxu0  ;;  %v1579_v45 = vpop.f32.mrb[17].mxu1 }
 0x281   :  { %9435 = vtanh.f32 %v10335_v41  ;;  %v1588_v46 = vcombine.low %v1536_v42, %v1538_v44  ;;  %v1589_v47 = vcombine.low %v1577_v43, %v1579_v45  ;;  %v1540_v48 = vpop.f32.mrb[18].mxu0  ;;  %v1581_v49 = vpop.f32.mrb[18].mxu1 }
 0x282   :  { %9437 = vrcp.f32 %v1259_v26  ;;  %v1541_v50 = vpop.f32.mrb[19].mxu0  ;;  %v1582_v51 = vpop.f32.mrb[19].mxu1 }
 0x283   :  { %v1596_v52 = vrot.slane %v1588_v46, %v10237_v20  ;;  %v1603_v53 = vrot.slane %v1589_v47, %v10237_v20 }
 0x285   :  { %v1604_v54 = vcombine.low %v1596_v52, %v1603_v53  ;;  %v1605_v55 = vcombine.high %v1596_v52, %v1603_v53 }
 0x287   :  { %v1612_v56 = vrot.slane %v1604_v54, %v10237_v20  ;;  %v1619_v57 = vrot.slane %v1605_v55, %v10237_v20 }
 0x289   :  { %v1622_v60 = vadd.f32 %v1612_v56, %v1296_v58  ;;  %v1623_v61 = vadd.f32 %v1619_v57, %v1298_v59 }
 0x28b   :  { %v9436_v62 = vpop.eup %9435  ;;  %v8095_v63 = vmul.f32 -1.442695, %v1622_v60  ;;  %v8096_v3 = vmul.f32 -1.442695, %v1623_v61  ;;  %v1638_v4 = vrot.slane %v1622_v60, 1  ;;  %v1639_v6 = vrot.slane %v1623_v61, 1 }
 0x28c   :  { %v9438_v7 = vpop.eup %9437  ;;  %v1660_v13 = vrot.slane %v1622_v60, 3  ;;  %v1661_v14 = vrot.slane %v1623_v61, 3  ;;  %v1654_v17 = vrot.slane %v1622_v60, 2  ;;  %v1655_v19 = vrot.slane %v1623_v61, 2 }
 0x28d   :  { %9439 = vpow2.f32 %v8095_v63  ;;  %v8097_v8 = vmul.f32 -1.442695, %v1638_v4  ;;  %v8098_v9 = vmul.f32 -1.442695, %v1639_v6  ;;  %v1266_v10 = vmul.f32 %v9438_v7, %v9436_v62  ;;  %v10363_v4 = vld [vmem:[#allocation7] ss:$16 sps:$4 sm:$0xff]  }
 0x28e   :  { %9441 = vpow2.f32 %v8096_v3  ;;  %v8099_v35 = vmul.f32 -1.442695, %v1660_v13  ;;  %v8100_v27 = vmul.f32 -1.442695, %v1661_v14  ;;  %v10365_v6 = vld [vmem:[#allocation7 + $0x8] ss:$16 sps:$4 sm:$0xff]  }
 0x28f   :  { %9443 = vpow2.f32 %v8097_v8  ;;  %v1274_v11 = vrot.slane %v1266_v10, %v10237_v20  ;;  %v1705_v12 = vpack.c.bf16 %v1266_v10, %v1266_v10  ;;  %v10367_v8 = vld [vmem:[#allocation7 + $0x24] ss:$16 sps:$4 sm:$0xff]   ;;  %v10382_v14 = vld [vmem:[#allocation7 + $0x4c] ss:$16 sps:$4 sm:$0xff]  }
 0x290   :  { %9445 = vpow2.f32 %v8098_v9  ;;  %v10369_v9 = vld [vmem:[#allocation7 + $0x2c] ss:$16 sps:$4 sm:$0xff]   ;;  %v10380_v13 = vld [vmem:[#allocation7 + $0x44] ss:$16 sps:$4 sm:$0xff]  }
 0x291   :  { %v1275_v15 = vcombine.high %v1274_v11, %v1274_v11  ;;  %v1282_v16 = vrot.slane %v1274_v11, %v10237_v20  ;;  %2144 = vmatprep.mubr.bf16.mxu0 %v1705_v12  ;;  %2185 = vmatprep.mubr.bf16.mxu1 %v1705_v12  ;;  %9447 = vtanh.f32 %v1654_v17  ;;  %v10374_v11 = vld [vmem:[#allocation7 + $0x20] ss:$16 sps:$4 sm:$0xff]   ;;  %v10376_v12 = vld [vmem:[#allocation7 + $0x28] ss:$16 sps:$4 sm:$0xff]   ;;  %v10394_v17 = vld [vmem:[#allocation7 + $0x64] ss:$16 sps:$4 sm:$0xff]  }
 0x292   :  { %9449 = vtanh.f32 %v1655_v19  ;;  %v10396_v19 = vld [vmem:[#allocation7 + $0x6c] ss:$16 sps:$4 sm:$0xff]  }
 0x293   :  { %v1289_v22 = vrot.slane %v1275_v15, %v10237_v20  ;;  %1293 = vst.msk [vmem:[%s11762_s6] sm:$0x1] %vm1292_vm2, %v1282_v16  ;;  %9451 = vpow2.f32 %v8099_v35  ;;  %v10388_v15 = vld [vmem:[#allocation7 + $0x40] ss:$16 sps:$4 sm:$0xff]   ;;  %v10390_v16 = vld [vmem:[#allocation7 + $0x48] ss:$16 sps:$4 sm:$0xff]  }
 0x294   :  { %9453 = vpow2.f32 %v8100_v27  ;;  %v10402_v35 = vld [vmem:[#allocation7 + $0x68] ss:$16 sps:$4 sm:$0xff]   ;;  %v10406_v27 = vld [vmem:[#allocation7 + $0x84] ss:$16 sps:$4 sm:$0xff]  }
 0x295   :  { %1294 = vst.msk [vmem:[%s11762_s6 + $0x8] sm:$0x1] %vm1292_vm2, %v1289_v22  ;;  %v10400_v22 = vld [vmem:[#allocation7 + $0x60] ss:$16 sps:$4 sm:$0xff]  }
 0x297   :  { %v9440_v32 = vpop.eup %9439 }
 0x298   :  { %v9442_v29 = vpop.eup %9441  ;;  %v1630_v31 = vadd.f32 1.0, %v9440_v32  ;;  %v10408_v32 = vld [vmem:[#allocation7 + $0x8c] ss:$16 sps:$4 sm:$0xff]  }
 0x299   :  { %v9444_v38 = vpop.eup %9443  ;;  %v1631_v21 = vadd.f32 1.0, %v9442_v29  ;;  %v10412_v29 = vld [vmem:[#allocation7 + $0x80] ss:$16 sps:$4 sm:$0xff]  }
 0x29a   :  { %v9446_v40 = vpop.eup %9445  ;;  %9455 = vrcp.f32 %v1630_v31  ;;  %v1648_v34 = vadd.f32 1.0, %v9444_v38  ;;  %v10414_v31 = vld [vmem:[#allocation7 + $0x88] ss:$16 sps:$4 sm:$0xff]   ;;  %v10418_v38 = vld [vmem:[#allocation7 + $0xa4] ss:$16 sps:$4 sm:$0xff]  }
 0x29b   :  { %9457 = vrcp.f32 %v1631_v21  ;;  %v1649_v39 = vadd.f32 1.0, %v9446_v40  ;;  %v9448_v24 = vpop.eup %9447  ;;  %v10420_v21 = vld [vmem:[#allocation7 + $0xac] ss:$16 sps:$4 sm:$0xff]   ;;  %v10424_v40 = vld [vmem:[#allocation7 + $0xa0] ss:$16 sps:$4 sm:$0xff]  }
 0x29c   :  { %9459 = vrcp.f32 %v1648_v34  ;;  %v9450_v0 = vpop.eup %9449  ;;  %v10426_v34 = vld [vmem:[#allocation7 + $0xa8] ss:$16 sps:$4 sm:$0xff]  }
 0x29d   :  { %9461 = vrcp.f32 %v1649_v39  ;;  %v9452_v25 = vpop.eup %9451  ;;  %v10430_v39 = vld [vmem:[#allocation7 + $0xc4] ss:$16 sps:$4 sm:$0xff]  }
 0x29e   :  { %v9454_v23 = vpop.eup %9453  ;;  %v1670_v43 = vadd.f32 1.0, %v9452_v25  ;;  %v10438_v25 = vld [vmem:[#allocation7 + $0xc8] ss:$16 sps:$4 sm:$0xff]  }
 0x29f   :  { %v1671_v45 = vadd.f32 1.0, %v9454_v23  ;;  %v10442_v23 = vld [vmem:[#allocation7 + $0xe4] ss:$16 sps:$4 sm:$0xff]  }
 0x2a0   :  { %9463 = vrcp.f32 %v1670_v43  ;;  %v10450_v43 = vld [vmem:[#allocation7 + $0xe8] ss:$16 sps:$4 sm:$0xff]  }
 0x2a1   :  { %9465 = vrcp.f32 %v1671_v45  ;;  %v10456_v45 = vld [vmem:[#allocation8] ss:$16 sps:$4 sm:$0xff]  }
 0x2a4   :  { %v9456_v26 = vpop.eup %9455 }
 0x2a5   :  { %v9458_v42 = vpop.eup %9457  ;;  %v1678_v47 = vmul.f32 %v9456_v26, %v9448_v24  ;;  %v10432_v24 = vld [vmem:[#allocation7 + $0xcc] ss:$16 sps:$4 sm:$0xff]  }
 0x2a6   :  { %v9460_v44 = vpop.eup %9459  ;;  %v1679_v49 = vmul.f32 %v9458_v42, %v9450_v0  ;;  %v10436_v0 = vld [vmem:[#allocation7 + $0xc0] ss:$16 sps:$4 sm:$0xff]   ;;  %v10444_v26 = vld [vmem:[#allocation7 + $0xec] ss:$16 sps:$4 sm:$0xff]  }
 0x2a7   :  { %v9462_v46 = vpop.eup %9461  ;;  %v1676_v48 = vmul.f32 %v9460_v44, %v10243_v28  ;;  %v10448_v42 = vld [vmem:[#allocation7 + $0xe0] ss:$16 sps:$4 sm:$0xff]  }
 0x2a8   :  { %v1677_v50 = vmul.f32 %v9462_v46, %v10245_v18  ;;  %v10458_v46 = vld [vmem:[#allocation8 + $0x4] ss:$16 sps:$4 sm:$0xff]  }
 0x2a9   :  { %v10355_v51 = vadd.f32 %v1678_v47, %v1676_v48  ;;  %v10460_v47 = vld [vmem:[#allocation8 + $0x8] ss:$16 sps:$4 sm:$0xff]   ;;  %v10462_v48 = vld [vmem:[#allocation8 + $0xc] ss:$16 sps:$4 sm:$0xff]  }
 0x2aa   :  { %v10357_v52 = vadd.f32 %v1679_v49, %v1677_v50  ;;  %v9464_v53 = vpop.eup %9463  ;;  %v10468_v49 = vld [vmem:[#allocation8 + $0x24] ss:$16 sps:$4 sm:$0xff]   ;;  %v10470_v50 = vld [vmem:[#allocation8 + $0x2c] ss:$16 sps:$4 sm:$0xff]  }
 0x2ab   :  { %9467 = vtanh.f32 %v10355_v51  ;;  %v9466_v54 = vpop.eup %9465 }
 0x2ac   :  { %9469 = vtanh.f32 %v10357_v52 }
 0x2b5   :  { %v9468_v55 = vpop.eup %9467 }
 0x2b6   :  { %v9470_v56 = vpop.eup %9469  ;;  %v1684_v57 = vmul.f32 %v9468_v55, %v9464_v53  ;;  %v10472_v53 = vld [vmem:[#allocation8 + $0x20] ss:$16 sps:$4 sm:$0xff]   ;;  %v10480_v55 = vld [vmem:[#allocation8 + $0x44] ss:$16 sps:$4 sm:$0xff]  }
 0x2b7   :  { %v1685_v58 = vmul.f32 %v9470_v56, %v9466_v54  ;;  %12029 = vst [vmem:[#allocation15_spill] sm:$0xff] %v10472_v53  ;;  %v10474_v54 = vld [vmem:[#allocation8 + $0x28] ss:$16 sps:$4 sm:$0xff]   ;;  %12031 = vst [vmem:[#allocation14_spill] sm:$0xff] %v10480_v55  ;;  %v10482_v56 = vld [vmem:[#allocation8 + $0x4c] ss:$16 sps:$4 sm:$0xff]  }
 0x2b8   :  { %v2249_v59 = vpack.c.bf16 %v1684_v57, %v1684_v57  ;;  %12030 = vst [vmem:[#allocation13_spill] sm:$0xff] %v10474_v54  ;;  %12032 = vst [vmem:[#allocation16_spill] sm:$0xff] %v10482_v56 }
 0x2b9   :  { %v1688_v28 = vcombine.low %v1684_v57, %v1685_v58  ;;  %v2250_v60 = vpack.c.bf16 %v1685_v58, %v1685_v58  ;;  %v10484_v57 = vld [vmem:[#allocation8 + $0x40] ss:$16 sps:$4 sm:$0xff]   ;;  %v10486_v58 = vld [vmem:[#allocation8 + $0x48] ss:$16 sps:$4 sm:$0xff]  }
 0x2ba   :  { %v2285_v63 = vunpack.c.l.b16 %v2249_v59  ;;  %12033 = vst [vmem:[#allocation17_spill] sm:$0xff] %v10484_v57  ;;  %12034 = vst [vmem:[#allocation18_spill] sm:$0xff] %v10486_v58  ;;  %v10494_v59 = vld [vmem:[#allocation8 + $0x6c] ss:$16 sps:$4 sm:$0xff]  }
 0x2bb   :  { %v1695_v18 = vrot.slane %v1688_v28, %v10237_v20  ;;  %v2286_v61 = vunpack.c.l.b16 %v2250_v60  ;;  %v10492_v28 = vld [vmem:[#allocation8 + $0x64] ss:$16 sps:$4 sm:$0xff]   ;;  %12036 = vst [vmem:[#allocation20_spill] sm:$0xff] %v10494_v59  ;;  %v10496_v60 = vld [vmem:[#allocation8 + $0x60] ss:$16 sps:$4 sm:$0xff]  }
 0x2bc   :  { %12035 = vst [vmem:[#allocation19_spill] sm:$0xff] %v10492_v28  ;;  %12037 = vst [vmem:[#allocation21_spill] sm:$0xff] %v10496_v60 }
 0x2bd   :  { %v1702_v62 = vrot.slane %v1695_v18, %v10237_v20  ;;  %v2287_v3 = vrot.slane %v2286_v61, 7  ;;  %v10498_v18 = vld [vmem:[#allocation8 + $0x68] ss:$16 sps:$4 sm:$0xff]   ;;  %v10504_v61 = vld [vmem:[#allocation8 + $0x84] ss:$16 sps:$4 sm:$0xff]  }
 0x2be   :  { %12038 = vst [vmem:[#allocation22_spill] sm:$0xff] %v10498_v18  ;;  %12039 = vst [vmem:[#allocation23_spill] sm:$0xff] %v10504_v61 }
 0x2bf   :  { %v1704_v7 = vpack.c.bf16 %v1702_v62, %v1702_v62  ;;  %v2288_v10 = vsel %vm1338_vm1, %v2287_v3, %v2285_v63  ;;  %v10506_v62 = vld [vmem:[#allocation8 + $0x8c] ss:$16 sps:$4 sm:$0xff]   ;;  %v10508_v63 = vld [vmem:[#allocation8 + $0x80] ss:$16 sps:$4 sm:$0xff]   ;;  %v10510_v3 = vld [vmem:[#allocation8 + $0x88] ss:$16 sps:$4 sm:$0xff]  }
 0x2c0   :  { %v2289_v44 = vpack.c.b16 %v2288_v10, %v2288_v10  ;;  %12040 = vst [vmem:[#allocation24_spill] sm:$0xff] %v10506_v62  ;;  %12041 = vst [vmem:[#allocation25_spill] sm:$0xff] %v10508_v63  ;;  %v10518_v10 = vld [vmem:[#allocation8 + $0xac] ss:$16 sps:$4 sm:$0xff]  }
 0x2c1   :  { %2145 = vmatmul.mubr.bf16.vlgmr.msra.gmra.mrb[20].mxu0 %v1704_v7  ;;  %2186 = vmatmul.mubr.bf16.vlgmr.msra.gmra.mrb[20].mxu1 %v1704_v7  ;;  %12042 = vst [vmem:[#allocation26_spill] sm:$0xff] %v10510_v3  ;;  %v10516_v7 = vld [vmem:[#allocation8 + $0xa4] ss:$16 sps:$4 sm:$0xff]   ;;  %12044 = vst [vmem:[#allocation28_spill] sm:$0xff] %v10518_v10 }
 0x2c2   :  { %2452 = vmatpush1.bf16.msra.mxu0 %v10363_v4  ;;  %2493 = vmatpush1.bf16.msra.mxu1 %v10365_v6  ;;  %12043 = vst [vmem:[#allocation27_spill] sm:$0xff] %v10516_v7 }
 0x2c3   :  { %2453 = vmatprep.subr.bf16.mxu0 %v10367_v8  ;;  %2494 = vmatprep.subr.bf16.mxu1 %v10369_v9 }
 0x2c4   :  { %2483 = vmatprep.mubr.bf16.mxu0 %v12002_v37  ;;  %2524 = vmatprep.mubr.bf16.mxu1 %v12002_v37 }
 0x2c6   :  { %2454 = vmatpush1.bf16.msra.mxu0 %v10374_v11  ;;  %2495 = vmatpush1.bf16.msra.mxu1 %v10376_v12 }
 0x2c7   :  { %2455 = vmatprep.subr.bf16.mxu0 %v10380_v13  ;;  %2496 = vmatprep.subr.bf16.mxu1 %v10382_v14 }
 0x2ca   :  { %2456 = vmatpush1.bf16.msra.mxu0 %v10388_v15  ;;  %2497 = vmatpush1.bf16.msra.mxu1 %v10390_v16 }
 0x2cb   :  { %2457 = vmatprep.subr.bf16.mxu0 %v10394_v17  ;;  %2498 = vmatprep.subr.bf16.mxu1 %v10396_v19 }
 0x2ce   :  { %2458 = vmatpush1.bf16.msra.mxu0 %v10400_v22  ;;  %2499 = vmatpush1.bf16.msra.mxu1 %v10402_v35 }
 0x2cf   :  { %2459 = vmatprep.subr.bf16.mxu0 %v10406_v27  ;;  %2500 = vmatprep.subr.bf16.mxu1 %v10408_v32 }
 0x2d2   :  { %2460 = vmatpush1.bf16.msra.mxu0 %v10412_v29  ;;  %2501 = vmatpush1.bf16.msra.mxu1 %v10414_v31 }
 0x2d3   :  { %2461 = vmatprep.subr.bf16.mxu0 %v10418_v38  ;;  %2502 = vmatprep.subr.bf16.mxu1 %v10420_v21 }
 0x2d6   :  { %2462 = vmatpush1.bf16.msra.mxu0 %v10424_v40  ;;  %2503 = vmatpush1.bf16.msra.mxu1 %v10426_v34 }
 0x2d7   :  { %2463 = vmatprep.subr.bf16.mxu0 %v10430_v39  ;;  %2504 = vmatprep.subr.bf16.mxu1 %v10432_v24 }
 0x2da   :  { %2464 = vmatpush1.bf16.msra.mxu0 %v10436_v0  ;;  %2505 = vmatpush1.bf16.msra.mxu1 %v10438_v25 }
 0x2db   :  { %2465 = vmatprep.subr.bf16.mxu0 %v10442_v23  ;;  %2506 = vmatprep.subr.bf16.mxu1 %v10444_v26 }
 0x2de   :  { %2466 = vmatpush1.bf16.msra.mxu0 %v10448_v42  ;;  %2507 = vmatpush1.bf16.msra.mxu1 %v10450_v43 }
 0x2df   :  { %3061 = vmatprep.subr.bf16.mxu0 %v10458_v46  ;;  %3102 = vmatprep.subr.bf16.mxu1 %v10462_v48 }
 0x2e1   :  { %2484 = vmatmul.mubr.bf16.vlgmr.msra.gmra.mrb[24].mxu0 %v2289_v44  ;;  %2525 = vmatmul.mubr.bf16.vlgmr.msra.gmra.mrb[24].mxu1 %v2289_v44  ;;  %v10520_v44 = vld [vmem:[#allocation8 + $0xa0] ss:$16 sps:$4 sm:$0xff]  }
 0x2e2   :  { %3062 = vmatpush1.bf16.msra.mxu0 %v10456_v45  ;;  %3103 = vmatpush1.bf16.msra.mxu1 %v10460_v47  ;;  %12045 = vst [vmem:[#allocation29_spill] sm:$0xff] %v10520_v44 }
 0x2e3   :  { %3063 = vmatprep.subr.bf16.mxu0 %v10468_v49  ;;  %3104 = vmatprep.subr.bf16.mxu1 %v10470_v50 }
 0x2e6   :  { %3064 = vmatpush1.bf16.msra.mxu0 %v10472_v53  ;;  %3105 = vmatpush1.bf16.msra.mxu1 %v10474_v54 }
 0x2e7   :  { %3065 = vmatprep.subr.bf16.mxu0 %v10480_v55  ;;  %3106 = vmatprep.subr.bf16.mxu1 %v10482_v56 }
 0x2ea   :  { %3066 = vmatpush1.bf16.msra.mxu0 %v10484_v57  ;;  %3107 = vmatpush1.bf16.msra.mxu1 %v10486_v58 }
 0x2eb   :  { %3067 = vmatprep.subr.bf16.mxu0 %v10492_v28  ;;  %3108 = vmatprep.subr.bf16.mxu1 %v10494_v59  ;;  %v10575_v59 = vld [vmem:[#allocation8 + $0x14c] ss:$16 sps:$4 sm:$0xff]  }
 0x2ec   :  { %12064 = vst [vmem:[#allocation50_spill] sm:$0xff] %v10575_v59 }
 0x2ee   :  { %3068 = vmatpush1.bf16.msra.mxu0 %v10496_v60  ;;  %3109 = vmatpush1.bf16.msra.mxu1 %v10498_v18  ;;  %v10522_v18 = vld [vmem:[#allocation8 + $0xa8] ss:$16 sps:$4 sm:$0xff]   ;;  %v10572_v60 = vld [vmem:[#allocation8 + $0x144] ss:$16 sps:$4 sm:$0xff]  }
 0x2ef   :  { %3069 = vmatprep.subr.bf16.mxu0 %v10504_v61  ;;  %3110 = vmatprep.subr.bf16.mxu1 %v10506_v62  ;;  %12046 = vst [vmem:[#allocation30_spill] sm:$0xff] %v10522_v18  ;;  %v10528_v62 = vld [vmem:[#allocation8 + $0xc4] ss:$16 sps:$4 sm:$0xff]   ;;  %v10534_v61 = vld [vmem:[#allocation8 + $0xc8] ss:$16 sps:$4 sm:$0xff]   ;;  %12063 = vst [vmem:[#allocation49_spill] sm:$0xff] %v10572_v60 }
 0x2f0   :  { %12047 = vst [vmem:[#allocation31_spill] sm:$0xff] %v10528_v62  ;;  %12050 = vst [vmem:[#allocation34_spill] sm:$0xff] %v10534_v61 }
 0x2f2   :  { %3070 = vmatpush1.bf16.msra.mxu0 %v10508_v63  ;;  %3111 = vmatpush1.bf16.msra.mxu1 %v10510_v3  ;;  %v10530_v63 = vld [vmem:[#allocation8 + $0xcc] ss:$16 sps:$4 sm:$0xff]   ;;  %v10532_v3 = vld [vmem:[#allocation8 + $0xc0] ss:$16 sps:$4 sm:$0xff]  }
 0x2f3   :  { %3071 = vmatprep.subr.bf16.mxu0 %v10516_v7  ;;  %3112 = vmatprep.subr.bf16.mxu1 %v10518_v10  ;;  %12048 = vst [vmem:[#allocation32_spill] sm:$0xff] %v10530_v63  ;;  %12049 = vst [vmem:[#allocation33_spill] sm:$0xff] %v10532_v3  ;;  %v10540_v10 = vld [vmem:[#allocation8 + $0xe4] ss:$16 sps:$4 sm:$0xff]   ;;  %v10546_v7 = vld [vmem:[#allocation8 + $0xe8] ss:$16 sps:$4 sm:$0xff]  }
 0x2f4   :  { %12051 = vst [vmem:[#allocation35_spill] sm:$0xff] %v10540_v10  ;;  %12054 = vst [vmem:[#allocation40_spill] sm:$0xff] %v10546_v7 }
 0x2f6   :  { %3072 = vmatpush1.bf16.msra.mxu0 %v10520_v44  ;;  %3113 = vmatpush1.bf16.msra.mxu1 %v10522_v18  ;;  %v10542_v44 = vld [vmem:[#allocation8 + $0xec] ss:$16 sps:$4 sm:$0xff]   ;;  %v10544_v18 = vld [vmem:[#allocation8 + $0xe0] ss:$16 sps:$4 sm:$0xff]  }
 0x2f7   :  { %3073 = vmatprep.subr.bf16.mxu0 %v10528_v62  ;;  %3114 = vmatprep.subr.bf16.mxu1 %v10530_v63  ;;  %12052 = vst [vmem:[#allocation39_spill] sm:$0xff] %v10542_v44  ;;  %12053 = vst [vmem:[#allocation37_spill] sm:$0xff] %v10544_v18  ;;  %v10552_v63 = vld [vmem:[#allocation8 + $0x104] ss:$16 sps:$4 sm:$0xff]   ;;  %v10558_v62 = vld [vmem:[#allocation8 + $0x108] ss:$16 sps:$4 sm:$0xff]  }
 0x2f8   :  { %12055 = vst [vmem:[#allocation41_spill] sm:$0xff] %v10552_v63  ;;  %12058 = vst [vmem:[#allocation44_spill] sm:$0xff] %v10558_v62 }
 0x2fa   :  { %3074 = vmatpush1.bf16.msra.mxu0 %v10532_v3  ;;  %3115 = vmatpush1.bf16.msra.mxu1 %v10534_v61  ;;  %v10554_v3 = vld [vmem:[#allocation8 + $0x10c] ss:$16 sps:$4 sm:$0xff]   ;;  %v10556_v61 = vld [vmem:[#allocation8 + $0x100] ss:$16 sps:$4 sm:$0xff]  }
 0x2fb   :  { %3075 = vmatprep.subr.bf16.mxu0 %v10540_v10  ;;  %3116 = vmatprep.subr.bf16.mxu1 %v10542_v44  ;;  %12056 = vst [vmem:[#allocation42_spill] sm:$0xff] %v10554_v3  ;;  %12057 = vst [vmem:[#allocation43_spill] sm:$0xff] %v10556_v61  ;;  %v10564_v44 = vld [vmem:[#allocation8 + $0x120] ss:$16 sps:$4 sm:$0xff]   ;;  %v10570_v10 = vld [vmem:[#allocation8 + $0x12c] ss:$16 sps:$4 sm:$0xff]  }
 0x2fc   :  { %12059 = vst [vmem:[#allocation45_spill] sm:$0xff] %v10564_v44  ;;  %12062 = vst [vmem:[#allocation48_spill] sm:$0xff] %v10570_v10 }
 0x2fe   :  { %3076 = vmatpush1.bf16.msra.mxu0 %v10544_v18  ;;  %3117 = vmatpush1.bf16.msra.mxu1 %v10546_v7  ;;  %v10566_v18 = vld [vmem:[#allocation8 + $0x124] ss:$16 sps:$4 sm:$0xff]   ;;  %v10568_v7 = vld [vmem:[#allocation8 + $0x128] ss:$16 sps:$4 sm:$0xff]  }
 0x2ff   :  { %3077 = vmatprep.subr.bf16.mxu0 %v10552_v63  ;;  %3118 = vmatprep.subr.bf16.mxu1 %v10554_v3  ;;  %12060 = vst [vmem:[#allocation46_spill] sm:$0xff] %v10566_v18  ;;  %12061 = vst [vmem:[#allocation47_spill] sm:$0xff] %v10568_v7  ;;  %v10585_v3 = vld [vmem:[#allocation8 + $0x164] ss:$16 sps:$4 sm:$0xff]   ;;  %v10588_v63 = vld [vmem:[#allocation8 + $0x16c] ss:$16 sps:$4 sm:$0xff]  }
 0x300   :  { %12067 = vst [vmem:[#allocation53_spill] sm:$0xff] %v10585_v3  ;;  %12068 = vst [vmem:[#allocation54_spill] sm:$0xff] %v10588_v63 }
 0x302   :  { %3078 = vmatpush1.bf16.msra.mxu0 %v10556_v61  ;;  %3119 = vmatpush1.bf16.msra.mxu1 %v10558_v62  ;;  %v10579_v61 = vld [vmem:[#allocation8 + $0x140] ss:$16 sps:$4 sm:$0xff]   ;;  %v10583_v62 = vld [vmem:[#allocation8 + $0x148] ss:$16 sps:$4 sm:$0xff]  }
 0x303   :  { %3079 = vmatprep.subr.bf16.mxu0 %v10566_v18  ;;  %3120 = vmatprep.subr.bf16.mxu1 %v10570_v10  ;;  %12065 = vst [vmem:[#allocation51_spill] sm:$0xff] %v10579_v61  ;;  %12066 = vst [vmem:[#allocation52_spill] sm:$0xff] %v10583_v62  ;;  %v10591_v18 = vld [vmem:[#allocation8 + $0x160] ss:$16 sps:$4 sm:$0xff]  }
 0x304   :  { %12069 = vst [vmem:[#allocation55_spill] sm:$0xff] %v10591_v18 }
 0x306   :  { %3080 = vmatpush1.bf16.msra.mxu0 %v10564_v44  ;;  %3121 = vmatpush1.bf16.msra.mxu1 %v10568_v7  ;;  %v10595_v44 = vld [vmem:[#allocation8 + $0x168] ss:$16 sps:$4 sm:$0xff]   ;;  %v10597_v7 = vld [vmem:[#allocation8 + $0x184] ss:$16 sps:$4 sm:$0xff]  }
 0x307   :  { %3081 = vmatprep.subr.bf16.mxu0 %v10572_v60  ;;  %3122 = vmatprep.subr.bf16.mxu1 %v10575_v59  ;;  %12070 = vst [vmem:[#allocation56_spill] sm:$0xff] %v10595_v44  ;;  %12071 = vst [vmem:[#allocation57_spill] sm:$0xff] %v10597_v7  ;;  %v10600_v60 = vld [vmem:[#allocation8 + $0x18c] ss:$16 sps:$4 sm:$0xff]   ;;  %v10603_v59 = vld [vmem:[#allocation8 + $0x180] ss:$16 sps:$4 sm:$0xff]  }
 0x308   :  { %12072 = vst [vmem:[#allocation58_spill] sm:$0xff] %v10600_v60  ;;  %12073 = vst [vmem:[#allocation59_spill] sm:$0xff] %v10603_v59 }
 0x30a   :  { %3082 = vmatpush1.bf16.msra.mxu0 %v10579_v61  ;;  %3123 = vmatpush1.bf16.msra.mxu1 %v10583_v62  ;;  %v10607_v61 = vld [vmem:[#allocation8 + $0x188] ss:$16 sps:$4 sm:$0xff]   ;;  %v10609_v62 = vld [vmem:[#allocation8 + $0x1a4] ss:$16 sps:$4 sm:$0xff]  }
 0x30b   :  { %3083 = vmatprep.subr.bf16.mxu0 %v10585_v3  ;;  %3124 = vmatprep.subr.bf16.mxu1 %v10588_v63  ;;  %12074 = vst [vmem:[#allocation60_spill] sm:$0xff] %v10607_v61  ;;  %12075 = vst [vmem:[#allocation61_spill] sm:$0xff] %v10609_v62  ;;  %v10612_v3 = vld [vmem:[#allocation8 + $0x1ac] ss:$16 sps:$4 sm:$0xff]   ;;  %v10615_v63 = vld [vmem:[#allocation8 + $0x1a0] ss:$16 sps:$4 sm:$0xff]  }
 0x30c   :  { %12076 = vst [vmem:[#allocation62_spill] sm:$0xff] %v10612_v3  ;;  %12077 = vst [vmem:[#allocation63_spill] sm:$0xff] %v10615_v63 }
 0x30e   :  { %3084 = vmatpush1.bf16.msra.mxu0 %v10591_v18  ;;  %3125 = vmatpush1.bf16.msra.mxu1 %v10595_v44  ;;  %v10619_v18 = vld [vmem:[#allocation8 + $0x1a8] ss:$16 sps:$4 sm:$0xff]   ;;  %v10621_v44 = vld [vmem:[#allocation8 + $0x1c4] ss:$16 sps:$4 sm:$0xff]  }
 0x30f   :  { %3085 = vmatprep.subr.bf16.mxu0 %v10597_v7  ;;  %3126 = vmatprep.subr.bf16.mxu1 %v10600_v60  ;;  %12078 = vst [vmem:[#allocation64_spill] sm:$0xff] %v10619_v18  ;;  %12079 = vst [vmem:[#allocation65_spill] sm:$0xff] %v10621_v44  ;;  %v10624_v7 = vld [vmem:[#allocation8 + $0x1cc] ss:$16 sps:$4 sm:$0xff]   ;;  %v10627_v60 = vld [vmem:[#allocation8 + $0x1c0] ss:$16 sps:$4 sm:$0xff]  }
 0x310   :  { %12080 = vst [vmem:[#allocation66_spill] sm:$0xff] %v10624_v7  ;;  %12081 = vst [vmem:[#allocation67_spill] sm:$0xff] %v10627_v60 }
 0x312   :  { %3086 = vmatpush1.bf16.msra.mxu0 %v10603_v59  ;;  %3127 = vmatpush1.bf16.msra.mxu1 %v10607_v61  ;;  %v10631_v59 = vld [vmem:[#allocation8 + $0x1c8] ss:$16 sps:$4 sm:$0xff]   ;;  %v10633_v61 = vld [vmem:[#allocation8 + $0x1e4] ss:$16 sps:$4 sm:$0xff]  }
 0x313   :  { %3087 = vmatprep.subr.bf16.mxu0 %v10609_v62  ;;  %3128 = vmatprep.subr.bf16.mxu1 %v10612_v3  ;;  %12082 = vst [vmem:[#allocation68_spill] sm:$0xff] %v10631_v59  ;;  %12083 = vst [vmem:[#allocation69_spill] sm:$0xff] %v10633_v61  ;;  %v10636_v62 = vld [vmem:[#allocation8 + $0x1ec] ss:$16 sps:$4 sm:$0xff]   ;;  %v10639_v3 = vld [vmem:[#allocation8 + $0x1e0] ss:$16 sps:$4 sm:$0xff]  }
 0x314   :  { %12084 = vst [vmem:[#allocation70_spill] sm:$0xff] %v10636_v62  ;;  %12085 = vst [vmem:[#allocation71_spill] sm:$0xff] %v10639_v3 }
 0x316   :  { %3088 = vmatpush1.bf16.msra.mxu0 %v10615_v63  ;;  %3129 = vmatpush1.bf16.msra.mxu1 %v10619_v18  ;;  %v10643_v63 = vld [vmem:[#allocation8 + $0x1e8] ss:$16 sps:$4 sm:$0xff]  }
 0x317   :  { %3089 = vmatprep.subr.bf16.mxu0 %v10621_v44  ;;  %3130 = vmatprep.subr.bf16.mxu1 %v10624_v7  ;;  %12086 = vst [vmem:[#allocation72_spill] sm:$0xff] %v10643_v63 }
 0x31a   :  { %3090 = vmatpush1.bf16.msra.mxu0 %v10627_v60  ;;  %3131 = vmatpush1.bf16.msra.mxu1 %v10631_v59  ;;  %v1770_v60 = vld [vmem:[%s11761_s5] sm:$0xf] }
 0x31b   :  { %3091 = vmatprep.subr.bf16.mxu0 %v10633_v61  ;;  %3132 = vmatprep.subr.bf16.mxu1 %v10636_v62  ;;  %v1775_v59 = vrot.slane %v1770_v60, %v10215_v33  ;;  %v1779_v61 = vrot.slane %v1770_v60, %v12026_v5  ;;  %v1787_v56 = vrot.slane %v1770_v60, %v12027_v36 }
 0x31c   :  { %v1783_v33 = vrot.slane %v1770_v60, %v12028_v30 }
 0x31e   :  { %3092 = vmatpush1.bf16.msra.mxu0 %v10639_v3  ;;  %3133 = vmatpush1.bf16.msra.mxu1 %v10643_v63 }
 0x31f   :  { %3400 = vmatprep.subr.bf16.mxu0 %v10322_v1  ;;  %3441 = vmatprep.subr.bf16.mxu1 %v10324_v2 }
 0x394   :  { %v2146_v7 = vpop.f32.mrb[20].mxu0  ;;  %v2187_v44 = vpop.f32.mrb[20].mxu1 }
 0x395   :  { %v2147_v18 = vadd.f32 %v2146_v7, %v1775_v59  ;;  %v2148_v62 = vpop.f32.mrb[21].mxu0  ;;  %v2189_v10 = vpop.f32.mrb[21].mxu1  ;;  %v2188_v5 = vadd.f32 %v2187_v44, %v1783_v33 }
 0x396   :  { %v2149_v3 = vadd.f32 %v2148_v62, %v1779_v61  ;;  %v2150_v28 = vpop.f32.mrb[22].mxu0  ;;  %v2191_v63 = vpop.f32.mrb[22].mxu1  ;;  %v2190_v55 = vadd.f32 %v2189_v10, %v1787_v56 }
 0x397   :  { %v8165_v58 = vmul.f32 -1.442695, %v2147_v18  ;;  %v2151_v1 = vpop.f32.mrb[23].mxu0  ;;  %v2192_v57 = vpop.f32.mrb[23].mxu1 }
 0x398   :  { %v8166_v2 = vmul.f32 -1.442695, %v2149_v3  ;;  %v8167_v54 = vmul.f32 -1.442695, %v2190_v55 }
 0x399   :  { %9471 = vpow2.f32 %v8165_v58 }
 0x39a   :  { %9473 = vpow2.f32 %v8166_v2 }
 0x39b   :  { %9475 = vtanh.f32 %v2188_v5 }
 0x39c   :  { %9477 = vpow2.f32 %v8167_v54 }
 0x3a3   :  { %v9472_v53 = vpop.eup %9471 }
 0x3a4   :  { %v9474_v59 = vpop.eup %9473  ;;  %v2197_v7 = vadd.f32 1.0, %v9472_v53 }
 0x3a5   :  { %v2203_v61 = vadd.f32 1.0, %v9474_v59  ;;  %v9476_v28 = vpop.eup %9475 }
 0x3a6   :  { %9479 = vrcp.f32 %v2197_v7  ;;  %v9478_v57 = vpop.eup %9477 }
 0x3a7   :  { %9481 = vrcp.f32 %v2203_v61  ;;  %v2210_v3 = vadd.f32 1.0, %v9478_v57 }
 0x3b0   :  { %v9480_v18 = vpop.eup %9479 }
 0x3b1   :  { %v9482_v58 = vpop.eup %9481  ;;  %v2214_v62 = vmul.f32 %v9480_v18, %v9476_v28  ;;  %v2246_v18 = vld [vmem:[#allocation2 + $0x2] ss:$8 sm:$0xf] }
 0x3b2   :  { %v2213_v63 = vmul.f32 %v9482_v58, %v10335_v41  ;;  %v2248_v58 = vld [vmem:[#allocation2 + $0x22] ss:$8 sm:$0xf] }
 0x3b4   :  { %v10658_v60 = vadd.f32 %v2214_v62, %v2213_v63  ;;  %v2485_v33 = vpop.f32.mrb[24].mxu0  ;;  %v2526_v55 = vpop.f32.mrb[24].mxu1 }
 0x3b5   :  { %v2487_v56 = vpop.f32.mrb[25].mxu0  ;;  %v2528_v10 = vpop.f32.mrb[25].mxu1 }
 0x3b6   :  { %v2537_v53 = vcombine.low %v2485_v33, %v2487_v56  ;;  %v2538_v5 = vcombine.low %v2526_v55, %v2528_v10  ;;  %v2489_v44 = vpop.f32.mrb[26].mxu0  ;;  %v2530_v54 = vpop.f32.mrb[26].mxu1  ;;  %9483 = vtanh.f32 %v10658_v60 }
 0x3b7   :  { %9485 = vrcp.f32 %v2210_v3  ;;  %v2490_v1 = vpop.f32.mrb[27].mxu0  ;;  %v2531_v2 = vpop.f32.mrb[27].mxu1 }
 0x3b8   :  { %v2545_v59 = vrot.slane %v2537_v53, %v10237_v20  ;;  %v2552_v41 = vrot.slane %v2538_v5, %v10237_v20 }
 0x3ba   :  { %v2553_v7 = vcombine.low %v2545_v59, %v2552_v41  ;;  %v2554_v61 = vcombine.high %v2545_v59, %v2552_v41 }
 0x3bc   :  { %v2561_v28 = vrot.slane %v2553_v7, %v10237_v20  ;;  %v2568_v57 = vrot.slane %v2554_v61, %v10237_v20 }
 0x3be   :  { %v2571_v62 = vadd.f32 %v2561_v28, %v2246_v18  ;;  %v2572_v63 = vadd.f32 %v2568_v57, %v2248_v58 }
 0x3c0   :  { %v9484_v33 = vpop.eup %9483  ;;  %v8200_v55 = vmul.f32 -1.442695, %v2571_v62  ;;  %v8201_v56 = vmul.f32 -1.442695, %v2572_v63  ;;  %v2587_v3 = vrot.slane %v2571_v62, 1  ;;  %v2588_v10 = vrot.slane %v2572_v63, 1 }
 0x3c1   :  { %v9486_v44 = vpop.eup %9485  ;;  %v2609_v59 = vrot.slane %v2571_v62, 3  ;;  %v2610_v41 = vrot.slane %v2572_v63, 3  ;;  %v2603_v28 = vrot.slane %v2571_v62, 2  ;;  %v2604_v57 = vrot.slane %v2572_v63, 2 }
 0x3c2   :  { %9487 = vpow2.f32 %v8200_v55  ;;  %v8202_v53 = vmul.f32 -1.442695, %v2587_v3  ;;  %v8203_v54 = vmul.f32 -1.442695, %v2588_v10  ;;  %v2217_v5 = vmul.f32 %v9486_v44, %v9484_v33 }
 0x3c3   :  { %9489 = vpow2.f32 %v8201_v56  ;;  %v8204_v58 = vmul.f32 -1.442695, %v2609_v59  ;;  %v8205_v33 = vmul.f32 -1.442695, %v2610_v41 }
 0x3c4   :  { %9491 = vpow2.f32 %v8202_v53  ;;  %v2225_v1 = vrot.slane %v2217_v5, %v10237_v20  ;;  %v2654_v2 = vpack.c.bf16 %v2217_v5, %v2217_v5 }
 0x3c5   :  { %9493 = vpow2.f32 %v8203_v54 }
 0x3c6   :  { %v2226_v7 = vcombine.high %v2225_v1, %v2225_v1  ;;  %v2233_v61 = vrot.slane %v2225_v1, %v10237_v20  ;;  %3093 = vmatprep.mubr.bf16.mxu0 %v2654_v2  ;;  %3134 = vmatprep.mubr.bf16.mxu1 %v2654_v2  ;;  %9495 = vtanh.f32 %v2603_v28 }
 0x3c7   :  { %9497 = vtanh.f32 %v2604_v57 }
 0x3c8   :  { %v2240_v18 = vrot.slane %v2226_v7, %v10237_v20  ;;  %2243 = vst.msk [vmem:[%s11762_s6 + $0x1] sm:$0x1] %vm1292_vm2, %v2233_v61  ;;  %9499 = vpow2.f32 %v8204_v58 }
 0x3c9   :  { %9501 = vpow2.f32 %v8205_v33 }
 0x3ca   :  { %2244 = vst.msk [vmem:[%s11762_s6 + $0x9] sm:$0x1] %vm1292_vm2, %v2240_v18 }
 0x3cc   :  { %v9488_v55 = vpop.eup %9487 }
 0x3cd   :  { %v9490_v56 = vpop.eup %9489  ;;  %v2579_v62 = vadd.f32 1.0, %v9488_v55 }
 0x3ce   :  { %v9492_v63 = vpop.eup %9491  ;;  %v2580_v3 = vadd.f32 1.0, %v9490_v56 }
 0x3cf   :  { %v9494_v10 = vpop.eup %9493  ;;  %9503 = vrcp.f32 %v2579_v62  ;;  %v2597_v44 = vadd.f32 1.0, %v9492_v63 }
 0x3d0   :  { %9505 = vrcp.f32 %v2580_v3  ;;  %v2598_v53 = vadd.f32 1.0, %v9494_v10  ;;  %v9496_v54 = vpop.eup %9495 }
 0x3d1   :  { %9507 = vrcp.f32 %v2597_v44  ;;  %v9498_v5 = vpop.eup %9497 }
 0x3d2   :  { %9509 = vrcp.f32 %v2598_v53  ;;  %v9500_v1 = vpop.eup %9499 }
 0x3d3   :  { %v9502_v2 = vpop.eup %9501  ;;  %v2619_v7 = vadd.f32 1.0, %v9500_v1 }
 0x3d4   :  { %v2620_v28 = vadd.f32 1.0, %v9502_v2 }
 0x3d5   :  { %9511 = vrcp.f32 %v2619_v7 }
 0x3d6   :  { %9513 = vrcp.f32 %v2620_v28 }
 0x3d9   :  { %v9504_v59 = vpop.eup %9503 }
 0x3da   :  { %v9506_v41 = vpop.eup %9505  ;;  %v2627_v18 = vmul.f32 %v9504_v59, %v9496_v54 }
 0x3db   :  { %v9508_v61 = vpop.eup %9507  ;;  %v2628_v33 = vmul.f32 %v9506_v41, %v9498_v5 }
 0x3dc   :  { %v9510_v57 = vpop.eup %9509  ;;  %v2625_v58 = vmul.f32 %v9508_v61, %v10355_v51 }
 0x3dd   :  { %v2626_v55 = vmul.f32 %v9510_v57, %v10357_v52  ;;  %v12122_v57 = vld [vmem:[#allocation50_spill] sm:$0xff] }
 0x3de   :  { %v10678_v56 = vadd.f32 %v2627_v18, %v2625_v58  ;;  %v12123_v18 = vld [vmem:[#allocation51_spill] sm:$0xff]  ;;  %v12124_v58 = vld [vmem:[#allocation52_spill] sm:$0xff] }
 0x3df   :  { %v10680_v62 = vadd.f32 %v2628_v33, %v2626_v55  ;;  %v9512_v63 = vpop.eup %9511  ;;  %v12125_v33 = vld [vmem:[#allocation53_spill] sm:$0xff]  ;;  %v12126_v55 = vld [vmem:[#allocation54_spill] sm:$0xff] }
 0x3e0   :  { %9515 = vtanh.f32 %v10678_v56  ;;  %v9514_v3 = vpop.eup %9513 }
 0x3e1   :  { %9517 = vtanh.f32 %v10680_v62 }
 0x3ea   :  { %v9516_v10 = vpop.eup %9515 }
 0x3eb   :  { %v9518_v44 = vpop.eup %9517  ;;  %v2633_v53 = vmul.f32 %v9516_v10, %v9512_v63  ;;  %v12127_v63 = vld [vmem:[#allocation55_spill] sm:$0xff]  ;;  %v12129_v10 = vld [vmem:[#allocation57_spill] sm:$0xff] }
 0x3ec   :  { %v2634_v54 = vmul.f32 %v9518_v44, %v9514_v3  ;;  %v12128_v3 = vld [vmem:[#allocation56_spill] sm:$0xff]  ;;  %v12130_v44 = vld [vmem:[#allocation58_spill] sm:$0xff] }
 0x3ed   :  { %v3198_v5 = vpack.c.bf16 %v2633_v53, %v2633_v53 }
 0x3ee   :  { %v2637_v51 = vcombine.low %v2633_v53, %v2634_v54  ;;  %v3199_v1 = vpack.c.bf16 %v2634_v54, %v2634_v54  ;;  %v12131_v53 = vld [vmem:[#allocation59_spill] sm:$0xff]  ;;  %v12132_v54 = vld [vmem:[#allocation60_spill] sm:$0xff] }
 0x3ef   :  { %v3234_v41 = vunpack.c.l.b16 %v3198_v5  ;;  %v12134_v5 = vld [vmem:[#allocation62_spill] sm:$0xff] }
 0x3f0   :  { %v2644_v52 = vrot.slane %v2637_v51, %v10237_v20  ;;  %v3235_v2 = vunpack.c.l.b16 %v3199_v1  ;;  %v12133_v51 = vld [vmem:[#allocation61_spill] sm:$0xff]  ;;  %v12135_v1 = vld [vmem:[#allocation63_spill] sm:$0xff] }
 0x3f2   :  { %v2651_v59 = vrot.slane %v2644_v52, %v10237_v20  ;;  %v3236_v7 = vrot.slane %v3235_v2, 7  ;;  %v12136_v52 = vld [vmem:[#allocation64_spill] sm:$0xff]  ;;  %v12137_v2 = vld [vmem:[#allocation65_spill] sm:$0xff] }
 0x3f4   :  { %v2653_v61 = vpack.c.bf16 %v2651_v59, %v2651_v59  ;;  %v3237_v28 = vsel %vm1338_vm1, %v3236_v7, %v3234_v41  ;;  %v12138_v59 = vld [vmem:[#allocation66_spill] sm:$0xff]  ;;  %v12139_v41 = vld [vmem:[#allocation67_spill] sm:$0xff]  ;;  %v12140_v7 = vld [vmem:[#allocation68_spill] sm:$0xff] }
 0x3f6   :  { %3094 = vmatmul.mubr.bf16.vlgmr.msra.gmra.mrb[28].mxu0 %v2653_v61  ;;  %3135 = vmatmul.mubr.bf16.vlgmr.msra.gmra.mrb[28].mxu1 %v2653_v61  ;;  %v12141_v61 = vld [vmem:[#allocation69_spill] sm:$0xff] }
 0x3f7   :  { %3401 = vmatpush1.bf16.msra.mxu0 %v10363_v4  ;;  %3442 = vmatpush1.bf16.msra.mxu1 %v10365_v6  ;;  %v3238_v4 = vpack.c.b16 %v3237_v28, %v3237_v28  ;;  %v12087_v6 = vld [vmem:[#allocation15_spill] sm:$0xff]  ;;  %v12142_v28 = vld [vmem:[#allocation70_spill] sm:$0xff] }
 0x3f8   :  { %3402 = vmatprep.subr.bf16.mxu0 %v10367_v8  ;;  %3443 = vmatprep.subr.bf16.mxu1 %v10369_v9  ;;  %v12088_v8 = vld [vmem:[#allocation13_spill] sm:$0xff]  ;;  %v12089_v9 = vld [vmem:[#allocation14_spill] sm:$0xff] }
 0x3f9   :  { %3432 = vmatprep.mubr.bf16.mxu0 %v12002_v37  ;;  %3473 = vmatprep.mubr.bf16.mxu1 %v12002_v37 }
 0x3fb   :  { %3403 = vmatpush1.bf16.msra.mxu0 %v10374_v11  ;;  %3444 = vmatpush1.bf16.msra.mxu1 %v10376_v12  ;;  %v12090_v11 = vld [vmem:[#allocation16_spill] sm:$0xff]  ;;  %v12091_v12 = vld [vmem:[#allocation17_spill] sm:$0xff] }
 0x3fc   :  { %3404 = vmatprep.subr.bf16.mxu0 %v10380_v13  ;;  %3445 = vmatprep.subr.bf16.mxu1 %v10382_v14  ;;  %v12092_v13 = vld [vmem:[#allocation18_spill] sm:$0xff]  ;;  %v12093_v14 = vld [vmem:[#allocation19_spill] sm:$0xff] }
 0x3ff   :  { %3405 = vmatpush1.bf16.msra.mxu0 %v10388_v15  ;;  %3446 = vmatpush1.bf16.msra.mxu1 %v10390_v16  ;;  %v12094_v15 = vld [vmem:[#allocation20_spill] sm:$0xff]  ;;  %v12095_v16 = vld [vmem:[#allocation21_spill] sm:$0xff] }
 0x400   :  { %3406 = vmatprep.subr.bf16.mxu0 %v10394_v17  ;;  %3447 = vmatprep.subr.bf16.mxu1 %v10396_v19  ;;  %v12096_v17 = vld [vmem:[#allocation22_spill] sm:$0xff]  ;;  %v12097_v19 = vld [vmem:[#allocation23_spill] sm:$0xff] }
 0x403   :  { %3407 = vmatpush1.bf16.msra.mxu0 %v10400_v22  ;;  %3448 = vmatpush1.bf16.msra.mxu1 %v10402_v35  ;;  %v12098_v22 = vld [vmem:[#allocation24_spill] sm:$0xff]  ;;  %v12099_v35 = vld [vmem:[#allocation25_spill] sm:$0xff] }
 0x404   :  { %3408 = vmatprep.subr.bf16.mxu0 %v10406_v27  ;;  %3449 = vmatprep.subr.bf16.mxu1 %v10408_v32  ;;  %v12100_v27 = vld [vmem:[#allocation26_spill] sm:$0xff]  ;;  %v12101_v32 = vld [vmem:[#allocation27_spill] sm:$0xff] }
 0x407   :  { %3409 = vmatpush1.bf16.msra.mxu0 %v10412_v29  ;;  %3450 = vmatpush1.bf16.msra.mxu1 %v10414_v31  ;;  %v12102_v29 = vld [vmem:[#allocation28_spill] sm:$0xff]  ;;  %v12103_v31 = vld [vmem:[#allocation29_spill] sm:$0xff] }
 0x408   :  { %3410 = vmatprep.subr.bf16.mxu0 %v10418_v38  ;;  %3451 = vmatprep.subr.bf16.mxu1 %v10420_v21  ;;  %v12104_v38 = vld [vmem:[#allocation30_spill] sm:$0xff]  ;;  %v12105_v21 = vld [vmem:[#allocation31_spill] sm:$0xff] }
 0x40b   :  { %3411 = vmatpush1.bf16.msra.mxu0 %v10424_v40  ;;  %3452 = vmatpush1.bf16.msra.mxu1 %v10426_v34  ;;  %v12106_v40 = vld [vmem:[#allocation32_spill] sm:$0xff]  ;;  %v12107_v34 = vld [vmem:[#allocation33_spill] sm:$0xff] }
 0x40c   :  { %3412 = vmatprep.subr.bf16.mxu0 %v10430_v39  ;;  %3453 = vmatprep.subr.bf16.mxu1 %v10432_v24  ;;  %v12108_v39 = vld [vmem:[#allocation34_spill] sm:$0xff]  ;;  %v12109_v24 = vld [vmem:[#allocation35_spill] sm:$0xff] }
 0x40f   :  { %3413 = vmatpush1.bf16.msra.mxu0 %v10436_v0  ;;  %3454 = vmatpush1.bf16.msra.mxu1 %v10438_v25  ;;  %v12110_v0 = vld [vmem:[#allocation39_spill] sm:$0xff]  ;;  %v12111_v25 = vld [vmem:[#allocation37_spill] sm:$0xff] }
 0x410   :  { %3414 = vmatprep.subr.bf16.mxu0 %v10442_v23  ;;  %3455 = vmatprep.subr.bf16.mxu1 %v10444_v26  ;;  %v12112_v23 = vld [vmem:[#allocation40_spill] sm:$0xff]  ;;  %v12113_v26 = vld [vmem:[#allocation41_spill] sm:$0xff] }
 0x413   :  { %3415 = vmatpush1.bf16.msra.mxu0 %v10448_v42  ;;  %3456 = vmatpush1.bf16.msra.mxu1 %v10450_v43  ;;  %v12114_v42 = vld [vmem:[#allocation42_spill] sm:$0xff]  ;;  %v12115_v43 = vld [vmem:[#allocation43_spill] sm:$0xff] }
 0x414   :  { %4010 = vmatprep.subr.bf16.mxu0 %v10458_v46  ;;  %4051 = vmatprep.subr.bf16.mxu1 %v10462_v48  ;;  %v12117_v46 = vld [vmem:[#allocation46_spill] sm:$0xff]  ;;  %v12119_v48 = vld [vmem:[#allocation45_spill] sm:$0xff] }
 0x416   :  { %3433 = vmatmul.mubr.bf16.vlgmr.msra.gmra.mrb[32].mxu0 %v3238_v4  ;;  %3474 = vmatmul.mubr.bf16.vlgmr.msra.gmra.mrb[32].mxu1 %v3238_v4  ;;  %v12143_v4 = vld [vmem:[#allocation71_spill] sm:$0xff] }
 0x417   :  { %4011 = vmatpush1.bf16.msra.mxu0 %v10456_v45  ;;  %4052 = vmatpush1.bf16.msra.mxu1 %v10460_v47  ;;  %v12116_v45 = vld [vmem:[#allocation44_spill] sm:$0xff] }
 0x418   :  { %4012 = vmatprep.subr.bf16.mxu0 %v10468_v49  ;;  %4053 = vmatprep.subr.bf16.mxu1 %v10470_v50  ;;  %v12118_v47 = vld [vmem:[#allocation48_spill] sm:$0xff]  ;;  %v12120_v49 = vld [vmem:[#allocation47_spill] sm:$0xff]  ;;  %v12121_v50 = vld [vmem:[#allocation49_spill] sm:$0xff] }
 0x41b   :  { %4013 = vmatpush1.bf16.msra.mxu0 %v12087_v6  ;;  %4054 = vmatpush1.bf16.msra.mxu1 %v12088_v8  ;;  %v12144_v6 = vld [vmem:[#allocation72_spill] sm:$0xff]  ;;  %v10783_v8 = vld [vmem:[#allocation7 + $0x4] ss:$16 sps:$4 sm:$0xff]  }
 0x41c   :  { %4014 = vmatprep.subr.bf16.mxu0 %v12089_v9  ;;  %4055 = vmatprep.subr.bf16.mxu1 %v12090_v11  ;;  %v10785_v9 = vld [vmem:[#allocation7 + $0xc] ss:$16 sps:$4 sm:$0xff]   ;;  %v2719_v11 = vld [vmem:[%s11761_s5] sm:$0xf] }
 0x41f   :  { %4015 = vmatpush1.bf16.msra.mxu0 %v12091_v12  ;;  %4056 = vmatpush1.bf16.msra.mxu1 %v12092_v13  ;;  %v12145_v12 = vld [vmem:[#allocation36_spill] sm:$0xff] }
 0x420   :  { %4016 = vmatprep.subr.bf16.mxu0 %v12093_v14  ;;  %4057 = vmatprep.subr.bf16.mxu1 %v12094_v15  ;;  %v2724_v13 = vrot.slane %v2719_v11, %v12145_v12  ;;  %v12146_v14 = vld [vmem:[#allocation38_spill] sm:$0xff] }
 0x421   :  { %v2728_v15 = vrot.slane %v2719_v11, %v12146_v14 }
 0x423   :  { %4017 = vmatpush1.bf16.msra.mxu0 %v12095_v16  ;;  %4058 = vmatpush1.bf16.msra.mxu1 %v12096_v17 }
 0x424   :  { %4018 = vmatprep.subr.bf16.mxu0 %v12097_v19  ;;  %4059 = vmatprep.subr.bf16.mxu1 %v12098_v22 }
 0x427   :  { %4019 = vmatpush1.bf16.msra.mxu0 %v12099_v35  ;;  %4060 = vmatpush1.bf16.msra.mxu1 %v12100_v27 }
 0x428   :  { %4020 = vmatprep.subr.bf16.mxu0 %v12101_v32  ;;  %4061 = vmatprep.subr.bf16.mxu1 %v12102_v29 }
 0x42b   :  { %4021 = vmatpush1.bf16.msra.mxu0 %v12103_v31  ;;  %4062 = vmatpush1.bf16.msra.mxu1 %v12104_v38 }
 0x42c   :  { %4022 = vmatprep.subr.bf16.mxu0 %v12105_v21  ;;  %4063 = vmatprep.subr.bf16.mxu1 %v12106_v40 }
 0x42f   :  { %4023 = vmatpush1.bf16.msra.mxu0 %v12107_v34  ;;  %4064 = vmatpush1.bf16.msra.mxu1 %v12108_v39  ;;  %v2736_v34 = vrot.slane %v2719_v11, %v12027_v36  ;;  %v2732_v39 = vrot.slane %v2719_v11, %v12028_v30 }
 0x430   :  { %4024 = vmatprep.subr.bf16.mxu0 %v12109_v24  ;;  %4065 = vmatprep.subr.bf16.mxu1 %v12110_v0 }
 0x433   :  { %4025 = vmatpush1.bf16.msra.mxu0 %v12111_v25  ;;  %4066 = vmatpush1.bf16.msra.mxu1 %v12112_v23 }
 0x434   :  { %4026 = vmatprep.subr.bf16.mxu0 %v12113_v26  ;;  %4067 = vmatprep.subr.bf16.mxu1 %v12114_v42 }
 0x437   :  { %4027 = vmatpush1.bf16.msra.mxu0 %v12115_v43  ;;  %4068 = vmatpush1.bf16.msra.mxu1 %v12116_v45 }
 0x438   :  { %4028 = vmatprep.subr.bf16.mxu0 %v12117_v46  ;;  %4069 = vmatprep.subr.bf16.mxu1 %v12118_v47 }
 0x43b   :  { %4029 = vmatpush1.bf16.msra.mxu0 %v12119_v48  ;;  %4070 = vmatpush1.bf16.msra.mxu1 %v12120_v49 }
 0x43c   :  { %4030 = vmatprep.subr.bf16.mxu0 %v12121_v50  ;;  %4071 = vmatprep.subr.bf16.mxu1 %v12122_v57 }
 0x43f   :  { %4031 = vmatpush1.bf16.msra.mxu0 %v12123_v18  ;;  %4072 = vmatpush1.bf16.msra.mxu1 %v12124_v58 }
 0x440   :  { %4032 = vmatprep.subr.bf16.mxu0 %v12125_v33  ;;  %4073 = vmatprep.subr.bf16.mxu1 %v12126_v55 }
 0x443   :  { %4033 = vmatpush1.bf16.msra.mxu0 %v12127_v63  ;;  %4074 = vmatpush1.bf16.msra.mxu1 %v12128_v3 }
 0x444   :  { %4034 = vmatprep.subr.bf16.mxu0 %v12129_v10  ;;  %4075 = vmatprep.subr.bf16.mxu1 %v12130_v44 }
 0x447   :  { %4035 = vmatpush1.bf16.msra.mxu0 %v12131_v53  ;;  %4076 = vmatpush1.bf16.msra.mxu1 %v12132_v54 }
 0x448   :  { %4036 = vmatprep.subr.bf16.mxu0 %v12133_v51  ;;  %4077 = vmatprep.subr.bf16.mxu1 %v12134_v5 }
 0x44b   :  { %4037 = vmatpush1.bf16.msra.mxu0 %v12135_v1  ;;  %4078 = vmatpush1.bf16.msra.mxu1 %v12136_v52 }
 0x44c   :  { %4038 = vmatprep.subr.bf16.mxu0 %v12137_v2  ;;  %4079 = vmatprep.subr.bf16.mxu1 %v12138_v59 }
 0x44f   :  { %4039 = vmatpush1.bf16.msra.mxu0 %v12139_v41  ;;  %4080 = vmatpush1.bf16.msra.mxu1 %v12140_v7  ;;  %v3195_v41 = vld [vmem:[#allocation2 + $0x3] ss:$8 sm:$0xf] }
 0x450   :  { %4040 = vmatprep.subr.bf16.mxu0 %v12141_v61  ;;  %4081 = vmatprep.subr.bf16.mxu1 %v12142_v28  ;;  %v3197_v7 = vld [vmem:[#allocation2 + $0x23] ss:$8 sm:$0xf] }
 0x453   :  { %4041 = vmatpush1.bf16.msra.mxu0 %v12143_v4  ;;  %4082 = vmatpush1.bf16.msra.mxu1 %v12144_v6 }
 0x454   :  { %4349 = vmatprep.subr.bf16.mxu0 %v10783_v8  ;;  %4390 = vmatprep.subr.bf16.mxu1 %v10785_v9 }
 0x4c9   :  { %v3095_v16 = vpop.f32.mrb[28].mxu0  ;;  %v3136_v17 = vpop.f32.mrb[28].mxu1 }
 0x4ca   :  { %v3096_v19 = vadd.f32 %v3095_v16, %v2724_v13  ;;  %v3097_v22 = vpop.f32.mrb[29].mxu0  ;;  %v3138_v35 = vpop.f32.mrb[29].mxu1  ;;  %v3137_v0 = vadd.f32 %v3136_v17, %v2732_v39 }
 0x4cb   :  { %v3098_v27 = vadd.f32 %v3097_v22, %v2728_v15  ;;  %v3099_v32 = vpop.f32.mrb[30].mxu0  ;;  %v3140_v29 = vpop.f32.mrb[30].mxu1  ;;  %v3139_v24 = vadd.f32 %v3138_v35, %v2736_v34 }
 0x4cc   :  { %v8270_v31 = vmul.f32 -1.442695, %v3096_v19  ;;  %v3100_v38 = vpop.f32.mrb[31].mxu0  ;;  %v3141_v21 = vpop.f32.mrb[31].mxu1 }
 0x4cd   :  { %v8271_v40 = vmul.f32 -1.442695, %v3098_v27  ;;  %v8272_v25 = vmul.f32 -1.442695, %v3139_v24 }
 0x4ce   :  { %9519 = vpow2.f32 %v8270_v31 }
 0x4cf   :  { %9521 = vpow2.f32 %v8271_v40 }
 0x4d0   :  { %9523 = vtanh.f32 %v3137_v0 }
 0x4d1   :  { %9525 = vpow2.f32 %v8272_v25 }
 0x4d8   :  { %v9520_v23 = vpop.eup %9519 }
 0x4d9   :  { %v9522_v26 = vpop.eup %9521  ;;  %v3146_v42 = vadd.f32 1.0, %v9520_v23 }
 0x4da   :  { %v3152_v43 = vadd.f32 1.0, %v9522_v26  ;;  %v9524_v45 = vpop.eup %9523 }
 0x4db   :  { %9527 = vrcp.f32 %v3146_v42  ;;  %v9526_v46 = vpop.eup %9525 }
 0x4dc   :  { %9529 = vrcp.f32 %v3152_v43  ;;  %v3159_v57 = vadd.f32 1.0, %v9526_v46 }
 0x4e5   :  { %v9528_v47 = vpop.eup %9527 }
 0x4e6   :  { %v9530_v48 = vpop.eup %9529  ;;  %v3163_v49 = vmul.f32 %v9528_v47, %v9524_v45 }
 0x4e7   :  { %v3162_v50 = vmul.f32 %v9530_v48, %v10658_v60 }
 0x4e9   :  { %v10797_v18 = vadd.f32 %v3163_v49, %v3162_v50  ;;  %v3434_v58 = vpop.f32.mrb[32].mxu0  ;;  %v3475_v33 = vpop.f32.mrb[32].mxu1 }
 0x4ea   :  { %v3436_v55 = vpop.f32.mrb[33].mxu0  ;;  %v3477_v63 = vpop.f32.mrb[33].mxu1 }
 0x4eb   :  { %v3486_v3 = vcombine.low %v3434_v58, %v3436_v55  ;;  %v3487_v10 = vcombine.low %v3475_v33, %v3477_v63  ;;  %v3438_v44 = vpop.f32.mrb[34].mxu0  ;;  %v3479_v53 = vpop.f32.mrb[34].mxu1  ;;  %9531 = vtanh.f32 %v10797_v18 }
 0x4ec   :  { %9533 = vrcp.f32 %v3159_v57  ;;  %v3439_v54 = vpop.f32.mrb[35].mxu0  ;;  %v3480_v51 = vpop.f32.mrb[35].mxu1 }
 0x4ed   :  { %v3494_v5 = vrot.slane %v3486_v3, %v10237_v20  ;;  %v3501_v60 = vrot.slane %v3487_v10, %v10237_v20 }
 0x4ef   :  { %v3502_v1 = vcombine.low %v3494_v5, %v3501_v60  ;;  %v3503_v52 = vcombine.high %v3494_v5, %v3501_v60 }
 0x4f1   :  { %v3510_v2 = vrot.slane %v3502_v1, %v10237_v20  ;;  %v3517_v59 = vrot.slane %v3503_v52, %v10237_v20 }
 0x4f3   :  { %v3520_v61 = vadd.f32 %v3510_v2, %v3195_v41  ;;  %v3521_v28 = vadd.f32 %v3517_v59, %v3197_v7 }
 0x4f5   :  { %v9532_v4 = vpop.eup %9531  ;;  %v8305_v6 = vmul.f32 -1.442695, %v3520_v61  ;;  %v8306_v11 = vmul.f32 -1.442695, %v3521_v28  ;;  %v3536_v13 = vrot.slane %v3520_v61, 1  ;;  %v3537_v15 = vrot.slane %v3521_v28, 1 }
 0x4f6   :  { %v9534_v16 = vpop.eup %9533  ;;  %v3558_v32 = vrot.slane %v3520_v61, 3  ;;  %v3559_v29 = vrot.slane %v3521_v28, 3  ;;  %v3552_v21 = vrot.slane %v3520_v61, 2  ;;  %v3553_v40 = vrot.slane %v3521_v28, 2 }
 0x4f7   :  { %9535 = vpow2.f32 %v8305_v6  ;;  %v8307_v17 = vmul.f32 -1.442695, %v3536_v13  ;;  %v8308_v19 = vmul.f32 -1.442695, %v3537_v15  ;;  %v3166_v22 = vmul.f32 %v9534_v16, %v9532_v4  ;;  %v10825_v13 = vld [vmem:[#allocation7] ss:$16 sps:$4 sm:$0xff]  }
 0x4f8   :  { %9537 = vpow2.f32 %v8306_v11  ;;  %v8309_v39 = vmul.f32 -1.442695, %v3558_v32  ;;  %v8310_v24 = vmul.f32 -1.442695, %v3559_v29  ;;  %v10827_v15 = vld [vmem:[#allocation7 + $0x8] ss:$16 sps:$4 sm:$0xff]  }
 0x4f9   :  { %9539 = vpow2.f32 %v8307_v17  ;;  %v3174_v35 = vrot.slane %v3166_v22, %v10237_v20  ;;  %v3603_v27 = vpack.c.bf16 %v3166_v22, %v3166_v22  ;;  %v10829_v17 = vld [vmem:[#allocation7 + $0x24] ss:$16 sps:$4 sm:$0xff]   ;;  %v10844_v29 = vld [vmem:[#allocation7 + $0x4c] ss:$16 sps:$4 sm:$0xff]  }
 0x4fa   :  { %9541 = vpow2.f32 %v8308_v19  ;;  %v10831_v19 = vld [vmem:[#allocation7 + $0x2c] ss:$16 sps:$4 sm:$0xff]   ;;  %v10842_v32 = vld [vmem:[#allocation7 + $0x44] ss:$16 sps:$4 sm:$0xff]  }
 0x4fb   :  { %v3175_v31 = vcombine.high %v3174_v35, %v3174_v35  ;;  %v3182_v38 = vrot.slane %v3174_v35, %v10237_v20  ;;  %4042 = vmatprep.mubr.bf16.mxu0 %v3603_v27  ;;  %4083 = vmatprep.mubr.bf16.mxu1 %v3603_v27  ;;  %9543 = vtanh.f32 %v3552_v21  ;;  %v10836_v35 = vld [vmem:[#allocation7 + $0x20] ss:$16 sps:$4 sm:$0xff]   ;;  %v10838_v27 = vld [vmem:[#allocation7 + $0x28] ss:$16 sps:$4 sm:$0xff]   ;;  %v10856_v21 = vld [vmem:[#allocation7 + $0x64] ss:$16 sps:$4 sm:$0xff]  }
 0x4fc   :  { %9545 = vtanh.f32 %v3553_v40  ;;  %v10858_v40 = vld [vmem:[#allocation7 + $0x6c] ss:$16 sps:$4 sm:$0xff]  }
 0x4fd   :  { %v3189_v34 = vrot.slane %v3175_v31, %v10237_v20  ;;  %3192 = vst.msk [vmem:[%s11762_s6 + $0x2] sm:$0x1] %vm1292_vm2, %v3182_v38  ;;  %9547 = vpow2.f32 %v8309_v39  ;;  %v10850_v31 = vld [vmem:[#allocation7 + $0x40] ss:$16 sps:$4 sm:$0xff]   ;;  %v10852_v38 = vld [vmem:[#allocation7 + $0x48] ss:$16 sps:$4 sm:$0xff]  }
 0x4fe   :  { %9549 = vpow2.f32 %v8310_v24  ;;  %v10864_v39 = vld [vmem:[#allocation7 + $0x68] ss:$16 sps:$4 sm:$0xff]   ;;  %v10868_v24 = vld [vmem:[#allocation7 + $0x84] ss:$16 sps:$4 sm:$0xff]  }
 0x4ff   :  { %3193 = vst.msk [vmem:[%s11762_s6 + $0xa] sm:$0x1] %vm1292_vm2, %v3189_v34  ;;  %v10862_v34 = vld [vmem:[#allocation7 + $0x60] ss:$16 sps:$4 sm:$0xff]  }
 0x501   :  { %v9536_v0 = vpop.eup %9535 }
 0x502   :  { %v9538_v25 = vpop.eup %9537  ;;  %v3528_v23 = vadd.f32 1.0, %v9536_v0  ;;  %v10870_v0 = vld [vmem:[#allocation7 + $0x8c] ss:$16 sps:$4 sm:$0xff]  }
 0x503   :  { %v9540_v26 = vpop.eup %9539  ;;  %v3529_v42 = vadd.f32 1.0, %v9538_v25  ;;  %v10874_v25 = vld [vmem:[#allocation7 + $0x80] ss:$16 sps:$4 sm:$0xff]  }
 0x504   :  { %v9542_v43 = vpop.eup %9541  ;;  %9551 = vrcp.f32 %v3528_v23  ;;  %v3546_v45 = vadd.f32 1.0, %v9540_v26  ;;  %v10876_v23 = vld [vmem:[#allocation7 + $0x88] ss:$16 sps:$4 sm:$0xff]   ;;  %v10880_v26 = vld [vmem:[#allocation7 + $0xa4] ss:$16 sps:$4 sm:$0xff]  }
 0x505   :  { %9553 = vrcp.f32 %v3529_v42  ;;  %v3547_v46 = vadd.f32 1.0, %v9542_v43  ;;  %v9544_v47 = vpop.eup %9543  ;;  %v10882_v42 = vld [vmem:[#allocation7 + $0xac] ss:$16 sps:$4 sm:$0xff]   ;;  %v10886_v43 = vld [vmem:[#allocation7 + $0xa0] ss:$16 sps:$4 sm:$0xff]  }
 0x506   :  { %9555 = vrcp.f32 %v3546_v45  ;;  %v9546_v48 = vpop.eup %9545  ;;  %v10888_v45 = vld [vmem:[#allocation7 + $0xa8] ss:$16 sps:$4 sm:$0xff]  }
 0x507   :  { %9557 = vrcp.f32 %v3547_v46  ;;  %v9548_v49 = vpop.eup %9547  ;;  %v10892_v46 = vld [vmem:[#allocation7 + $0xc4] ss:$16 sps:$4 sm:$0xff]  }
 0x508   :  { %v9550_v50 = vpop.eup %9549  ;;  %v3568_v33 = vadd.f32 1.0, %v9548_v49  ;;  %v10900_v49 = vld [vmem:[#allocation7 + $0xc8] ss:$16 sps:$4 sm:$0xff]  }
 0x509   :  { %v3569_v63 = vadd.f32 1.0, %v9550_v50  ;;  %v10904_v50 = vld [vmem:[#allocation7 + $0xe4] ss:$16 sps:$4 sm:$0xff]  }
 0x50a   :  { %9559 = vrcp.f32 %v3568_v33  ;;  %v10912_v33 = vld [vmem:[#allocation7 + $0xe8] ss:$16 sps:$4 sm:$0xff]  }
 0x50b   :  { %9561 = vrcp.f32 %v3569_v63  ;;  %v10918_v63 = vld [vmem:[#allocation8] ss:$16 sps:$4 sm:$0xff]  }
 0x50e   :  { %v9552_v57 = vpop.eup %9551 }
 0x50f   :  { %v9554_v58 = vpop.eup %9553  ;;  %v3576_v10 = vmul.f32 %v9552_v57, %v9544_v47  ;;  %v10894_v47 = vld [vmem:[#allocation7 + $0xcc] ss:$16 sps:$4 sm:$0xff]  }
 0x510   :  { %v9556_v55 = vpop.eup %9555  ;;  %v3577_v53 = vmul.f32 %v9554_v58, %v9546_v48  ;;  %v10898_v48 = vld [vmem:[#allocation7 + $0xc0] ss:$16 sps:$4 sm:$0xff]   ;;  %v10906_v57 = vld [vmem:[#allocation7 + $0xec] ss:$16 sps:$4 sm:$0xff]  }
 0x511   :  { %v9558_v3 = vpop.eup %9557  ;;  %v3574_v44 = vmul.f32 %v9556_v55, %v10678_v56  ;;  %v10910_v58 = vld [vmem:[#allocation7 + $0xe0] ss:$16 sps:$4 sm:$0xff]  }
 0x512   :  { %v3575_v54 = vmul.f32 %v9558_v3, %v10680_v62  ;;  %v10920_v3 = vld [vmem:[#allocation8 + $0x4] ss:$16 sps:$4 sm:$0xff]  }
 0x513   :  { %v10817_v51 = vadd.f32 %v3576_v10, %v3574_v44  ;;  %v10922_v10 = vld [vmem:[#allocation8 + $0x8] ss:$16 sps:$4 sm:$0xff]   ;;  %v10924_v44 = vld [vmem:[#allocation8 + $0xc] ss:$16 sps:$4 sm:$0xff]  }
 0x514   :  { %v10819_v5 = vadd.f32 %v3577_v53, %v3575_v54  ;;  %v9560_v60 = vpop.eup %9559  ;;  %v10930_v53 = vld [vmem:[#allocation8 + $0x24] ss:$16 sps:$4 sm:$0xff]   ;;  %v10932_v54 = vld [vmem:[#allocation8 + $0x2c] ss:$16 sps:$4 sm:$0xff]  }
 0x515   :  { %9563 = vtanh.f32 %v10817_v51  ;;  %v9562_v1 = vpop.eup %9561 }
 0x516   :  { %9565 = vtanh.f32 %v10819_v5 }
 0x51f   :  { %v9564_v52 = vpop.eup %9563 }
 0x520   :  { %v9566_v2 = vpop.eup %9565  ;;  %v3582_v59 = vmul.f32 %v9564_v52, %v9560_v60  ;;  %v10934_v60 = vld [vmem:[#allocation8 + $0x20] ss:$16 sps:$4 sm:$0xff]   ;;  %v10942_v52 = vld [vmem:[#allocation8 + $0x44] ss:$16 sps:$4 sm:$0xff]  }
 0x521   :  { %v3583_v41 = vmul.f32 %v9566_v2, %v9562_v1  ;;  %12147 = vst [vmem:[#allocation15_spill] sm:$0xff] %v10934_v60  ;;  %v10936_v1 = vld [vmem:[#allocation8 + $0x28] ss:$16 sps:$4 sm:$0xff]   ;;  %12149 = vst [vmem:[#allocation14_spill] sm:$0xff] %v10942_v52  ;;  %v10944_v2 = vld [vmem:[#allocation8 + $0x4c] ss:$16 sps:$4 sm:$0xff]  }
 0x522   :  { %v4147_v7 = vpack.c.bf16 %v3582_v59, %v3582_v59  ;;  %12148 = vst [vmem:[#allocation13_spill] sm:$0xff] %v10936_v1  ;;  %12150 = vst [vmem:[#allocation16_spill] sm:$0xff] %v10944_v2 }
 0x523   :  { %v3586_v56 = vcombine.low %v3582_v59, %v3583_v41  ;;  %v4148_v61 = vpack.c.bf16 %v3583_v41, %v3583_v41  ;;  %v10946_v59 = vld [vmem:[#allocation8 + $0x40] ss:$16 sps:$4 sm:$0xff]   ;;  %v10948_v41 = vld [vmem:[#allocation8 + $0x48] ss:$16 sps:$4 sm:$0xff]  }
 0x524   :  { %v4183_v6 = vunpack.c.l.b16 %v4147_v7  ;;  %12151 = vst [vmem:[#allocation17_spill] sm:$0xff] %v10946_v59  ;;  %12152 = vst [vmem:[#allocation18_spill] sm:$0xff] %v10948_v41  ;;  %v10956_v7 = vld [vmem:[#allocation8 + $0x6c] ss:$16 sps:$4 sm:$0xff]  }
 0x525   :  { %v3593_v62 = vrot.slane %v3586_v56, %v10237_v20  ;;  %v4184_v28 = vunpack.c.l.b16 %v4148_v61  ;;  %v10954_v56 = vld [vmem:[#allocation8 + $0x64] ss:$16 sps:$4 sm:$0xff]   ;;  %12154 = vst [vmem:[#allocation20_spill] sm:$0xff] %v10956_v7  ;;  %v10958_v61 = vld [vmem:[#allocation8 + $0x60] ss:$16 sps:$4 sm:$0xff]  }
 0x526   :  { %12153 = vst [vmem:[#allocation19_spill] sm:$0xff] %v10954_v56  ;;  %12155 = vst [vmem:[#allocation21_spill] sm:$0xff] %v10958_v61 }
 0x527   :  { %v3600_v4 = vrot.slane %v3593_v62, %v10237_v20  ;;  %v4185_v11 = vrot.slane %v4184_v28, 7  ;;  %v10960_v62 = vld [vmem:[#allocation8 + $0x68] ss:$16 sps:$4 sm:$0xff]   ;;  %v10966_v28 = vld [vmem:[#allocation8 + $0x84] ss:$16 sps:$4 sm:$0xff]  }
 0x528   :  { %12156 = vst [vmem:[#allocation22_spill] sm:$0xff] %v10960_v62  ;;  %12157 = vst [vmem:[#allocation23_spill] sm:$0xff] %v10966_v28 }
 0x529   :  { %v3602_v16 = vpack.c.bf16 %v3600_v4, %v3600_v4  ;;  %v4186_v22 = vsel %vm1338_vm1, %v4185_v11, %v4183_v6  ;;  %v10968_v4 = vld [vmem:[#allocation8 + $0x8c] ss:$16 sps:$4 sm:$0xff]   ;;  %v10970_v6 = vld [vmem:[#allocation8 + $0x80] ss:$16 sps:$4 sm:$0xff]   ;;  %v10972_v11 = vld [vmem:[#allocation8 + $0x88] ss:$16 sps:$4 sm:$0xff]  }
 0x52a   :  { %v4187_v55 = vpack.c.b16 %v4186_v22, %v4186_v22  ;;  %12158 = vst [vmem:[#allocation24_spill] sm:$0xff] %v10968_v4  ;;  %12159 = vst [vmem:[#allocation25_spill] sm:$0xff] %v10970_v6  ;;  %v10980_v22 = vld [vmem:[#allocation8 + $0xac] ss:$16 sps:$4 sm:$0xff]  }
 0x52b   :  { %4043 = vmatmul.mubr.bf16.vlgmr.msra.gmra.mrb[36].mxu0 %v3602_v16  ;;  %4084 = vmatmul.mubr.bf16.vlgmr.msra.gmra.mrb[36].mxu1 %v3602_v16  ;;  %12160 = vst [vmem:[#allocation26_spill] sm:$0xff] %v10972_v11  ;;  %v10978_v16 = vld [vmem:[#allocation8 + $0xa4] ss:$16 sps:$4 sm:$0xff]   ;;  %12162 = vst [vmem:[#allocation28_spill] sm:$0xff] %v10980_v22 }
 0x52c   :  { %4350 = vmatpush1.bf16.msra.mxu0 %v10825_v13  ;;  %4391 = vmatpush1.bf16.msra.mxu1 %v10827_v15  ;;  %12161 = vst [vmem:[#allocation27_spill] sm:$0xff] %v10978_v16 }
 0x52d   :  { %4351 = vmatprep.subr.bf16.mxu0 %v10829_v17  ;;  %4392 = vmatprep.subr.bf16.mxu1 %v10831_v19 }
 0x52e   :  { %4381 = vmatprep.mubr.bf16.mxu0 %v12002_v37  ;;  %4422 = vmatprep.mubr.bf16.mxu1 %v12002_v37 }
 0x530   :  { %4352 = vmatpush1.bf16.msra.mxu0 %v10836_v35  ;;  %4393 = vmatpush1.bf16.msra.mxu1 %v10838_v27 }
 0x531   :  { %4353 = vmatprep.subr.bf16.mxu0 %v10842_v32  ;;  %4394 = vmatprep.subr.bf16.mxu1 %v10844_v29 }
 0x534   :  { %4354 = vmatpush1.bf16.msra.mxu0 %v10850_v31  ;;  %4395 = vmatpush1.bf16.msra.mxu1 %v10852_v38 }
 0x535   :  { %4355 = vmatprep.subr.bf16.mxu0 %v10856_v21  ;;  %4396 = vmatprep.subr.bf16.mxu1 %v10858_v40 }
 0x538   :  { %4356 = vmatpush1.bf16.msra.mxu0 %v10862_v34  ;;  %4397 = vmatpush1.bf16.msra.mxu1 %v10864_v39 }
 0x539   :  { %4357 = vmatprep.subr.bf16.mxu0 %v10868_v24  ;;  %4398 = vmatprep.subr.bf16.mxu1 %v10870_v0 }
 0x53c   :  { %4358 = vmatpush1.bf16.msra.mxu0 %v10874_v25  ;;  %4399 = vmatpush1.bf16.msra.mxu1 %v10876_v23 }
 0x53d   :  { %4359 = vmatprep.subr.bf16.mxu0 %v10880_v26  ;;  %4400 = vmatprep.subr.bf16.mxu1 %v10882_v42 }
 0x540   :  { %4360 = vmatpush1.bf16.msra.mxu0 %v10886_v43  ;;  %4401 = vmatpush1.bf16.msra.mxu1 %v10888_v45 }
 0x541   :  { %4361 = vmatprep.subr.bf16.mxu0 %v10892_v46  ;;  %4402 = vmatprep.subr.bf16.mxu1 %v10894_v47 }
 0x544   :  { %4362 = vmatpush1.bf16.msra.mxu0 %v10898_v48  ;;  %4403 = vmatpush1.bf16.msra.mxu1 %v10900_v49 }
 0x545   :  { %4363 = vmatprep.subr.bf16.mxu0 %v10904_v50  ;;  %4404 = vmatprep.subr.bf16.mxu1 %v10906_v57 }
 0x548   :  { %4364 = vmatpush1.bf16.msra.mxu0 %v10910_v58  ;;  %4405 = vmatpush1.bf16.msra.mxu1 %v10912_v33 }
 0x549   :  { %4959 = vmatprep.subr.bf16.mxu0 %v10920_v3  ;;  %5000 = vmatprep.subr.bf16.mxu1 %v10924_v44 }
 0x54b   :  { %4382 = vmatmul.mubr.bf16.vlgmr.msra.gmra.mrb[40].mxu0 %v4187_v55  ;;  %4423 = vmatmul.mubr.bf16.vlgmr.msra.gmra.mrb[40].mxu1 %v4187_v55  ;;  %v10982_v55 = vld [vmem:[#allocation8 + $0xa0] ss:$16 sps:$4 sm:$0xff]  }
 0x54c   :  { %4960 = vmatpush1.bf16.msra.mxu0 %v10918_v63  ;;  %5001 = vmatpush1.bf16.msra.mxu1 %v10922_v10  ;;  %12163 = vst [vmem:[#allocation29_spill] sm:$0xff] %v10982_v55 }
 0x54d   :  { %4961 = vmatprep.subr.bf16.mxu0 %v10930_v53  ;;  %5002 = vmatprep.subr.bf16.mxu1 %v10932_v54 }
 0x550   :  { %4962 = vmatpush1.bf16.msra.mxu0 %v10934_v60  ;;  %5003 = vmatpush1.bf16.msra.mxu1 %v10936_v1 }
 0x551   :  { %4963 = vmatprep.subr.bf16.mxu0 %v10942_v52  ;;  %5004 = vmatprep.subr.bf16.mxu1 %v10944_v2 }
 0x554   :  { %4964 = vmatpush1.bf16.msra.mxu0 %v10946_v59  ;;  %5005 = vmatpush1.bf16.msra.mxu1 %v10948_v41 }
 0x555   :  { %4965 = vmatprep.subr.bf16.mxu0 %v10954_v56  ;;  %5006 = vmatprep.subr.bf16.mxu1 %v10956_v7  ;;  %v11037_v7 = vld [vmem:[#allocation8 + $0x14c] ss:$16 sps:$4 sm:$0xff]  }
 0x556   :  { %12182 = vst [vmem:[#allocation50_spill] sm:$0xff] %v11037_v7 }
 0x558   :  { %4966 = vmatpush1.bf16.msra.mxu0 %v10958_v61  ;;  %5007 = vmatpush1.bf16.msra.mxu1 %v10960_v62  ;;  %v10984_v62 = vld [vmem:[#allocation8 + $0xa8] ss:$16 sps:$4 sm:$0xff]   ;;  %v11034_v61 = vld [vmem:[#allocation8 + $0x144] ss:$16 sps:$4 sm:$0xff]  }
 0x559   :  { %4967 = vmatprep.subr.bf16.mxu0 %v10966_v28  ;;  %5008 = vmatprep.subr.bf16.mxu1 %v10968_v4  ;;  %12164 = vst [vmem:[#allocation30_spill] sm:$0xff] %v10984_v62  ;;  %v10990_v4 = vld [vmem:[#allocation8 + $0xc4] ss:$16 sps:$4 sm:$0xff]   ;;  %v10996_v28 = vld [vmem:[#allocation8 + $0xc8] ss:$16 sps:$4 sm:$0xff]   ;;  %12181 = vst [vmem:[#allocation49_spill] sm:$0xff] %v11034_v61 }
 0x55a   :  { %12165 = vst [vmem:[#allocation31_spill] sm:$0xff] %v10990_v4  ;;  %12168 = vst [vmem:[#allocation34_spill] sm:$0xff] %v10996_v28 }
 0x55c   :  { %4968 = vmatpush1.bf16.msra.mxu0 %v10970_v6  ;;  %5009 = vmatpush1.bf16.msra.mxu1 %v10972_v11  ;;  %v10992_v6 = vld [vmem:[#allocation8 + $0xcc] ss:$16 sps:$4 sm:$0xff]   ;;  %v10994_v11 = vld [vmem:[#allocation8 + $0xc0] ss:$16 sps:$4 sm:$0xff]  }
 0x55d   :  { %4969 = vmatprep.subr.bf16.mxu0 %v10978_v16  ;;  %5010 = vmatprep.subr.bf16.mxu1 %v10980_v22  ;;  %12166 = vst [vmem:[#allocation32_spill] sm:$0xff] %v10992_v6  ;;  %12167 = vst [vmem:[#allocation33_spill] sm:$0xff] %v10994_v11  ;;  %v11002_v22 = vld [vmem:[#allocation8 + $0xe4] ss:$16 sps:$4 sm:$0xff]   ;;  %v11008_v16 = vld [vmem:[#allocation8 + $0xe8] ss:$16 sps:$4 sm:$0xff]  }
 0x55e   :  { %12169 = vst [vmem:[#allocation35_spill] sm:$0xff] %v11002_v22  ;;  %12172 = vst [vmem:[#allocation40_spill] sm:$0xff] %v11008_v16 }
 0x560   :  { %4970 = vmatpush1.bf16.msra.mxu0 %v10982_v55  ;;  %5011 = vmatpush1.bf16.msra.mxu1 %v10984_v62  ;;  %v11004_v55 = vld [vmem:[#allocation8 + $0xec] ss:$16 sps:$4 sm:$0xff]   ;;  %v11006_v62 = vld [vmem:[#allocation8 + $0xe0] ss:$16 sps:$4 sm:$0xff]  }
 0x561   :  { %4971 = vmatprep.subr.bf16.mxu0 %v10990_v4  ;;  %5012 = vmatprep.subr.bf16.mxu1 %v10992_v6  ;;  %12170 = vst [vmem:[#allocation39_spill] sm:$0xff] %v11004_v55  ;;  %12171 = vst [vmem:[#allocation37_spill] sm:$0xff] %v11006_v62  ;;  %v11014_v6 = vld [vmem:[#allocation8 + $0x104] ss:$16 sps:$4 sm:$0xff]   ;;  %v11020_v4 = vld [vmem:[#allocation8 + $0x108] ss:$16 sps:$4 sm:$0xff]  }
 0x562   :  { %12173 = vst [vmem:[#allocation41_spill] sm:$0xff] %v11014_v6  ;;  %12176 = vst [vmem:[#allocation44_spill] sm:$0xff] %v11020_v4 }
 0x564   :  { %4972 = vmatpush1.bf16.msra.mxu0 %v10994_v11  ;;  %5013 = vmatpush1.bf16.msra.mxu1 %v10996_v28  ;;  %v11016_v11 = vld [vmem:[#allocation8 + $0x10c] ss:$16 sps:$4 sm:$0xff]   ;;  %v11018_v28 = vld [vmem:[#allocation8 + $0x100] ss:$16 sps:$4 sm:$0xff]  }
 0x565   :  { %4973 = vmatprep.subr.bf16.mxu0 %v11002_v22  ;;  %5014 = vmatprep.subr.bf16.mxu1 %v11004_v55  ;;  %12174 = vst [vmem:[#allocation42_spill] sm:$0xff] %v11016_v11  ;;  %12175 = vst [vmem:[#allocation43_spill] sm:$0xff] %v11018_v28  ;;  %v11026_v55 = vld [vmem:[#allocation8 + $0x120] ss:$16 sps:$4 sm:$0xff]   ;;  %v11032_v22 = vld [vmem:[#allocation8 + $0x12c] ss:$16 sps:$4 sm:$0xff]  }
 0x566   :  { %12177 = vst [vmem:[#allocation46_spill] sm:$0xff] %v11026_v55  ;;  %12180 = vst [vmem:[#allocation47_spill] sm:$0xff] %v11032_v22 }
 0x568   :  { %4974 = vmatpush1.bf16.msra.mxu0 %v11006_v62  ;;  %5015 = vmatpush1.bf16.msra.mxu1 %v11008_v16  ;;  %v11028_v62 = vld [vmem:[#allocation8 + $0x124] ss:$16 sps:$4 sm:$0xff]   ;;  %v11030_v16 = vld [vmem:[#allocation8 + $0x128] ss:$16 sps:$4 sm:$0xff]  }
 0x569   :  { %4975 = vmatprep.subr.bf16.mxu0 %v11014_v6  ;;  %5016 = vmatprep.subr.bf16.mxu1 %v11016_v11  ;;  %12178 = vst [vmem:[#allocation48_spill] sm:$0xff] %v11028_v62  ;;  %12179 = vst [vmem:[#allocation45_spill] sm:$0xff] %v11030_v16  ;;  %v11047_v11 = vld [vmem:[#allocation8 + $0x164] ss:$16 sps:$4 sm:$0xff]   ;;  %v11050_v6 = vld [vmem:[#allocation8 + $0x16c] ss:$16 sps:$4 sm:$0xff]  }
 0x56a   :  { %12185 = vst [vmem:[#allocation53_spill] sm:$0xff] %v11047_v11  ;;  %12186 = vst [vmem:[#allocation54_spill] sm:$0xff] %v11050_v6 }
 0x56c   :  { %4976 = vmatpush1.bf16.msra.mxu0 %v11018_v28  ;;  %5017 = vmatpush1.bf16.msra.mxu1 %v11020_v4  ;;  %v11041_v28 = vld [vmem:[#allocation8 + $0x140] ss:$16 sps:$4 sm:$0xff]   ;;  %v11045_v4 = vld [vmem:[#allocation8 + $0x148] ss:$16 sps:$4 sm:$0xff]  }
 0x56d   :  { %4977 = vmatprep.subr.bf16.mxu0 %v11028_v62  ;;  %5018 = vmatprep.subr.bf16.mxu1 %v11032_v22  ;;  %12183 = vst [vmem:[#allocation51_spill] sm:$0xff] %v11041_v28  ;;  %12184 = vst [vmem:[#allocation52_spill] sm:$0xff] %v11045_v4  ;;  %v11053_v62 = vld [vmem:[#allocation8 + $0x160] ss:$16 sps:$4 sm:$0xff]  }
 0x56e   :  { %12187 = vst [vmem:[#allocation55_spill] sm:$0xff] %v11053_v62 }
 0x570   :  { %4978 = vmatpush1.bf16.msra.mxu0 %v11026_v55  ;;  %5019 = vmatpush1.bf16.msra.mxu1 %v11030_v16  ;;  %v11057_v55 = vld [vmem:[#allocation8 + $0x168] ss:$16 sps:$4 sm:$0xff]   ;;  %v11059_v16 = vld [vmem:[#allocation8 + $0x184] ss:$16 sps:$4 sm:$0xff]  }
 0x571   :  { %4979 = vmatprep.subr.bf16.mxu0 %v11034_v61  ;;  %5020 = vmatprep.subr.bf16.mxu1 %v11037_v7  ;;  %12188 = vst [vmem:[#allocation56_spill] sm:$0xff] %v11057_v55  ;;  %12189 = vst [vmem:[#allocation57_spill] sm:$0xff] %v11059_v16  ;;  %v11062_v61 = vld [vmem:[#allocation8 + $0x18c] ss:$16 sps:$4 sm:$0xff]   ;;  %v11065_v7 = vld [vmem:[#allocation8 + $0x180] ss:$16 sps:$4 sm:$0xff]  }
 0x572   :  { %12190 = vst [vmem:[#allocation58_spill] sm:$0xff] %v11062_v61  ;;  %12191 = vst [vmem:[#allocation59_spill] sm:$0xff] %v11065_v7 }
 0x574   :  { %4980 = vmatpush1.bf16.msra.mxu0 %v11041_v28  ;;  %5021 = vmatpush1.bf16.msra.mxu1 %v11045_v4  ;;  %v11069_v28 = vld [vmem:[#allocation8 + $0x188] ss:$16 sps:$4 sm:$0xff]   ;;  %v11071_v4 = vld [vmem:[#allocation8 + $0x1a4] ss:$16 sps:$4 sm:$0xff]  }
 0x575   :  { %4981 = vmatprep.subr.bf16.mxu0 %v11047_v11  ;;  %5022 = vmatprep.subr.bf16.mxu1 %v11050_v6  ;;  %12192 = vst [vmem:[#allocation60_spill] sm:$0xff] %v11069_v28  ;;  %12193 = vst [vmem:[#allocation61_spill] sm:$0xff] %v11071_v4  ;;  %v11074_v11 = vld [vmem:[#allocation8 + $0x1ac] ss:$16 sps:$4 sm:$0xff]   ;;  %v11077_v6 = vld [vmem:[#allocation8 + $0x1a0] ss:$16 sps:$4 sm:$0xff]  }
 0x576   :  { %12194 = vst [vmem:[#allocation62_spill] sm:$0xff] %v11074_v11  ;;  %12195 = vst [vmem:[#allocation63_spill] sm:$0xff] %v11077_v6 }
 0x578   :  { %4982 = vmatpush1.bf16.msra.mxu0 %v11053_v62  ;;  %5023 = vmatpush1.bf16.msra.mxu1 %v11057_v55  ;;  %v11081_v62 = vld [vmem:[#allocation8 + $0x1a8] ss:$16 sps:$4 sm:$0xff]   ;;  %v11083_v55 = vld [vmem:[#allocation8 + $0x1c4] ss:$16 sps:$4 sm:$0xff]  }
 0x579   :  { %4983 = vmatprep.subr.bf16.mxu0 %v11059_v16  ;;  %5024 = vmatprep.subr.bf16.mxu1 %v11062_v61  ;;  %12196 = vst [vmem:[#allocation64_spill] sm:$0xff] %v11081_v62  ;;  %12197 = vst [vmem:[#allocation65_spill] sm:$0xff] %v11083_v55  ;;  %v11086_v16 = vld [vmem:[#allocation8 + $0x1cc] ss:$16 sps:$4 sm:$0xff]   ;;  %v11089_v61 = vld [vmem:[#allocation8 + $0x1c0] ss:$16 sps:$4 sm:$0xff]  }
 0x57a   :  { %12198 = vst [vmem:[#allocation66_spill] sm:$0xff] %v11086_v16  ;;  %12199 = vst [vmem:[#allocation67_spill] sm:$0xff] %v11089_v61 }
 0x57c   :  { %4984 = vmatpush1.bf16.msra.mxu0 %v11065_v7  ;;  %5025 = vmatpush1.bf16.msra.mxu1 %v11069_v28  ;;  %v11093_v7 = vld [vmem:[#allocation8 + $0x1c8] ss:$16 sps:$4 sm:$0xff]   ;;  %v11095_v28 = vld [vmem:[#allocation8 + $0x1e4] ss:$16 sps:$4 sm:$0xff]  }
 0x57d   :  { %4985 = vmatprep.subr.bf16.mxu0 %v11071_v4  ;;  %5026 = vmatprep.subr.bf16.mxu1 %v11074_v11  ;;  %12200 = vst [vmem:[#allocation68_spill] sm:$0xff] %v11093_v7  ;;  %12201 = vst [vmem:[#allocation69_spill] sm:$0xff] %v11095_v28  ;;  %v11098_v4 = vld [vmem:[#allocation8 + $0x1ec] ss:$16 sps:$4 sm:$0xff]   ;;  %v11101_v11 = vld [vmem:[#allocation8 + $0x1e0] ss:$16 sps:$4 sm:$0xff]  }
 0x57e   :  { %12202 = vst [vmem:[#allocation70_spill] sm:$0xff] %v11098_v4  ;;  %12203 = vst [vmem:[#allocation71_spill] sm:$0xff] %v11101_v11 }
 0x580   :  { %4986 = vmatpush1.bf16.msra.mxu0 %v11077_v6  ;;  %5027 = vmatpush1.bf16.msra.mxu1 %v11081_v62  ;;  %v11105_v6 = vld [vmem:[#allocation8 + $0x1e8] ss:$16 sps:$4 sm:$0xff]  }
 0x581   :  { %4987 = vmatprep.subr.bf16.mxu0 %v11083_v55  ;;  %5028 = vmatprep.subr.bf16.mxu1 %v11086_v16  ;;  %12204 = vst [vmem:[#allocation72_spill] sm:$0xff] %v11105_v6 }
 0x584   :  { %4988 = vmatpush1.bf16.msra.mxu0 %v11089_v61  ;;  %5029 = vmatpush1.bf16.msra.mxu1 %v11093_v7  ;;  %v3668_v61 = vld [vmem:[%s11761_s5] sm:$0xf] }
 0x585   :  { %4989 = vmatprep.subr.bf16.mxu0 %v11095_v28  ;;  %5030 = vmatprep.subr.bf16.mxu1 %v11098_v4  ;;  %v3673_v7 = vrot.slane %v3668_v61, %v12145_v12  ;;  %v3677_v28 = vrot.slane %v3668_v61, %v12146_v14  ;;  %v3685_v2 = vrot.slane %v3668_v61, %v12027_v36 }
 0x586   :  { %v3681_v12 = vrot.slane %v3668_v61, %v12028_v30 }
 0x588   :  { %4990 = vmatpush1.bf16.msra.mxu0 %v11101_v11  ;;  %5031 = vmatpush1.bf16.msra.mxu1 %v11105_v6 }
 0x589   :  { %5298 = vmatprep.subr.bf16.mxu0 %v10783_v8  ;;  %5339 = vmatprep.subr.bf16.mxu1 %v10785_v9 }
 0x5fe   :  { %v4044_v16 = vpop.f32.mrb[36].mxu0  ;;  %v4085_v55 = vpop.f32.mrb[36].mxu1 }
 0x5ff   :  { %v4045_v62 = vadd.f32 %v4044_v16, %v3673_v7  ;;  %v4046_v4 = vpop.f32.mrb[37].mxu0  ;;  %v4087_v22 = vpop.f32.mrb[37].mxu1  ;;  %v4086_v14 = vadd.f32 %v4085_v55, %v3681_v12 }
 0x600   :  { %v4047_v11 = vadd.f32 %v4046_v4, %v3677_v28  ;;  %v4048_v56 = vpop.f32.mrb[38].mxu0  ;;  %v4089_v6 = vpop.f32.mrb[38].mxu1  ;;  %v4088_v52 = vadd.f32 %v4087_v22, %v3685_v2 }
 0x601   :  { %v8375_v41 = vmul.f32 -1.442695, %v4045_v62  ;;  %v4049_v8 = vpop.f32.mrb[39].mxu0  ;;  %v4090_v59 = vpop.f32.mrb[39].mxu1 }
 0x602   :  { %v8376_v9 = vmul.f32 -1.442695, %v4047_v11  ;;  %v8377_v1 = vmul.f32 -1.442695, %v4088_v52 }
 0x603   :  { %9567 = vpow2.f32 %v8375_v41 }
 0x604   :  { %9569 = vpow2.f32 %v8376_v9 }
 0x605   :  { %9571 = vtanh.f32 %v4086_v14 }
 0x606   :  { %9573 = vpow2.f32 %v8377_v1 }
 0x60d   :  { %v9568_v60 = vpop.eup %9567 }
 0x60e   :  { %v9570_v7 = vpop.eup %9569  ;;  %v4095_v16 = vadd.f32 1.0, %v9568_v60 }
 0x60f   :  { %v4101_v28 = vadd.f32 1.0, %v9570_v7  ;;  %v9572_v56 = vpop.eup %9571 }
 0x610   :  { %9575 = vrcp.f32 %v4095_v16  ;;  %v9574_v59 = vpop.eup %9573 }
 0x611   :  { %9577 = vrcp.f32 %v4101_v28  ;;  %v4108_v11 = vadd.f32 1.0, %v9574_v59 }
 0x61a   :  { %v9576_v62 = vpop.eup %9575 }
 0x61b   :  { %v9578_v41 = vpop.eup %9577  ;;  %v4112_v4 = vmul.f32 %v9576_v62, %v9572_v56  ;;  %v4144_v62 = vld [vmem:[#allocation2 + $0x4] ss:$8 sm:$0xf] }
 0x61c   :  { %v4111_v6 = vmul.f32 %v9578_v41, %v10797_v18  ;;  %v4146_v41 = vld [vmem:[#allocation2 + $0x24] ss:$8 sm:$0xf] }
 0x61e   :  { %v11120_v61 = vadd.f32 %v4112_v4, %v4111_v6  ;;  %v4383_v12 = vpop.f32.mrb[40].mxu0  ;;  %v4424_v52 = vpop.f32.mrb[40].mxu1 }
 0x61f   :  { %v4385_v2 = vpop.f32.mrb[41].mxu0  ;;  %v4426_v22 = vpop.f32.mrb[41].mxu1 }
 0x620   :  { %v4435_v60 = vcombine.low %v4383_v12, %v4385_v2  ;;  %v4436_v14 = vcombine.low %v4424_v52, %v4426_v22  ;;  %v4387_v55 = vpop.f32.mrb[42].mxu0  ;;  %v4428_v1 = vpop.f32.mrb[42].mxu1  ;;  %9579 = vtanh.f32 %v11120_v61 }
 0x621   :  { %9581 = vrcp.f32 %v4108_v11  ;;  %v4388_v8 = vpop.f32.mrb[43].mxu0  ;;  %v4429_v9 = vpop.f32.mrb[43].mxu1 }
 0x622   :  { %v4443_v7 = vrot.slane %v4435_v60, %v10237_v20  ;;  %v4450_v18 = vrot.slane %v4436_v14, %v10237_v20 }
 0x624   :  { %v4451_v16 = vcombine.low %v4443_v7, %v4450_v18  ;;  %v4452_v28 = vcombine.high %v4443_v7, %v4450_v18 }
 0x626   :  { %v4459_v56 = vrot.slane %v4451_v16, %v10237_v20  ;;  %v4466_v59 = vrot.slane %v4452_v28, %v10237_v20 }
 0x628   :  { %v4469_v4 = vadd.f32 %v4459_v56, %v4144_v62  ;;  %v4470_v6 = vadd.f32 %v4466_v59, %v4146_v41 }
 0x62a   :  { %v9580_v12 = vpop.eup %9579  ;;  %v8410_v52 = vmul.f32 -1.442695, %v4469_v4  ;;  %v8411_v2 = vmul.f32 -1.442695, %v4470_v6  ;;  %v4485_v11 = vrot.slane %v4469_v4, 1  ;;  %v4486_v22 = vrot.slane %v4470_v6, 1 }
 0x62b   :  { %v9582_v55 = vpop.eup %9581  ;;  %v4507_v7 = vrot.slane %v4469_v4, 3  ;;  %v4508_v18 = vrot.slane %v4470_v6, 3  ;;  %v4501_v56 = vrot.slane %v4469_v4, 2  ;;  %v4502_v59 = vrot.slane %v4470_v6, 2 }
 0x62c   :  { %9583 = vpow2.f32 %v8410_v52  ;;  %v8412_v60 = vmul.f32 -1.442695, %v4485_v11  ;;  %v8413_v1 = vmul.f32 -1.442695, %v4486_v22  ;;  %v4115_v14 = vmul.f32 %v9582_v55, %v9580_v12 }
 0x62d   :  { %9585 = vpow2.f32 %v8411_v2  ;;  %v8414_v41 = vmul.f32 -1.442695, %v4507_v7  ;;  %v8415_v12 = vmul.f32 -1.442695, %v4508_v18 }
 0x62e   :  { %9587 = vpow2.f32 %v8412_v60  ;;  %v4123_v8 = vrot.slane %v4115_v14, %v10237_v20  ;;  %v4552_v9 = vpack.c.bf16 %v4115_v14, %v4115_v14 }
 0x62f   :  { %9589 = vpow2.f32 %v8413_v1 }
 0x630   :  { %v4124_v16 = vcombine.high %v4123_v8, %v4123_v8  ;;  %v4131_v28 = vrot.slane %v4123_v8, %v10237_v20  ;;  %4991 = vmatprep.mubr.bf16.mxu0 %v4552_v9  ;;  %5032 = vmatprep.mubr.bf16.mxu1 %v4552_v9  ;;  %9591 = vtanh.f32 %v4501_v56 }
 0x631   :  { %9593 = vtanh.f32 %v4502_v59 }
 0x632   :  { %v4138_v62 = vrot.slane %v4124_v16, %v10237_v20  ;;  %4141 = vst.msk [vmem:[%s11762_s6 + $0x3] sm:$0x1] %vm1292_vm2, %v4131_v28  ;;  %9595 = vpow2.f32 %v8414_v41 }
 0x633   :  { %9597 = vpow2.f32 %v8415_v12 }
 0x634   :  { %4142 = vst.msk [vmem:[%s11762_s6 + $0xb] sm:$0x1] %vm1292_vm2, %v4138_v62 }
 0x636   :  { %v9584_v52 = vpop.eup %9583 }
 0x637   :  { %v9586_v2 = vpop.eup %9585  ;;  %v4477_v4 = vadd.f32 1.0, %v9584_v52 }
 0x638   :  { %v9588_v6 = vpop.eup %9587  ;;  %v4478_v11 = vadd.f32 1.0, %v9586_v2 }
 0x639   :  { %v9590_v22 = vpop.eup %9589  ;;  %9599 = vrcp.f32 %v4477_v4  ;;  %v4495_v55 = vadd.f32 1.0, %v9588_v6 }
 0x63a   :  { %9601 = vrcp.f32 %v4478_v11  ;;  %v4496_v60 = vadd.f32 1.0, %v9590_v22  ;;  %v9592_v1 = vpop.eup %9591 }
 0x63b   :  { %9603 = vrcp.f32 %v4495_v55  ;;  %v9594_v14 = vpop.eup %9593 }
 0x63c   :  { %9605 = vrcp.f32 %v4496_v60  ;;  %v9596_v8 = vpop.eup %9595 }
 0x63d   :  { %v9598_v9 = vpop.eup %9597  ;;  %v4517_v16 = vadd.f32 1.0, %v9596_v8 }
 0x63e   :  { %v4518_v56 = vadd.f32 1.0, %v9598_v9 }
 0x63f   :  { %9607 = vrcp.f32 %v4517_v16 }
 0x640   :  { %9609 = vrcp.f32 %v4518_v56 }
 0x643   :  { %v9600_v7 = vpop.eup %9599 }
 0x644   :  { %v9602_v18 = vpop.eup %9601  ;;  %v4525_v62 = vmul.f32 %v9600_v7, %v9592_v1 }
 0x645   :  { %v9604_v28 = vpop.eup %9603  ;;  %v4526_v12 = vmul.f32 %v9602_v18, %v9594_v14 }
 0x646   :  { %v9606_v59 = vpop.eup %9605  ;;  %v4523_v41 = vmul.f32 %v9604_v28, %v10817_v51 }
 0x647   :  { %v4524_v52 = vmul.f32 %v9606_v59, %v10819_v5  ;;  %v12240_v59 = vld [vmem:[#allocation50_spill] sm:$0xff] }
 0x648   :  { %v11140_v2 = vadd.f32 %v4525_v62, %v4523_v41  ;;  %v12241_v62 = vld [vmem:[#allocation51_spill] sm:$0xff]  ;;  %v12242_v41 = vld [vmem:[#allocation52_spill] sm:$0xff] }
 0x649   :  { %v11142_v4 = vadd.f32 %v4526_v12, %v4524_v52  ;;  %v9608_v6 = vpop.eup %9607  ;;  %v12243_v12 = vld [vmem:[#allocation53_spill] sm:$0xff]  ;;  %v12244_v52 = vld [vmem:[#allocation54_spill] sm:$0xff] }
 0x64a   :  { %9611 = vtanh.f32 %v11140_v2  ;;  %v9610_v11 = vpop.eup %9609 }
 0x64b   :  { %9613 = vtanh.f32 %v11142_v4 }
 0x654   :  { %v9612_v22 = vpop.eup %9611 }
 0x655   :  { %v9614_v55 = vpop.eup %9613  ;;  %v4531_v60 = vmul.f32 %v9612_v22, %v9608_v6  ;;  %v12245_v6 = vld [vmem:[#allocation55_spill] sm:$0xff]  ;;  %v12247_v22 = vld [vmem:[#allocation57_spill] sm:$0xff] }
 0x656   :  { %v4532_v1 = vmul.f32 %v9614_v55, %v9610_v11  ;;  %v12246_v11 = vld [vmem:[#allocation56_spill] sm:$0xff]  ;;  %v12248_v55 = vld [vmem:[#allocation58_spill] sm:$0xff] }
 0x657   :  { %v5096_v14 = vpack.c.bf16 %v4531_v60, %v4531_v60 }
 0x658   :  { %v4535_v51 = vcombine.low %v4531_v60, %v4532_v1  ;;  %v5097_v8 = vpack.c.bf16 %v4532_v1, %v4532_v1  ;;  %v12249_v60 = vld [vmem:[#allocation59_spill] sm:$0xff]  ;;  %v12250_v1 = vld [vmem:[#allocation60_spill] sm:$0xff] }
 0x659   :  { %v5132_v18 = vunpack.c.l.b16 %v5096_v14  ;;  %v12252_v14 = vld [vmem:[#allocation62_spill] sm:$0xff] }
 0x65a   :  { %v4542_v5 = vrot.slane %v4535_v51, %v10237_v20  ;;  %v5133_v9 = vunpack.c.l.b16 %v5097_v8  ;;  %v12251_v51 = vld [vmem:[#allocation61_spill] sm:$0xff]  ;;  %v12253_v8 = vld [vmem:[#allocation63_spill] sm:$0xff] }
 0x65c   :  { %v4549_v7 = vrot.slane %v4542_v5, %v10237_v20  ;;  %v5134_v16 = vrot.slane %v5133_v9, 7  ;;  %v12254_v5 = vld [vmem:[#allocation64_spill] sm:$0xff]  ;;  %v12255_v9 = vld [vmem:[#allocation65_spill] sm:$0xff] }
 0x65e   :  { %v4551_v28 = vpack.c.bf16 %v4549_v7, %v4549_v7  ;;  %v5135_v56 = vsel %vm1338_vm1, %v5134_v16, %v5132_v18  ;;  %v12256_v7 = vld [vmem:[#allocation66_spill] sm:$0xff]  ;;  %v12257_v18 = vld [vmem:[#allocation67_spill] sm:$0xff]  ;;  %v12258_v16 = vld [vmem:[#allocation68_spill] sm:$0xff] }
 0x660   :  { %4992 = vmatmul.mubr.bf16.vlgmr.msra.gmra.mrb[44].mxu0 %v4551_v28  ;;  %5033 = vmatmul.mubr.bf16.vlgmr.msra.gmra.mrb[44].mxu1 %v4551_v28  ;;  %v12259_v28 = vld [vmem:[#allocation69_spill] sm:$0xff] }
 0x661   :  { %5299 = vmatpush1.bf16.msra.mxu0 %v10825_v13  ;;  %5340 = vmatpush1.bf16.msra.mxu1 %v10827_v15  ;;  %v5136_v13 = vpack.c.b16 %v5135_v56, %v5135_v56  ;;  %v12205_v15 = vld [vmem:[#allocation15_spill] sm:$0xff]  ;;  %v12260_v56 = vld [vmem:[#allocation70_spill] sm:$0xff] }
 0x662   :  { %5300 = vmatprep.subr.bf16.mxu0 %v10829_v17  ;;  %5341 = vmatprep.subr.bf16.mxu1 %v10831_v19  ;;  %v12206_v17 = vld [vmem:[#allocation13_spill] sm:$0xff]  ;;  %v12207_v19 = vld [vmem:[#allocation14_spill] sm:$0xff] }
 0x663   :  { %5330 = vmatprep.mubr.bf16.mxu0 %v12002_v37  ;;  %5371 = vmatprep.mubr.bf16.mxu1 %v12002_v37 }
 0x665   :  { %5301 = vmatpush1.bf16.msra.mxu0 %v10836_v35  ;;  %5342 = vmatpush1.bf16.msra.mxu1 %v10838_v27  ;;  %v12208_v35 = vld [vmem:[#allocation16_spill] sm:$0xff]  ;;  %v12209_v27 = vld [vmem:[#allocation17_spill] sm:$0xff] }
 0x666   :  { %5302 = vmatprep.subr.bf16.mxu0 %v10842_v32  ;;  %5343 = vmatprep.subr.bf16.mxu1 %v10844_v29  ;;  %v12210_v32 = vld [vmem:[#allocation18_spill] sm:$0xff]  ;;  %v12211_v29 = vld [vmem:[#allocation19_spill] sm:$0xff] }
 0x669   :  { %5303 = vmatpush1.bf16.msra.mxu0 %v10850_v31  ;;  %5344 = vmatpush1.bf16.msra.mxu1 %v10852_v38  ;;  %v12212_v31 = vld [vmem:[#allocation20_spill] sm:$0xff]  ;;  %v12213_v38 = vld [vmem:[#allocation21_spill] sm:$0xff] }
 0x66a   :  { %5304 = vmatprep.subr.bf16.mxu0 %v10856_v21  ;;  %5345 = vmatprep.subr.bf16.mxu1 %v10858_v40  ;;  %v12214_v21 = vld [vmem:[#allocation22_spill] sm:$0xff]  ;;  %v12215_v40 = vld [vmem:[#allocation23_spill] sm:$0xff] }
 0x66d   :  { %5305 = vmatpush1.bf16.msra.mxu0 %v10862_v34  ;;  %5346 = vmatpush1.bf16.msra.mxu1 %v10864_v39  ;;  %v12216_v34 = vld [vmem:[#allocation24_spill] sm:$0xff]  ;;  %v12217_v39 = vld [vmem:[#allocation25_spill] sm:$0xff] }
 0x66e   :  { %5306 = vmatprep.subr.bf16.mxu0 %v10868_v24  ;;  %5347 = vmatprep.subr.bf16.mxu1 %v10870_v0  ;;  %v12218_v24 = vld [vmem:[#allocation26_spill] sm:$0xff]  ;;  %v12219_v0 = vld [vmem:[#allocation27_spill] sm:$0xff] }
 0x671   :  { %5307 = vmatpush1.bf16.msra.mxu0 %v10874_v25  ;;  %5348 = vmatpush1.bf16.msra.mxu1 %v10876_v23  ;;  %v12220_v25 = vld [vmem:[#allocation28_spill] sm:$0xff]  ;;  %v12221_v23 = vld [vmem:[#allocation29_spill] sm:$0xff] }
 0x672   :  { %5308 = vmatprep.subr.bf16.mxu0 %v10880_v26  ;;  %5349 = vmatprep.subr.bf16.mxu1 %v10882_v42  ;;  %v12222_v26 = vld [vmem:[#allocation30_spill] sm:$0xff]  ;;  %v12223_v42 = vld [vmem:[#allocation31_spill] sm:$0xff] }
 0x675   :  { %5309 = vmatpush1.bf16.msra.mxu0 %v10886_v43  ;;  %5350 = vmatpush1.bf16.msra.mxu1 %v10888_v45  ;;  %v12224_v43 = vld [vmem:[#allocation32_spill] sm:$0xff]  ;;  %v12225_v45 = vld [vmem:[#allocation33_spill] sm:$0xff] }
 0x676   :  { %5310 = vmatprep.subr.bf16.mxu0 %v10892_v46  ;;  %5351 = vmatprep.subr.bf16.mxu1 %v10894_v47  ;;  %v12226_v46 = vld [vmem:[#allocation34_spill] sm:$0xff]  ;;  %v12227_v47 = vld [vmem:[#allocation35_spill] sm:$0xff] }
 0x679   :  { %5311 = vmatpush1.bf16.msra.mxu0 %v10898_v48  ;;  %5352 = vmatpush1.bf16.msra.mxu1 %v10900_v49  ;;  %v12228_v48 = vld [vmem:[#allocation39_spill] sm:$0xff]  ;;  %v12229_v49 = vld [vmem:[#allocation37_spill] sm:$0xff] }
 0x67a   :  { %5312 = vmatprep.subr.bf16.mxu0 %v10904_v50  ;;  %5353 = vmatprep.subr.bf16.mxu1 %v10906_v57  ;;  %v12230_v50 = vld [vmem:[#allocation40_spill] sm:$0xff]  ;;  %v12231_v57 = vld [vmem:[#allocation41_spill] sm:$0xff] }
 0x67d   :  { %5313 = vmatpush1.bf16.msra.mxu0 %v10910_v58  ;;  %5354 = vmatpush1.bf16.msra.mxu1 %v10912_v33  ;;  %v12232_v58 = vld [vmem:[#allocation42_spill] sm:$0xff]  ;;  %v12233_v33 = vld [vmem:[#allocation43_spill] sm:$0xff] }
 0x67e   :  { %5908 = vmatprep.subr.bf16.mxu0 %v10920_v3  ;;  %5949 = vmatprep.subr.bf16.mxu1 %v10924_v44  ;;  %v12235_v3 = vld [vmem:[#allocation48_spill] sm:$0xff]  ;;  %v12237_v44 = vld [vmem:[#allocation46_spill] sm:$0xff] }
 0x680   :  { %5331 = vmatmul.mubr.bf16.vlgmr.msra.gmra.mrb[48].mxu0 %v5136_v13  ;;  %5372 = vmatmul.mubr.bf16.vlgmr.msra.gmra.mrb[48].mxu1 %v5136_v13  ;;  %v12261_v13 = vld [vmem:[#allocation71_spill] sm:$0xff] }
 0x681   :  { %5909 = vmatpush1.bf16.msra.mxu0 %v10918_v63  ;;  %5950 = vmatpush1.bf16.msra.mxu1 %v10922_v10  ;;  %v12234_v63 = vld [vmem:[#allocation44_spill] sm:$0xff]  ;;  %v12236_v10 = vld [vmem:[#allocation47_spill] sm:$0xff] }
 0x682   :  { %5910 = vmatprep.subr.bf16.mxu0 %v10930_v53  ;;  %5951 = vmatprep.subr.bf16.mxu1 %v10932_v54  ;;  %v12238_v53 = vld [vmem:[#allocation45_spill] sm:$0xff] }
 0x683   :  { %v12239_v54 = vld [vmem:[#allocation49_spill] sm:$0xff] }
 0x685   :  { %5911 = vmatpush1.bf16.msra.mxu0 %v12205_v15  ;;  %5952 = vmatpush1.bf16.msra.mxu1 %v12206_v17  ;;  %v12262_v15 = vld [vmem:[#allocation72_spill] sm:$0xff]  ;;  %v11245_v17 = vld [vmem:[#allocation7 + $0x4] ss:$16 sps:$4 sm:$0xff]  }
 0x686   :  { %5912 = vmatprep.subr.bf16.mxu0 %v12207_v19  ;;  %5953 = vmatprep.subr.bf16.mxu1 %v12208_v35  ;;  %v11247_v19 = vld [vmem:[#allocation7 + $0xc] ss:$16 sps:$4 sm:$0xff]   ;;  %v4617_v35 = vld [vmem:[%s11761_s5] sm:$0xf] }
 0x689   :  { %5913 = vmatpush1.bf16.msra.mxu0 %v12209_v27  ;;  %5954 = vmatpush1.bf16.msra.mxu1 %v12210_v32  ;;  %v12263_v27 = vld [vmem:[#allocation36_spill] sm:$0xff] }
 0x68a   :  { %5914 = vmatprep.subr.bf16.mxu0 %v12211_v29  ;;  %5955 = vmatprep.subr.bf16.mxu1 %v12212_v31  ;;  %v4622_v32 = vrot.slane %v4617_v35, %v12263_v27  ;;  %v12264_v29 = vld [vmem:[#allocation38_spill] sm:$0xff] }
 0x68b   :  { %v4626_v31 = vrot.slane %v4617_v35, %v12264_v29 }
 0x68d   :  { %5915 = vmatpush1.bf16.msra.mxu0 %v12213_v38  ;;  %5956 = vmatpush1.bf16.msra.mxu1 %v12214_v21 }
 0x68e   :  { %5916 = vmatprep.subr.bf16.mxu0 %v12215_v40  ;;  %5957 = vmatprep.subr.bf16.mxu1 %v12216_v34 }
 0x691   :  { %5917 = vmatpush1.bf16.msra.mxu0 %v12217_v39  ;;  %5958 = vmatpush1.bf16.msra.mxu1 %v12218_v24 }
 0x692   :  { %5918 = vmatprep.subr.bf16.mxu0 %v12219_v0  ;;  %5959 = vmatprep.subr.bf16.mxu1 %v12220_v25 }
 0x695   :  { %5919 = vmatpush1.bf16.msra.mxu0 %v12221_v23  ;;  %5960 = vmatpush1.bf16.msra.mxu1 %v12222_v26 }
 0x696   :  { %5920 = vmatprep.subr.bf16.mxu0 %v12223_v42  ;;  %5961 = vmatprep.subr.bf16.mxu1 %v12224_v43 }
 0x699   :  { %5921 = vmatpush1.bf16.msra.mxu0 %v12225_v45  ;;  %5962 = vmatpush1.bf16.msra.mxu1 %v12226_v46  ;;  %v4634_v45 = vrot.slane %v4617_v35, %v12027_v36  ;;  %v4630_v46 = vrot.slane %v4617_v35, %v12028_v30 }
 0x69a   :  { %5922 = vmatprep.subr.bf16.mxu0 %v12227_v47  ;;  %5963 = vmatprep.subr.bf16.mxu1 %v12228_v48 }
 0x69d   :  { %5923 = vmatpush1.bf16.msra.mxu0 %v12229_v49  ;;  %5964 = vmatpush1.bf16.msra.mxu1 %v12230_v50 }
 0x69e   :  { %5924 = vmatprep.subr.bf16.mxu0 %v12231_v57  ;;  %5965 = vmatprep.subr.bf16.mxu1 %v12232_v58 }
 0x6a1   :  { %5925 = vmatpush1.bf16.msra.mxu0 %v12233_v33  ;;  %5966 = vmatpush1.bf16.msra.mxu1 %v12234_v63 }
 0x6a2   :  { %5926 = vmatprep.subr.bf16.mxu0 %v12235_v3  ;;  %5967 = vmatprep.subr.bf16.mxu1 %v12236_v10 }
 0x6a5   :  { %5927 = vmatpush1.bf16.msra.mxu0 %v12237_v44  ;;  %5968 = vmatpush1.bf16.msra.mxu1 %v12238_v53 }
 0x6a6   :  { %5928 = vmatprep.subr.bf16.mxu0 %v12239_v54  ;;  %5969 = vmatprep.subr.bf16.mxu1 %v12240_v59 }
 0x6a9   :  { %5929 = vmatpush1.bf16.msra.mxu0 %v12241_v62  ;;  %5970 = vmatpush1.bf16.msra.mxu1 %v12242_v41 }
 0x6aa   :  { %5930 = vmatprep.subr.bf16.mxu0 %v12243_v12  ;;  %5971 = vmatprep.subr.bf16.mxu1 %v12244_v52 }
 0x6ad   :  { %5931 = vmatpush1.bf16.msra.mxu0 %v12245_v6  ;;  %5972 = vmatpush1.bf16.msra.mxu1 %v12246_v11 }
 0x6ae   :  { %5932 = vmatprep.subr.bf16.mxu0 %v12247_v22  ;;  %5973 = vmatprep.subr.bf16.mxu1 %v12248_v55 }
 0x6b1   :  { %5933 = vmatpush1.bf16.msra.mxu0 %v12249_v60  ;;  %5974 = vmatpush1.bf16.msra.mxu1 %v12250_v1 }
 0x6b2   :  { %5934 = vmatprep.subr.bf16.mxu0 %v12251_v51  ;;  %5975 = vmatprep.subr.bf16.mxu1 %v12252_v14 }
 0x6b5   :  { %5935 = vmatpush1.bf16.msra.mxu0 %v12253_v8  ;;  %5976 = vmatpush1.bf16.msra.mxu1 %v12254_v5 }
 0x6b6   :  { %5936 = vmatprep.subr.bf16.mxu0 %v12255_v9  ;;  %5977 = vmatprep.subr.bf16.mxu1 %v12256_v7 }
 0x6b9   :  { %5937 = vmatpush1.bf16.msra.mxu0 %v12257_v18  ;;  %5978 = vmatpush1.bf16.msra.mxu1 %v12258_v16  ;;  %v5093_v18 = vld [vmem:[#allocation2 + $0x5] ss:$8 sm:$0xf] }
 0x6ba   :  { %5938 = vmatprep.subr.bf16.mxu0 %v12259_v28  ;;  %5979 = vmatprep.subr.bf16.mxu1 %v12260_v56  ;;  %v5095_v16 = vld [vmem:[#allocation2 + $0x25] ss:$8 sm:$0xf] }
 0x6bd   :  { %5939 = vmatpush1.bf16.msra.mxu0 %v12261_v13  ;;  %5980 = vmatpush1.bf16.msra.mxu1 %v12262_v15 }
 0x6be   :  { %6247 = vmatprep.subr.bf16.mxu0 %v11245_v17  ;;  %6288 = vmatprep.subr.bf16.mxu1 %v11247_v19 }
 0x733   :  { %v4993_v38 = vpop.f32.mrb[44].mxu0  ;;  %v5034_v21 = vpop.f32.mrb[44].mxu1 }
 0x734   :  { %v4994_v40 = vadd.f32 %v4993_v38, %v4622_v32  ;;  %v4995_v34 = vpop.f32.mrb[45].mxu0  ;;  %v5036_v39 = vpop.f32.mrb[45].mxu1  ;;  %v5035_v48 = vadd.f32 %v5034_v21, %v4630_v46 }
 0x735   :  { %v4996_v24 = vadd.f32 %v4995_v34, %v4626_v31  ;;  %v4997_v0 = vpop.f32.mrb[46].mxu0  ;;  %v5038_v25 = vpop.f32.mrb[46].mxu1  ;;  %v5037_v47 = vadd.f32 %v5036_v39, %v4634_v45 }
 0x736   :  { %v8480_v23 = vmul.f32 -1.442695, %v4994_v40  ;;  %v4998_v26 = vpop.f32.mrb[47].mxu0  ;;  %v5039_v42 = vpop.f32.mrb[47].mxu1 }
 0x737   :  { %v8481_v43 = vmul.f32 -1.442695, %v4996_v24  ;;  %v8482_v49 = vmul.f32 -1.442695, %v5037_v47 }
 0x738   :  { %9615 = vpow2.f32 %v8480_v23 }
 0x739   :  { %9617 = vpow2.f32 %v8481_v43 }
 0x73a   :  { %9619 = vtanh.f32 %v5035_v48 }
 0x73b   :  { %9621 = vpow2.f32 %v8482_v49 }
 0x742   :  { %v9616_v50 = vpop.eup %9615 }
 0x743   :  { %v9618_v57 = vpop.eup %9617  ;;  %v5044_v58 = vadd.f32 1.0, %v9616_v50 }
 0x744   :  { %v5050_v33 = vadd.f32 1.0, %v9618_v57  ;;  %v9620_v63 = vpop.eup %9619 }
 0x745   :  { %9623 = vrcp.f32 %v5044_v58  ;;  %v9622_v3 = vpop.eup %9621 }
 0x746   :  { %9625 = vrcp.f32 %v5050_v33  ;;  %v5057_v59 = vadd.f32 1.0, %v9622_v3 }
 0x74f   :  { %v9624_v10 = vpop.eup %9623 }
 0x750   :  { %v9626_v44 = vpop.eup %9625  ;;  %v5061_v53 = vmul.f32 %v9624_v10, %v9620_v63 }
 0x751   :  { %v5060_v54 = vmul.f32 %v9626_v44, %v11120_v61 }
 0x753   :  { %v11259_v62 = vadd.f32 %v5061_v53, %v5060_v54  ;;  %v5332_v41 = vpop.f32.mrb[48].mxu0  ;;  %v5373_v12 = vpop.f32.mrb[48].mxu1 }
 0x754   :  { %v5334_v52 = vpop.f32.mrb[49].mxu0  ;;  %v5375_v6 = vpop.f32.mrb[49].mxu1 }
 0x755   :  { %v5384_v11 = vcombine.low %v5332_v41, %v5334_v52  ;;  %v5385_v22 = vcombine.low %v5373_v12, %v5375_v6  ;;  %v5336_v55 = vpop.f32.mrb[50].mxu0  ;;  %v5377_v60 = vpop.f32.mrb[50].mxu1  ;;  %9627 = vtanh.f32 %v11259_v62 }
 0x756   :  { %9629 = vrcp.f32 %v5057_v59  ;;  %v5337_v1 = vpop.f32.mrb[51].mxu0  ;;  %v5378_v51 = vpop.f32.mrb[51].mxu1 }
 0x757   :  { %v5392_v14 = vrot.slane %v5384_v11, %v10237_v20  ;;  %v5399_v61 = vrot.slane %v5385_v22, %v10237_v20 }
 0x759   :  { %v5400_v8 = vcombine.low %v5392_v14, %v5399_v61  ;;  %v5401_v5 = vcombine.high %v5392_v14, %v5399_v61 }
 0x75b   :  { %v5408_v9 = vrot.slane %v5400_v8, %v10237_v20  ;;  %v5415_v7 = vrot.slane %v5401_v5, %v10237_v20 }
 0x75d   :  { %v5418_v28 = vadd.f32 %v5408_v9, %v5093_v18  ;;  %v5419_v56 = vadd.f32 %v5415_v7, %v5095_v16 }
 0x75f   :  { %v9628_v13 = vpop.eup %9627  ;;  %v8515_v15 = vmul.f32 -1.442695, %v5418_v28  ;;  %v8516_v35 = vmul.f32 -1.442695, %v5419_v56  ;;  %v5434_v32 = vrot.slane %v5418_v28, 1  ;;  %v5435_v31 = vrot.slane %v5419_v56, 1 }
 0x760   :  { %v9630_v38 = vpop.eup %9629  ;;  %v5456_v0 = vrot.slane %v5418_v28, 3  ;;  %v5457_v25 = vrot.slane %v5419_v56, 3  ;;  %v5450_v42 = vrot.slane %v5418_v28, 2  ;;  %v5451_v43 = vrot.slane %v5419_v56, 2 }
 0x761   :  { %9631 = vpow2.f32 %v8515_v15  ;;  %v8517_v21 = vmul.f32 -1.442695, %v5434_v32  ;;  %v8518_v40 = vmul.f32 -1.442695, %v5435_v31  ;;  %v5064_v34 = vmul.f32 %v9630_v38, %v9628_v13  ;;  %v11287_v32 = vld [vmem:[#allocation7] ss:$16 sps:$4 sm:$0xff]  }
 0x762   :  { %9633 = vpow2.f32 %v8516_v35  ;;  %v8519_v46 = vmul.f32 -1.442695, %v5456_v0  ;;  %v8520_v47 = vmul.f32 -1.442695, %v5457_v25  ;;  %v11289_v31 = vld [vmem:[#allocation7 + $0x8] ss:$16 sps:$4 sm:$0xff]  }
 0x763   :  { %9635 = vpow2.f32 %v8517_v21  ;;  %v5072_v39 = vrot.slane %v5064_v34, %v10237_v20  ;;  %v5501_v24 = vpack.c.bf16 %v5064_v34, %v5064_v34  ;;  %v11291_v21 = vld [vmem:[#allocation7 + $0x24] ss:$16 sps:$4 sm:$0xff]   ;;  %v11306_v25 = vld [vmem:[#allocation7 + $0x4c] ss:$16 sps:$4 sm:$0xff]  }
 0x764   :  { %9637 = vpow2.f32 %v8518_v40  ;;  %v11293_v40 = vld [vmem:[#allocation7 + $0x2c] ss:$16 sps:$4 sm:$0xff]   ;;  %v11304_v0 = vld [vmem:[#allocation7 + $0x44] ss:$16 sps:$4 sm:$0xff]  }
 0x765   :  { %v5073_v23 = vcombine.high %v5072_v39, %v5072_v39  ;;  %v5080_v26 = vrot.slane %v5072_v39, %v10237_v20  ;;  %5940 = vmatprep.mubr.bf16.mxu0 %v5501_v24  ;;  %5981 = vmatprep.mubr.bf16.mxu1 %v5501_v24  ;;  %9639 = vtanh.f32 %v5450_v42  ;;  %v11298_v39 = vld [vmem:[#allocation7 + $0x20] ss:$16 sps:$4 sm:$0xff]   ;;  %v11300_v24 = vld [vmem:[#allocation7 + $0x28] ss:$16 sps:$4 sm:$0xff]   ;;  %v11318_v42 = vld [vmem:[#allocation7 + $0x64] ss:$16 sps:$4 sm:$0xff]  }
 0x766   :  { %9641 = vtanh.f32 %v5451_v43  ;;  %v11320_v43 = vld [vmem:[#allocation7 + $0x6c] ss:$16 sps:$4 sm:$0xff]  }
 0x767   :  { %v5087_v45 = vrot.slane %v5073_v23, %v10237_v20  ;;  %5090 = vst.msk [vmem:[%s11762_s6 + $0x4] sm:$0x1] %vm1292_vm2, %v5080_v26  ;;  %9643 = vpow2.f32 %v8519_v46  ;;  %v11312_v23 = vld [vmem:[#allocation7 + $0x40] ss:$16 sps:$4 sm:$0xff]   ;;  %v11314_v26 = vld [vmem:[#allocation7 + $0x48] ss:$16 sps:$4 sm:$0xff]  }
 0x768   :  { %9645 = vpow2.f32 %v8520_v47  ;;  %v11326_v46 = vld [vmem:[#allocation7 + $0x68] ss:$16 sps:$4 sm:$0xff]   ;;  %v11330_v47 = vld [vmem:[#allocation7 + $0x84] ss:$16 sps:$4 sm:$0xff]  }
 0x769   :  { %5091 = vst.msk [vmem:[%s11762_s6 + $0xc] sm:$0x1] %vm1292_vm2, %v5087_v45  ;;  %v11324_v45 = vld [vmem:[#allocation7 + $0x60] ss:$16 sps:$4 sm:$0xff]  }
 0x76b   :  { %v9632_v48 = vpop.eup %9631 }
 0x76c   :  { %v9634_v49 = vpop.eup %9633  ;;  %v5426_v50 = vadd.f32 1.0, %v9632_v48  ;;  %v11332_v48 = vld [vmem:[#allocation7 + $0x8c] ss:$16 sps:$4 sm:$0xff]  }
 0x76d   :  { %v9636_v57 = vpop.eup %9635  ;;  %v5427_v58 = vadd.f32 1.0, %v9634_v49  ;;  %v11336_v49 = vld [vmem:[#allocation7 + $0x80] ss:$16 sps:$4 sm:$0xff]  }
 0x76e   :  { %v9638_v33 = vpop.eup %9637  ;;  %9647 = vrcp.f32 %v5426_v50  ;;  %v5444_v63 = vadd.f32 1.0, %v9636_v57  ;;  %v11338_v50 = vld [vmem:[#allocation7 + $0x88] ss:$16 sps:$4 sm:$0xff]   ;;  %v11342_v57 = vld [vmem:[#allocation7 + $0xa4] ss:$16 sps:$4 sm:$0xff]  }
 0x76f   :  { %9649 = vrcp.f32 %v5427_v58  ;;  %v5445_v3 = vadd.f32 1.0, %v9638_v33  ;;  %v9640_v10 = vpop.eup %9639  ;;  %v11344_v58 = vld [vmem:[#allocation7 + $0xac] ss:$16 sps:$4 sm:$0xff]   ;;  %v11348_v33 = vld [vmem:[#allocation7 + $0xa0] ss:$16 sps:$4 sm:$0xff]  }
 0x770   :  { %9651 = vrcp.f32 %v5444_v63  ;;  %v9642_v44 = vpop.eup %9641  ;;  %v11350_v63 = vld [vmem:[#allocation7 + $0xa8] ss:$16 sps:$4 sm:$0xff]  }
 0x771   :  { %9653 = vrcp.f32 %v5445_v3  ;;  %v9644_v53 = vpop.eup %9643  ;;  %v11354_v3 = vld [vmem:[#allocation7 + $0xc4] ss:$16 sps:$4 sm:$0xff]  }
 0x772   :  { %v9646_v54 = vpop.eup %9645  ;;  %v5466_v12 = vadd.f32 1.0, %v9644_v53  ;;  %v11362_v53 = vld [vmem:[#allocation7 + $0xc8] ss:$16 sps:$4 sm:$0xff]  }
 0x773   :  { %v5467_v6 = vadd.f32 1.0, %v9646_v54  ;;  %v11366_v54 = vld [vmem:[#allocation7 + $0xe4] ss:$16 sps:$4 sm:$0xff]  }
 0x774   :  { %9655 = vrcp.f32 %v5466_v12  ;;  %v11374_v12 = vld [vmem:[#allocation7 + $0xe8] ss:$16 sps:$4 sm:$0xff]  }
 0x775   :  { %9657 = vrcp.f32 %v5467_v6  ;;  %v11380_v6 = vld [vmem:[#allocation8] ss:$16 sps:$4 sm:$0xff]  }
 0x778   :  { %v9648_v59 = vpop.eup %9647 }
 0x779   :  { %v9650_v41 = vpop.eup %9649  ;;  %v5474_v22 = vmul.f32 %v9648_v59, %v9640_v10  ;;  %v11356_v10 = vld [vmem:[#allocation7 + $0xcc] ss:$16 sps:$4 sm:$0xff]  }
 0x77a   :  { %v9652_v52 = vpop.eup %9651  ;;  %v5475_v60 = vmul.f32 %v9650_v41, %v9642_v44  ;;  %v11360_v44 = vld [vmem:[#allocation7 + $0xc0] ss:$16 sps:$4 sm:$0xff]   ;;  %v11368_v59 = vld [vmem:[#allocation7 + $0xec] ss:$16 sps:$4 sm:$0xff]  }
 0x77b   :  { %v9654_v11 = vpop.eup %9653  ;;  %v5472_v55 = vmul.f32 %v9652_v52, %v11140_v2  ;;  %v11372_v41 = vld [vmem:[#allocation7 + $0xe0] ss:$16 sps:$4 sm:$0xff]  }
 0x77c   :  { %v5473_v1 = vmul.f32 %v9654_v11, %v11142_v4  ;;  %v11382_v11 = vld [vmem:[#allocation8 + $0x4] ss:$16 sps:$4 sm:$0xff]  }
 0x77d   :  { %v11279_v51 = vadd.f32 %v5474_v22, %v5472_v55  ;;  %v11384_v22 = vld [vmem:[#allocation8 + $0x8] ss:$16 sps:$4 sm:$0xff]   ;;  %v11386_v55 = vld [vmem:[#allocation8 + $0xc] ss:$16 sps:$4 sm:$0xff]  }
 0x77e   :  { %v11281_v14 = vadd.f32 %v5475_v60, %v5473_v1  ;;  %v9656_v61 = vpop.eup %9655  ;;  %v11392_v60 = vld [vmem:[#allocation8 + $0x24] ss:$16 sps:$4 sm:$0xff]   ;;  %v11394_v1 = vld [vmem:[#allocation8 + $0x2c] ss:$16 sps:$4 sm:$0xff]  }
 0x77f   :  { %9659 = vtanh.f32 %v11279_v51  ;;  %v9658_v8 = vpop.eup %9657 }
 0x780   :  { %9661 = vtanh.f32 %v11281_v14 }
 0x789   :  { %v9660_v5 = vpop.eup %9659 }
 0x78a   :  { %v9662_v9 = vpop.eup %9661  ;;  %v5480_v7 = vmul.f32 %v9660_v5, %v9656_v61  ;;  %v11396_v61 = vld [vmem:[#allocation8 + $0x20] ss:$16 sps:$4 sm:$0xff]   ;;  %v11404_v5 = vld [vmem:[#allocation8 + $0x44] ss:$16 sps:$4 sm:$0xff]  }
 0x78b   :  { %v5481_v18 = vmul.f32 %v9662_v9, %v9658_v8  ;;  %12265 = vst [vmem:[#allocation15_spill] sm:$0xff] %v11396_v61  ;;  %v11398_v8 = vld [vmem:[#allocation8 + $0x28] ss:$16 sps:$4 sm:$0xff]   ;;  %12267 = vst [vmem:[#allocation14_spill] sm:$0xff] %v11404_v5  ;;  %v11406_v9 = vld [vmem:[#allocation8 + $0x4c] ss:$16 sps:$4 sm:$0xff]  }
 0x78c   :  { %v6045_v16 = vpack.c.bf16 %v5480_v7, %v5480_v7  ;;  %12266 = vst [vmem:[#allocation13_spill] sm:$0xff] %v11398_v8  ;;  %12268 = vst [vmem:[#allocation16_spill] sm:$0xff] %v11406_v9 }
 0x78d   :  { %v5484_v2 = vcombine.low %v5480_v7, %v5481_v18  ;;  %v6046_v28 = vpack.c.bf16 %v5481_v18, %v5481_v18  ;;  %v11408_v7 = vld [vmem:[#allocation8 + $0x40] ss:$16 sps:$4 sm:$0xff]   ;;  %v11410_v18 = vld [vmem:[#allocation8 + $0x48] ss:$16 sps:$4 sm:$0xff]  }
 0x78e   :  { %v6081_v15 = vunpack.c.l.b16 %v6045_v16  ;;  %12269 = vst [vmem:[#allocation17_spill] sm:$0xff] %v11408_v7  ;;  %12270 = vst [vmem:[#allocation18_spill] sm:$0xff] %v11410_v18  ;;  %v11418_v16 = vld [vmem:[#allocation8 + $0x6c] ss:$16 sps:$4 sm:$0xff]  }
 0x78f   :  { %v5491_v4 = vrot.slane %v5484_v2, %v10237_v20  ;;  %v6082_v56 = vunpack.c.l.b16 %v6046_v28  ;;  %v11416_v2 = vld [vmem:[#allocation8 + $0x64] ss:$16 sps:$4 sm:$0xff]   ;;  %12272 = vst [vmem:[#allocation20_spill] sm:$0xff] %v11418_v16  ;;  %v11420_v28 = vld [vmem:[#allocation8 + $0x60] ss:$16 sps:$4 sm:$0xff]  }
 0x790   :  { %12271 = vst [vmem:[#allocation19_spill] sm:$0xff] %v11416_v2  ;;  %12273 = vst [vmem:[#allocation21_spill] sm:$0xff] %v11420_v28 }
 0x791   :  { %v5498_v13 = vrot.slane %v5491_v4, %v10237_v20  ;;  %v6083_v35 = vrot.slane %v6082_v56, 7  ;;  %v11422_v4 = vld [vmem:[#allocation8 + $0x68] ss:$16 sps:$4 sm:$0xff]   ;;  %v11428_v56 = vld [vmem:[#allocation8 + $0x84] ss:$16 sps:$4 sm:$0xff]  }
 0x792   :  { %12274 = vst [vmem:[#allocation22_spill] sm:$0xff] %v11422_v4  ;;  %12275 = vst [vmem:[#allocation23_spill] sm:$0xff] %v11428_v56 }
 0x793   :  { %v5500_v38 = vpack.c.bf16 %v5498_v13, %v5498_v13  ;;  %v6084_v34 = vsel %vm1338_vm1, %v6083_v35, %v6081_v15  ;;  %v11430_v13 = vld [vmem:[#allocation8 + $0x8c] ss:$16 sps:$4 sm:$0xff]   ;;  %v11432_v15 = vld [vmem:[#allocation8 + $0x80] ss:$16 sps:$4 sm:$0xff]   ;;  %v11434_v35 = vld [vmem:[#allocation8 + $0x88] ss:$16 sps:$4 sm:$0xff]  }
 0x794   :  { %v6085_v52 = vpack.c.b16 %v6084_v34, %v6084_v34  ;;  %12276 = vst [vmem:[#allocation24_spill] sm:$0xff] %v11430_v13  ;;  %12277 = vst [vmem:[#allocation25_spill] sm:$0xff] %v11432_v15  ;;  %v11442_v34 = vld [vmem:[#allocation8 + $0xac] ss:$16 sps:$4 sm:$0xff]  }
 0x795   :  { %5941 = vmatmul.mubr.bf16.vlgmr.msra.gmra.mrb[52].mxu0 %v5500_v38  ;;  %5982 = vmatmul.mubr.bf16.vlgmr.msra.gmra.mrb[52].mxu1 %v5500_v38  ;;  %12278 = vst [vmem:[#allocation26_spill] sm:$0xff] %v11434_v35  ;;  %v11440_v38 = vld [vmem:[#allocation8 + $0xa4] ss:$16 sps:$4 sm:$0xff]   ;;  %12280 = vst [vmem:[#allocation28_spill] sm:$0xff] %v11442_v34 }
 0x796   :  { %6248 = vmatpush1.bf16.msra.mxu0 %v11287_v32  ;;  %6289 = vmatpush1.bf16.msra.mxu1 %v11289_v31  ;;  %12279 = vst [vmem:[#allocation27_spill] sm:$0xff] %v11440_v38 }
 0x797   :  { %6249 = vmatprep.subr.bf16.mxu0 %v11291_v21  ;;  %6290 = vmatprep.subr.bf16.mxu1 %v11293_v40 }
 0x798   :  { %6279 = vmatprep.mubr.bf16.mxu0 %v12002_v37  ;;  %6320 = vmatprep.mubr.bf16.mxu1 %v12002_v37 }
 0x79a   :  { %6250 = vmatpush1.bf16.msra.mxu0 %v11298_v39  ;;  %6291 = vmatpush1.bf16.msra.mxu1 %v11300_v24 }
 0x79b   :  { %6251 = vmatprep.subr.bf16.mxu0 %v11304_v0  ;;  %6292 = vmatprep.subr.bf16.mxu1 %v11306_v25 }
 0x79e   :  { %6252 = vmatpush1.bf16.msra.mxu0 %v11312_v23  ;;  %6293 = vmatpush1.bf16.msra.mxu1 %v11314_v26 }
 0x79f   :  { %6253 = vmatprep.subr.bf16.mxu0 %v11318_v42  ;;  %6294 = vmatprep.subr.bf16.mxu1 %v11320_v43 }
 0x7a2   :  { %6254 = vmatpush1.bf16.msra.mxu0 %v11324_v45  ;;  %6295 = vmatpush1.bf16.msra.mxu1 %v11326_v46 }
 0x7a3   :  { %6255 = vmatprep.subr.bf16.mxu0 %v11330_v47  ;;  %6296 = vmatprep.subr.bf16.mxu1 %v11332_v48 }
 0x7a6   :  { %6256 = vmatpush1.bf16.msra.mxu0 %v11336_v49  ;;  %6297 = vmatpush1.bf16.msra.mxu1 %v11338_v50 }
 0x7a7   :  { %6257 = vmatprep.subr.bf16.mxu0 %v11342_v57  ;;  %6298 = vmatprep.subr.bf16.mxu1 %v11344_v58 }
 0x7aa   :  { %6258 = vmatpush1.bf16.msra.mxu0 %v11348_v33  ;;  %6299 = vmatpush1.bf16.msra.mxu1 %v11350_v63 }
 0x7ab   :  { %6259 = vmatprep.subr.bf16.mxu0 %v11354_v3  ;;  %6300 = vmatprep.subr.bf16.mxu1 %v11356_v10 }
 0x7ae   :  { %6260 = vmatpush1.bf16.msra.mxu0 %v11360_v44  ;;  %6301 = vmatpush1.bf16.msra.mxu1 %v11362_v53 }
 0x7af   :  { %6261 = vmatprep.subr.bf16.mxu0 %v11366_v54  ;;  %6302 = vmatprep.subr.bf16.mxu1 %v11368_v59 }
 0x7b2   :  { %6262 = vmatpush1.bf16.msra.mxu0 %v11372_v41  ;;  %6303 = vmatpush1.bf16.msra.mxu1 %v11374_v12 }
 0x7b3   :  { %6857 = vmatprep.subr.bf16.mxu0 %v11382_v11  ;;  %6898 = vmatprep.subr.bf16.mxu1 %v11386_v55 }
 0x7b5   :  { %6280 = vmatmul.mubr.bf16.vlgmr.msra.gmra.mrb[56].mxu0 %v6085_v52  ;;  %6321 = vmatmul.mubr.bf16.vlgmr.msra.gmra.mrb[56].mxu1 %v6085_v52  ;;  %v11444_v52 = vld [vmem:[#allocation8 + $0xa0] ss:$16 sps:$4 sm:$0xff]  }
 0x7b6   :  { %6858 = vmatpush1.bf16.msra.mxu0 %v11380_v6  ;;  %6899 = vmatpush1.bf16.msra.mxu1 %v11384_v22  ;;  %12281 = vst [vmem:[#allocation29_spill] sm:$0xff] %v11444_v52 }
 0x7b7   :  { %6859 = vmatprep.subr.bf16.mxu0 %v11392_v60  ;;  %6900 = vmatprep.subr.bf16.mxu1 %v11394_v1 }
 0x7ba   :  { %6860 = vmatpush1.bf16.msra.mxu0 %v11396_v61  ;;  %6901 = vmatpush1.bf16.msra.mxu1 %v11398_v8 }
 0x7bb   :  { %6861 = vmatprep.subr.bf16.mxu0 %v11404_v5  ;;  %6902 = vmatprep.subr.bf16.mxu1 %v11406_v9 }
 0x7be   :  { %6862 = vmatpush1.bf16.msra.mxu0 %v11408_v7  ;;  %6903 = vmatpush1.bf16.msra.mxu1 %v11410_v18 }
 0x7bf   :  { %6863 = vmatprep.subr.bf16.mxu0 %v11416_v2  ;;  %6904 = vmatprep.subr.bf16.mxu1 %v11418_v16  ;;  %v11499_v16 = vld [vmem:[#allocation8 + $0x14c] ss:$16 sps:$4 sm:$0xff]  }
 0x7c0   :  { %12300 = vst [vmem:[#allocation50_spill] sm:$0xff] %v11499_v16 }
 0x7c2   :  { %6864 = vmatpush1.bf16.msra.mxu0 %v11420_v28  ;;  %6905 = vmatpush1.bf16.msra.mxu1 %v11422_v4  ;;  %v11446_v4 = vld [vmem:[#allocation8 + $0xa8] ss:$16 sps:$4 sm:$0xff]   ;;  %v11496_v28 = vld [vmem:[#allocation8 + $0x144] ss:$16 sps:$4 sm:$0xff]  }
 0x7c3   :  { %6865 = vmatprep.subr.bf16.mxu0 %v11428_v56  ;;  %6906 = vmatprep.subr.bf16.mxu1 %v11430_v13  ;;  %12282 = vst [vmem:[#allocation30_spill] sm:$0xff] %v11446_v4  ;;  %v11452_v13 = vld [vmem:[#allocation8 + $0xc4] ss:$16 sps:$4 sm:$0xff]   ;;  %v11458_v56 = vld [vmem:[#allocation8 + $0xc8] ss:$16 sps:$4 sm:$0xff]   ;;  %12299 = vst [vmem:[#allocation49_spill] sm:$0xff] %v11496_v28 }
 0x7c4   :  { %12283 = vst [vmem:[#allocation31_spill] sm:$0xff] %v11452_v13  ;;  %12286 = vst [vmem:[#allocation34_spill] sm:$0xff] %v11458_v56 }
 0x7c6   :  { %6866 = vmatpush1.bf16.msra.mxu0 %v11432_v15  ;;  %6907 = vmatpush1.bf16.msra.mxu1 %v11434_v35  ;;  %v11454_v15 = vld [vmem:[#allocation8 + $0xcc] ss:$16 sps:$4 sm:$0xff]   ;;  %v11456_v35 = vld [vmem:[#allocation8 + $0xc0] ss:$16 sps:$4 sm:$0xff]  }
 0x7c7   :  { %6867 = vmatprep.subr.bf16.mxu0 %v11440_v38  ;;  %6908 = vmatprep.subr.bf16.mxu1 %v11442_v34  ;;  %12284 = vst [vmem:[#allocation32_spill] sm:$0xff] %v11454_v15  ;;  %12285 = vst [vmem:[#allocation33_spill] sm:$0xff] %v11456_v35  ;;  %v11464_v34 = vld [vmem:[#allocation8 + $0xe4] ss:$16 sps:$4 sm:$0xff]   ;;  %v11470_v38 = vld [vmem:[#allocation8 + $0xe8] ss:$16 sps:$4 sm:$0xff]  }
 0x7c8   :  { %12287 = vst [vmem:[#allocation35_spill] sm:$0xff] %v11464_v34  ;;  %12290 = vst [vmem:[#allocation40_spill] sm:$0xff] %v11470_v38 }
 0x7ca   :  { %6868 = vmatpush1.bf16.msra.mxu0 %v11444_v52  ;;  %6909 = vmatpush1.bf16.msra.mxu1 %v11446_v4  ;;  %v11466_v52 = vld [vmem:[#allocation8 + $0xec] ss:$16 sps:$4 sm:$0xff]   ;;  %v11468_v4 = vld [vmem:[#allocation8 + $0xe0] ss:$16 sps:$4 sm:$0xff]  }
 0x7cb   :  { %6869 = vmatprep.subr.bf16.mxu0 %v11452_v13  ;;  %6910 = vmatprep.subr.bf16.mxu1 %v11454_v15  ;;  %12288 = vst [vmem:[#allocation39_spill] sm:$0xff] %v11466_v52  ;;  %12289 = vst [vmem:[#allocation37_spill] sm:$0xff] %v11468_v4  ;;  %v11476_v15 = vld [vmem:[#allocation8 + $0x104] ss:$16 sps:$4 sm:$0xff]   ;;  %v11482_v13 = vld [vmem:[#allocation8 + $0x108] ss:$16 sps:$4 sm:$0xff]  }
 0x7cc   :  { %12291 = vst [vmem:[#allocation41_spill] sm:$0xff] %v11476_v15  ;;  %12294 = vst [vmem:[#allocation44_spill] sm:$0xff] %v11482_v13 }
 0x7ce   :  { %6870 = vmatpush1.bf16.msra.mxu0 %v11456_v35  ;;  %6911 = vmatpush1.bf16.msra.mxu1 %v11458_v56  ;;  %v11478_v35 = vld [vmem:[#allocation8 + $0x10c] ss:$16 sps:$4 sm:$0xff]   ;;  %v11480_v56 = vld [vmem:[#allocation8 + $0x100] ss:$16 sps:$4 sm:$0xff]  }
 0x7cf   :  { %6871 = vmatprep.subr.bf16.mxu0 %v11464_v34  ;;  %6912 = vmatprep.subr.bf16.mxu1 %v11466_v52  ;;  %12292 = vst [vmem:[#allocation42_spill] sm:$0xff] %v11478_v35  ;;  %12293 = vst [vmem:[#allocation43_spill] sm:$0xff] %v11480_v56  ;;  %v11488_v52 = vld [vmem:[#allocation8 + $0x120] ss:$16 sps:$4 sm:$0xff]   ;;  %v11494_v34 = vld [vmem:[#allocation8 + $0x12c] ss:$16 sps:$4 sm:$0xff]  }
 0x7d0   :  { %12295 = vst [vmem:[#allocation48_spill] sm:$0xff] %v11488_v52  ;;  %12298 = vst [vmem:[#allocation45_spill] sm:$0xff] %v11494_v34 }
 0x7d2   :  { %6872 = vmatpush1.bf16.msra.mxu0 %v11468_v4  ;;  %6913 = vmatpush1.bf16.msra.mxu1 %v11470_v38  ;;  %v11490_v4 = vld [vmem:[#allocation8 + $0x124] ss:$16 sps:$4 sm:$0xff]   ;;  %v11492_v38 = vld [vmem:[#allocation8 + $0x128] ss:$16 sps:$4 sm:$0xff]  }
 0x7d3   :  { %6873 = vmatprep.subr.bf16.mxu0 %v11476_v15  ;;  %6914 = vmatprep.subr.bf16.mxu1 %v11478_v35  ;;  %12296 = vst [vmem:[#allocation47_spill] sm:$0xff] %v11490_v4  ;;  %12297 = vst [vmem:[#allocation46_spill] sm:$0xff] %v11492_v38  ;;  %v11509_v35 = vld [vmem:[#allocation8 + $0x164] ss:$16 sps:$4 sm:$0xff]   ;;  %v11512_v15 = vld [vmem:[#allocation8 + $0x16c] ss:$16 sps:$4 sm:$0xff]  }
 0x7d4   :  { %12303 = vst [vmem:[#allocation53_spill] sm:$0xff] %v11509_v35  ;;  %12304 = vst [vmem:[#allocation54_spill] sm:$0xff] %v11512_v15 }
 0x7d6   :  { %6874 = vmatpush1.bf16.msra.mxu0 %v11480_v56  ;;  %6915 = vmatpush1.bf16.msra.mxu1 %v11482_v13  ;;  %v11503_v56 = vld [vmem:[#allocation8 + $0x140] ss:$16 sps:$4 sm:$0xff]   ;;  %v11507_v13 = vld [vmem:[#allocation8 + $0x148] ss:$16 sps:$4 sm:$0xff]  }
 0x7d7   :  { %6875 = vmatprep.subr.bf16.mxu0 %v11490_v4  ;;  %6916 = vmatprep.subr.bf16.mxu1 %v11494_v34  ;;  %12301 = vst [vmem:[#allocation51_spill] sm:$0xff] %v11503_v56  ;;  %12302 = vst [vmem:[#allocation52_spill] sm:$0xff] %v11507_v13  ;;  %v11515_v4 = vld [vmem:[#allocation8 + $0x160] ss:$16 sps:$4 sm:$0xff]  }
 0x7d8   :  { %12305 = vst [vmem:[#allocation55_spill] sm:$0xff] %v11515_v4 }
 0x7da   :  { %6876 = vmatpush1.bf16.msra.mxu0 %v11488_v52  ;;  %6917 = vmatpush1.bf16.msra.mxu1 %v11492_v38  ;;  %v11519_v52 = vld [vmem:[#allocation8 + $0x168] ss:$16 sps:$4 sm:$0xff]   ;;  %v11521_v38 = vld [vmem:[#allocation8 + $0x184] ss:$16 sps:$4 sm:$0xff]  }
 0x7db   :  { %6877 = vmatprep.subr.bf16.mxu0 %v11496_v28  ;;  %6918 = vmatprep.subr.bf16.mxu1 %v11499_v16  ;;  %12306 = vst [vmem:[#allocation56_spill] sm:$0xff] %v11519_v52  ;;  %12307 = vst [vmem:[#allocation57_spill] sm:$0xff] %v11521_v38  ;;  %v11524_v28 = vld [vmem:[#allocation8 + $0x18c] ss:$16 sps:$4 sm:$0xff]   ;;  %v11527_v16 = vld [vmem:[#allocation8 + $0x180] ss:$16 sps:$4 sm:$0xff]  }
 0x7dc   :  { %12308 = vst [vmem:[#allocation58_spill] sm:$0xff] %v11524_v28  ;;  %12309 = vst [vmem:[#allocation59_spill] sm:$0xff] %v11527_v16 }
 0x7de   :  { %6878 = vmatpush1.bf16.msra.mxu0 %v11503_v56  ;;  %6919 = vmatpush1.bf16.msra.mxu1 %v11507_v13  ;;  %v11531_v56 = vld [vmem:[#allocation8 + $0x188] ss:$16 sps:$4 sm:$0xff]   ;;  %v11533_v13 = vld [vmem:[#allocation8 + $0x1a4] ss:$16 sps:$4 sm:$0xff]  }
 0x7df   :  { %6879 = vmatprep.subr.bf16.mxu0 %v11509_v35  ;;  %6920 = vmatprep.subr.bf16.mxu1 %v11512_v15  ;;  %12310 = vst [vmem:[#allocation60_spill] sm:$0xff] %v11531_v56  ;;  %12311 = vst [vmem:[#allocation61_spill] sm:$0xff] %v11533_v13  ;;  %v11536_v35 = vld [vmem:[#allocation8 + $0x1ac] ss:$16 sps:$4 sm:$0xff]   ;;  %v11539_v15 = vld [vmem:[#allocation8 + $0x1a0] ss:$16 sps:$4 sm:$0xff]  }
 0x7e0   :  { %12312 = vst [vmem:[#allocation62_spill] sm:$0xff] %v11536_v35  ;;  %12313 = vst [vmem:[#allocation63_spill] sm:$0xff] %v11539_v15 }
 0x7e2   :  { %6880 = vmatpush1.bf16.msra.mxu0 %v11515_v4  ;;  %6921 = vmatpush1.bf16.msra.mxu1 %v11519_v52  ;;  %v11543_v4 = vld [vmem:[#allocation8 + $0x1a8] ss:$16 sps:$4 sm:$0xff]   ;;  %v11545_v52 = vld [vmem:[#allocation8 + $0x1c4] ss:$16 sps:$4 sm:$0xff]  }
 0x7e3   :  { %6881 = vmatprep.subr.bf16.mxu0 %v11521_v38  ;;  %6922 = vmatprep.subr.bf16.mxu1 %v11524_v28  ;;  %12314 = vst [vmem:[#allocation64_spill] sm:$0xff] %v11543_v4  ;;  %12315 = vst [vmem:[#allocation65_spill] sm:$0xff] %v11545_v52  ;;  %v11548_v38 = vld [vmem:[#allocation8 + $0x1cc] ss:$16 sps:$4 sm:$0xff]   ;;  %v11551_v28 = vld [vmem:[#allocation8 + $0x1c0] ss:$16 sps:$4 sm:$0xff]  }
 0x7e4   :  { %12316 = vst [vmem:[#allocation66_spill] sm:$0xff] %v11548_v38  ;;  %12317 = vst [vmem:[#allocation67_spill] sm:$0xff] %v11551_v28 }
 0x7e6   :  { %6882 = vmatpush1.bf16.msra.mxu0 %v11527_v16  ;;  %6923 = vmatpush1.bf16.msra.mxu1 %v11531_v56  ;;  %v11555_v16 = vld [vmem:[#allocation8 + $0x1c8] ss:$16 sps:$4 sm:$0xff]   ;;  %v11557_v56 = vld [vmem:[#allocation8 + $0x1e4] ss:$16 sps:$4 sm:$0xff]  }
 0x7e7   :  { %6883 = vmatprep.subr.bf16.mxu0 %v11533_v13  ;;  %6924 = vmatprep.subr.bf16.mxu1 %v11536_v35  ;;  %12318 = vst [vmem:[#allocation68_spill] sm:$0xff] %v11555_v16  ;;  %12319 = vst [vmem:[#allocation69_spill] sm:$0xff] %v11557_v56  ;;  %v11560_v13 = vld [vmem:[#allocation8 + $0x1ec] ss:$16 sps:$4 sm:$0xff]   ;;  %v11563_v35 = vld [vmem:[#allocation8 + $0x1e0] ss:$16 sps:$4 sm:$0xff]  }
 0x7e8   :  { %12320 = vst [vmem:[#allocation70_spill] sm:$0xff] %v11560_v13  ;;  %12321 = vst [vmem:[#allocation71_spill] sm:$0xff] %v11563_v35 }
 0x7ea   :  { %6884 = vmatpush1.bf16.msra.mxu0 %v11539_v15  ;;  %6925 = vmatpush1.bf16.msra.mxu1 %v11543_v4  ;;  %v11567_v15 = vld [vmem:[#allocation8 + $0x1e8] ss:$16 sps:$4 sm:$0xff]  }
 0x7eb   :  { %6885 = vmatprep.subr.bf16.mxu0 %v11545_v52  ;;  %6926 = vmatprep.subr.bf16.mxu1 %v11548_v38  ;;  %12322 = vst [vmem:[#allocation72_spill] sm:$0xff] %v11567_v15 }
 0x7ee   :  { %6886 = vmatpush1.bf16.msra.mxu0 %v11551_v28  ;;  %6927 = vmatpush1.bf16.msra.mxu1 %v11555_v16  ;;  %v5566_v28 = vld [vmem:[%s11761_s5] sm:$0xf] }
 0x7ef   :  { %6887 = vmatprep.subr.bf16.mxu0 %v11557_v56  ;;  %6928 = vmatprep.subr.bf16.mxu1 %v11560_v13  ;;  %v5571_v16 = vrot.slane %v5566_v28, %v12263_v27  ;;  %v5575_v56 = vrot.slane %v5566_v28, %v12264_v29  ;;  %v5583_v9 = vrot.slane %v5566_v28, %v12027_v36 }
 0x7f0   :  { %v5579_v27 = vrot.slane %v5566_v28, %v12028_v30 }
 0x7f2   :  { %6888 = vmatpush1.bf16.msra.mxu0 %v11563_v35  ;;  %6929 = vmatpush1.bf16.msra.mxu1 %v11567_v15 }
 0x7f3   :  { %7196 = vmatprep.subr.bf16.mxu0 %v11245_v17  ;;  %7237 = vmatprep.subr.bf16.mxu1 %v11247_v19 }
 0x868   :  { %v5942_v38 = vpop.f32.mrb[52].mxu0  ;;  %v5983_v52 = vpop.f32.mrb[52].mxu1 }
 0x869   :  { %v5943_v4 = vadd.f32 %v5942_v38, %v5571_v16  ;;  %v5944_v13 = vpop.f32.mrb[53].mxu0  ;;  %v5985_v34 = vpop.f32.mrb[53].mxu1  ;;  %v5984_v29 = vadd.f32 %v5983_v52, %v5579_v27 }
 0x86a   :  { %v5945_v35 = vadd.f32 %v5944_v13, %v5575_v56  ;;  %v5946_v2 = vpop.f32.mrb[54].mxu0  ;;  %v5987_v15 = vpop.f32.mrb[54].mxu1  ;;  %v5986_v5 = vadd.f32 %v5985_v34, %v5583_v9 }
 0x86b   :  { %v8585_v18 = vmul.f32 -1.442695, %v5943_v4  ;;  %v5947_v17 = vpop.f32.mrb[55].mxu0  ;;  %v5988_v7 = vpop.f32.mrb[55].mxu1 }
 0x86c   :  { %v8586_v19 = vmul.f32 -1.442695, %v5945_v35  ;;  %v8587_v8 = vmul.f32 -1.442695, %v5986_v5 }
 0x86d   :  { %9663 = vpow2.f32 %v8585_v18 }
 0x86e   :  { %9665 = vpow2.f32 %v8586_v19 }
 0x86f   :  { %9667 = vtanh.f32 %v5984_v29 }
 0x870   :  { %9669 = vpow2.f32 %v8587_v8 }
 0x877   :  { %v9664_v61 = vpop.eup %9663 }
 0x878   :  { %v9666_v16 = vpop.eup %9665  ;;  %v5993_v38 = vadd.f32 1.0, %v9664_v61 }
 0x879   :  { %v5999_v56 = vadd.f32 1.0, %v9666_v16  ;;  %v9668_v2 = vpop.eup %9667 }
 0x87a   :  { %9671 = vrcp.f32 %v5993_v38  ;;  %v9670_v7 = vpop.eup %9669 }
 0x87b   :  { %9673 = vrcp.f32 %v5999_v56  ;;  %v6006_v35 = vadd.f32 1.0, %v9670_v7 }
 0x884   :  { %v9672_v4 = vpop.eup %9671 }
 0x885   :  { %v9674_v18 = vpop.eup %9673  ;;  %v6010_v13 = vmul.f32 %v9672_v4, %v9668_v2  ;;  %v6042_v4 = vld [vmem:[#allocation2 + $0x6] ss:$8 sm:$0xf] }
 0x886   :  { %v6009_v15 = vmul.f32 %v9674_v18, %v11259_v62  ;;  %v6044_v18 = vld [vmem:[#allocation2 + $0x26] ss:$8 sm:$0xf] }
 0x888   :  { %v11582_v28 = vadd.f32 %v6010_v13, %v6009_v15  ;;  %v6281_v27 = vpop.f32.mrb[56].mxu0  ;;  %v6322_v5 = vpop.f32.mrb[56].mxu1 }
 0x889   :  { %v6283_v9 = vpop.f32.mrb[57].mxu0  ;;  %v6324_v34 = vpop.f32.mrb[57].mxu1 }
 0x88a   :  { %v6333_v61 = vcombine.low %v6281_v27, %v6283_v9  ;;  %v6334_v29 = vcombine.low %v6322_v5, %v6324_v34  ;;  %v6285_v52 = vpop.f32.mrb[58].mxu0  ;;  %v6326_v8 = vpop.f32.mrb[58].mxu1  ;;  %9675 = vtanh.f32 %v11582_v28 }
 0x88b   :  { %9677 = vrcp.f32 %v6006_v35  ;;  %v6286_v17 = vpop.f32.mrb[59].mxu0  ;;  %v6327_v19 = vpop.f32.mrb[59].mxu1 }
 0x88c   :  { %v6341_v16 = vrot.slane %v6333_v61, %v10237_v20  ;;  %v6348_v62 = vrot.slane %v6334_v29, %v10237_v20 }
 0x88e   :  { %v6349_v38 = vcombine.low %v6341_v16, %v6348_v62  ;;  %v6350_v56 = vcombine.high %v6341_v16, %v6348_v62 }
 0x890   :  { %v6357_v2 = vrot.slane %v6349_v38, %v10237_v20  ;;  %v6364_v7 = vrot.slane %v6350_v56, %v10237_v20 }
 0x892   :  { %v6367_v13 = vadd.f32 %v6357_v2, %v6042_v4  ;;  %v6368_v15 = vadd.f32 %v6364_v7, %v6044_v18 }
 0x894   :  { %v9676_v27 = vpop.eup %9675  ;;  %v8620_v5 = vmul.f32 -1.442695, %v6367_v13  ;;  %v8621_v9 = vmul.f32 -1.442695, %v6368_v15  ;;  %v6383_v35 = vrot.slane %v6367_v13, 1  ;;  %v6384_v34 = vrot.slane %v6368_v15, 1 }
 0x895   :  { %v9678_v52 = vpop.eup %9677  ;;  %v6405_v16 = vrot.slane %v6367_v13, 3  ;;  %v6406_v62 = vrot.slane %v6368_v15, 3  ;;  %v6399_v2 = vrot.slane %v6367_v13, 2  ;;  %v6400_v7 = vrot.slane %v6368_v15, 2 }
 0x896   :  { %9679 = vpow2.f32 %v8620_v5  ;;  %v8622_v61 = vmul.f32 -1.442695, %v6383_v35  ;;  %v8623_v8 = vmul.f32 -1.442695, %v6384_v34  ;;  %v6013_v29 = vmul.f32 %v9678_v52, %v9676_v27 }
 0x897   :  { %9681 = vpow2.f32 %v8621_v9  ;;  %v8624_v18 = vmul.f32 -1.442695, %v6405_v16  ;;  %v8625_v27 = vmul.f32 -1.442695, %v6406_v62 }
 0x898   :  { %9683 = vpow2.f32 %v8622_v61  ;;  %v6021_v17 = vrot.slane %v6013_v29, %v10237_v20  ;;  %v6450_v19 = vpack.c.bf16 %v6013_v29, %v6013_v29 }
 0x899   :  { %9685 = vpow2.f32 %v8623_v8 }
 0x89a   :  { %v6022_v38 = vcombine.high %v6021_v17, %v6021_v17  ;;  %v6029_v56 = vrot.slane %v6021_v17, %v10237_v20  ;;  %6889 = vmatprep.mubr.bf16.mxu0 %v6450_v19  ;;  %6930 = vmatprep.mubr.bf16.mxu1 %v6450_v19  ;;  %9687 = vtanh.f32 %v6399_v2 }
 0x89b   :  { %9689 = vtanh.f32 %v6400_v7 }
 0x89c   :  { %v6036_v4 = vrot.slane %v6022_v38, %v10237_v20  ;;  %6039 = vst.msk [vmem:[%s11762_s6 + $0x5] sm:$0x1] %vm1292_vm2, %v6029_v56  ;;  %9691 = vpow2.f32 %v8624_v18 }
 0x89d   :  { %9693 = vpow2.f32 %v8625_v27 }
 0x89e   :  { %6040 = vst.msk [vmem:[%s11762_s6 + $0xd] sm:$0x1] %vm1292_vm2, %v6036_v4 }
 0x8a0   :  { %v9680_v5 = vpop.eup %9679 }
 0x8a1   :  { %v9682_v9 = vpop.eup %9681  ;;  %v6375_v13 = vadd.f32 1.0, %v9680_v5 }
 0x8a2   :  { %v9684_v15 = vpop.eup %9683  ;;  %v6376_v35 = vadd.f32 1.0, %v9682_v9 }
 0x8a3   :  { %v9686_v34 = vpop.eup %9685  ;;  %9695 = vrcp.f32 %v6375_v13  ;;  %v6393_v52 = vadd.f32 1.0, %v9684_v15 }
 0x8a4   :  { %9697 = vrcp.f32 %v6376_v35  ;;  %v6394_v61 = vadd.f32 1.0, %v9686_v34  ;;  %v9688_v8 = vpop.eup %9687 }
 0x8a5   :  { %9699 = vrcp.f32 %v6393_v52  ;;  %v9690_v29 = vpop.eup %9689 }
 0x8a6   :  { %9701 = vrcp.f32 %v6394_v61  ;;  %v9692_v17 = vpop.eup %9691 }
 0x8a7   :  { %v9694_v19 = vpop.eup %9693  ;;  %v6415_v38 = vadd.f32 1.0, %v9692_v17 }
 0x8a8   :  { %v6416_v2 = vadd.f32 1.0, %v9694_v19 }
 0x8a9   :  { %9703 = vrcp.f32 %v6415_v38 }
 0x8aa   :  { %9705 = vrcp.f32 %v6416_v2 }
 0x8ad   :  { %v9696_v16 = vpop.eup %9695 }
 0x8ae   :  { %v9698_v62 = vpop.eup %9697  ;;  %v6423_v4 = vmul.f32 %v9696_v16, %v9688_v8 }
 0x8af   :  { %v9700_v56 = vpop.eup %9699  ;;  %v6424_v27 = vmul.f32 %v9698_v62, %v9690_v29 }
 0x8b0   :  { %v9702_v7 = vpop.eup %9701  ;;  %v6421_v18 = vmul.f32 %v9700_v56, %v11279_v51 }
 0x8b1   :  { %v6422_v5 = vmul.f32 %v9702_v7, %v11281_v14  ;;  %v12359_v7 = vld [vmem:[#allocation51_spill] sm:$0xff] }
 0x8b2   :  { %v11602_v9 = vadd.f32 %v6423_v4, %v6421_v18  ;;  %v12360_v4 = vld [vmem:[#allocation52_spill] sm:$0xff]  ;;  %v12361_v18 = vld [vmem:[#allocation53_spill] sm:$0xff] }
 0x8b3   :  { %v11604_v13 = vadd.f32 %v6424_v27, %v6422_v5  ;;  %v9704_v15 = vpop.eup %9703  ;;  %v12362_v27 = vld [vmem:[#allocation54_spill] sm:$0xff]  ;;  %v12363_v5 = vld [vmem:[#allocation55_spill] sm:$0xff] }
 0x8b4   :  { %9707 = vtanh.f32 %v11602_v9  ;;  %v9706_v35 = vpop.eup %9705 }
 0x8b5   :  { %9709 = vtanh.f32 %v11604_v13 }
 0x8be   :  { %v9708_v34 = vpop.eup %9707 }
 0x8bf   :  { %v9710_v52 = vpop.eup %9709  ;;  %v6429_v61 = vmul.f32 %v9708_v34, %v9704_v15  ;;  %v12364_v15 = vld [vmem:[#allocation56_spill] sm:$0xff]  ;;  %v12366_v34 = vld [vmem:[#allocation58_spill] sm:$0xff] }
 0x8c0   :  { %v6430_v8 = vmul.f32 %v9710_v52, %v9706_v35  ;;  %v12365_v35 = vld [vmem:[#allocation57_spill] sm:$0xff]  ;;  %v12367_v52 = vld [vmem:[#allocation59_spill] sm:$0xff] }
 0x8c1   :  { %v6994_v29 = vpack.c.bf16 %v6429_v61, %v6429_v61 }
 0x8c2   :  { %v6433_v51 = vcombine.low %v6429_v61, %v6430_v8  ;;  %v6995_v17 = vpack.c.bf16 %v6430_v8, %v6430_v8  ;;  %v12368_v61 = vld [vmem:[#allocation60_spill] sm:$0xff]  ;;  %v12369_v8 = vld [vmem:[#allocation61_spill] sm:$0xff] }
 0x8c3   :  { %v7030_v62 = vunpack.c.l.b16 %v6994_v29  ;;  %v12371_v29 = vld [vmem:[#allocation63_spill] sm:$0xff] }
 0x8c4   :  { %v6440_v14 = vrot.slane %v6433_v51, %v10237_v20  ;;  %v7031_v19 = vunpack.c.l.b16 %v6995_v17  ;;  %v12370_v51 = vld [vmem:[#allocation62_spill] sm:$0xff]  ;;  %v12372_v17 = vld [vmem:[#allocation64_spill] sm:$0xff] }
 0x8c6   :  { %v6447_v16 = vrot.slane %v6440_v14, %v10237_v20  ;;  %v7032_v38 = vrot.slane %v7031_v19, 7  ;;  %v12373_v14 = vld [vmem:[#allocation65_spill] sm:$0xff]  ;;  %v12374_v19 = vld [vmem:[#allocation66_spill] sm:$0xff] }
 0x8c8   :  { %v6449_v56 = vpack.c.bf16 %v6447_v16, %v6447_v16  ;;  %v7033_v2 = vsel %vm1338_vm1, %v7032_v38, %v7030_v62  ;;  %v12375_v16 = vld [vmem:[#allocation67_spill] sm:$0xff]  ;;  %v12376_v62 = vld [vmem:[#allocation68_spill] sm:$0xff]  ;;  %v12377_v38 = vld [vmem:[#allocation69_spill] sm:$0xff] }
 0x8ca   :  { %6890 = vmatmul.mubr.bf16.vlgmr.msra.gmra.mrb[60].mxu0 %v6449_v56  ;;  %6931 = vmatmul.mubr.bf16.vlgmr.msra.gmra.mrb[60].mxu1 %v6449_v56  ;;  %v12378_v56 = vld [vmem:[#allocation70_spill] sm:$0xff] }
 0x8cb   :  { %7197 = vmatpush1.bf16.msra.mxu0 %v11287_v32  ;;  %7238 = vmatpush1.bf16.msra.mxu1 %v11289_v31  ;;  %v12323_v32 = vld [vmem:[#allocation15_spill] sm:$0xff]  ;;  %v12324_v31 = vld [vmem:[#allocation13_spill] sm:$0xff] }
 0x8cc   :  { %7198 = vmatprep.subr.bf16.mxu0 %v11291_v21  ;;  %7239 = vmatprep.subr.bf16.mxu1 %v11293_v40  ;;  %v12325_v21 = vld [vmem:[#allocation14_spill] sm:$0xff]  ;;  %v12326_v40 = vld [vmem:[#allocation16_spill] sm:$0xff] }
 0x8cd   :  { %7228 = vmatprep.mubr.bf16.mxu0 %v12002_v37  ;;  %7269 = vmatprep.mubr.bf16.mxu1 %v12002_v37  ;;  %v7034_v37 = vpack.c.b16 %v7033_v2, %v7033_v2  ;;  %v12379_v2 = vld [vmem:[#allocation71_spill] sm:$0xff] }
 0x8cf   :  { %7199 = vmatpush1.bf16.msra.mxu0 %v11298_v39  ;;  %7240 = vmatpush1.bf16.msra.mxu1 %v11300_v24  ;;  %v12327_v39 = vld [vmem:[#allocation17_spill] sm:$0xff]  ;;  %v12328_v24 = vld [vmem:[#allocation18_spill] sm:$0xff] }
 0x8d0   :  { %7200 = vmatprep.subr.bf16.mxu0 %v11304_v0  ;;  %7241 = vmatprep.subr.bf16.mxu1 %v11306_v25  ;;  %v12329_v0 = vld [vmem:[#allocation19_spill] sm:$0xff]  ;;  %v12330_v25 = vld [vmem:[#allocation20_spill] sm:$0xff] }
 0x8d3   :  { %7201 = vmatpush1.bf16.msra.mxu0 %v11312_v23  ;;  %7242 = vmatpush1.bf16.msra.mxu1 %v11314_v26  ;;  %v12331_v23 = vld [vmem:[#allocation21_spill] sm:$0xff]  ;;  %v12332_v26 = vld [vmem:[#allocation22_spill] sm:$0xff] }
 0x8d4   :  { %7202 = vmatprep.subr.bf16.mxu0 %v11318_v42  ;;  %7243 = vmatprep.subr.bf16.mxu1 %v11320_v43  ;;  %v12333_v42 = vld [vmem:[#allocation23_spill] sm:$0xff]  ;;  %v12334_v43 = vld [vmem:[#allocation24_spill] sm:$0xff] }
 0x8d7   :  { %7203 = vmatpush1.bf16.msra.mxu0 %v11324_v45  ;;  %7244 = vmatpush1.bf16.msra.mxu1 %v11326_v46  ;;  %v12335_v45 = vld [vmem:[#allocation25_spill] sm:$0xff]  ;;  %v12336_v46 = vld [vmem:[#allocation26_spill] sm:$0xff] }
 0x8d8   :  { %7204 = vmatprep.subr.bf16.mxu0 %v11330_v47  ;;  %7245 = vmatprep.subr.bf16.mxu1 %v11332_v48  ;;  %v12337_v47 = vld [vmem:[#allocation27_spill] sm:$0xff]  ;;  %v12338_v48 = vld [vmem:[#allocation28_spill] sm:$0xff] }
 0x8db   :  { %7205 = vmatpush1.bf16.msra.mxu0 %v11336_v49  ;;  %7246 = vmatpush1.bf16.msra.mxu1 %v11338_v50  ;;  %v12339_v49 = vld [vmem:[#allocation29_spill] sm:$0xff]  ;;  %v12340_v50 = vld [vmem:[#allocation30_spill] sm:$0xff] }
 0x8dc   :  { %7206 = vmatprep.subr.bf16.mxu0 %v11342_v57  ;;  %7247 = vmatprep.subr.bf16.mxu1 %v11344_v58  ;;  %v12341_v57 = vld [vmem:[#allocation31_spill] sm:$0xff]  ;;  %v12342_v58 = vld [vmem:[#allocation32_spill] sm:$0xff] }
 0x8df   :  { %7207 = vmatpush1.bf16.msra.mxu0 %v11348_v33  ;;  %7248 = vmatpush1.bf16.msra.mxu1 %v11350_v63  ;;  %v12343_v33 = vld [vmem:[#allocation33_spill] sm:$0xff]  ;;  %v12344_v63 = vld [vmem:[#allocation34_spill] sm:$0xff] }
 0x8e0   :  { %7208 = vmatprep.subr.bf16.mxu0 %v11354_v3  ;;  %7249 = vmatprep.subr.bf16.mxu1 %v11356_v10  ;;  %v12345_v3 = vld [vmem:[#allocation35_spill] sm:$0xff] }
 0x8e1   :  { %v12346_v10 = vld [vmem:[#allocation39_spill] sm:$0xff] }
 0x8e3   :  { %7209 = vmatpush1.bf16.msra.mxu0 %v11360_v44  ;;  %7250 = vmatpush1.bf16.msra.mxu1 %v11362_v53  ;;  %v12347_v44 = vld [vmem:[#allocation37_spill] sm:$0xff]  ;;  %v12348_v53 = vld [vmem:[#allocation40_spill] sm:$0xff] }
 0x8e4   :  { %7210 = vmatprep.subr.bf16.mxu0 %v11366_v54  ;;  %7251 = vmatprep.subr.bf16.mxu1 %v11368_v59  ;;  %v12349_v54 = vld [vmem:[#allocation41_spill] sm:$0xff]  ;;  %v12350_v59 = vld [vmem:[#allocation42_spill] sm:$0xff] }
 0x8e7   :  { %7211 = vmatpush1.bf16.msra.mxu0 %v11372_v41  ;;  %7252 = vmatpush1.bf16.msra.mxu1 %v11374_v12  ;;  %v12351_v41 = vld [vmem:[#allocation43_spill] sm:$0xff]  ;;  %v12352_v12 = vld [vmem:[#allocation44_spill] sm:$0xff] }
 0x8e8   :  { %7806 = vmatprep.subr.bf16.mxu0 %v11382_v11  ;;  %7847 = vmatprep.subr.bf16.mxu1 %v11386_v55  ;;  %v12354_v11 = vld [vmem:[#allocation45_spill] sm:$0xff]  ;;  %v12356_v55 = vld [vmem:[#allocation46_spill] sm:$0xff] }
 0x8ea   :  { %7229 = vmatmul.mubr.bf16.vlgmr.msra.gmra.mrb[64].mxu0 %v7034_v37  ;;  %7270 = vmatmul.mubr.bf16.vlgmr.msra.gmra.mrb[64].mxu1 %v7034_v37  ;;  %v12380_v37 = vld [vmem:[#allocation72_spill] sm:$0xff] }
 0x8eb   :  { %7807 = vmatpush1.bf16.msra.mxu0 %v11380_v6  ;;  %7848 = vmatpush1.bf16.msra.mxu1 %v11384_v22  ;;  %v12353_v6 = vld [vmem:[#allocation47_spill] sm:$0xff]  ;;  %v12355_v22 = vld [vmem:[#allocation48_spill] sm:$0xff] }
 0x8ec   :  { %7808 = vmatprep.subr.bf16.mxu0 %v11392_v60  ;;  %7849 = vmatprep.subr.bf16.mxu1 %v11394_v1  ;;  %v12357_v60 = vld [vmem:[#allocation49_spill] sm:$0xff]  ;;  %v12358_v1 = vld [vmem:[#allocation50_spill] sm:$0xff] }
 0x8ef   :  { %7809 = vmatpush1.bf16.msra.mxu0 %v12323_v32  ;;  %7850 = vmatpush1.bf16.msra.mxu1 %v12324_v31  ;;  %v6515_v32 = vld [vmem:[%s11761_s5] sm:$0xf]  ;;  %v12381_v31 = vld [vmem:[#allocation36_spill] sm:$0xff] }
 0x8f0   :  { %7810 = vmatprep.subr.bf16.mxu0 %v12325_v21  ;;  %7851 = vmatprep.subr.bf16.mxu1 %v12326_v40  ;;  %v6520_v21 = vrot.slane %v6515_v32, %v12381_v31  ;;  %v12382_v40 = vld [vmem:[#allocation38_spill] sm:$0xff] }
 0x8f3   :  { %7811 = vmatpush1.bf16.msra.mxu0 %v12327_v39  ;;  %7852 = vmatpush1.bf16.msra.mxu1 %v12328_v24  ;;  %v6524_v39 = vrot.slane %v6515_v32, %v12382_v40 }
 0x8f4   :  { %7812 = vmatprep.subr.bf16.mxu0 %v12329_v0  ;;  %7853 = vmatprep.subr.bf16.mxu1 %v12330_v25 }
 0x8f7   :  { %7813 = vmatpush1.bf16.msra.mxu0 %v12331_v23  ;;  %7854 = vmatpush1.bf16.msra.mxu1 %v12332_v26 }
 0x8f8   :  { %7814 = vmatprep.subr.bf16.mxu0 %v12333_v42  ;;  %7855 = vmatprep.subr.bf16.mxu1 %v12334_v43 }
 0x8fb   :  { %7815 = vmatpush1.bf16.msra.mxu0 %v12335_v45  ;;  %7856 = vmatpush1.bf16.msra.mxu1 %v12336_v46 }
 0x8fc   :  { %7816 = vmatprep.subr.bf16.mxu0 %v12337_v47  ;;  %7857 = vmatprep.subr.bf16.mxu1 %v12338_v48 }
 0x8ff   :  { %7817 = vmatpush1.bf16.msra.mxu0 %v12339_v49  ;;  %7858 = vmatpush1.bf16.msra.mxu1 %v12340_v50  ;;  %v6532_v50 = vrot.slane %v6515_v32, %v12027_v36 }
 0x900   :  { %7818 = vmatprep.subr.bf16.mxu0 %v12341_v57  ;;  %7859 = vmatprep.subr.bf16.mxu1 %v12342_v58  ;;  %v6528_v57 = vrot.slane %v6515_v32, %v12028_v30 }
 0x903   :  { %7819 = vmatpush1.bf16.msra.mxu0 %v12343_v33  ;;  %7860 = vmatpush1.bf16.msra.mxu1 %v12344_v63 }
 0x904   :  { %7820 = vmatprep.subr.bf16.mxu0 %v12345_v3  ;;  %7861 = vmatprep.subr.bf16.mxu1 %v12346_v10 }
 0x907   :  { %7821 = vmatpush1.bf16.msra.mxu0 %v12347_v44  ;;  %7862 = vmatpush1.bf16.msra.mxu1 %v12348_v53 }
 0x908   :  { %7822 = vmatprep.subr.bf16.mxu0 %v12349_v54  ;;  %7863 = vmatprep.subr.bf16.mxu1 %v12350_v59 }
 0x90b   :  { %7823 = vmatpush1.bf16.msra.mxu0 %v12351_v41  ;;  %7864 = vmatpush1.bf16.msra.mxu1 %v12352_v12 }
 0x90c   :  { %7824 = vmatprep.subr.bf16.mxu0 %v12353_v6  ;;  %7865 = vmatprep.subr.bf16.mxu1 %v12354_v11 }
 0x90f   :  { %7825 = vmatpush1.bf16.msra.mxu0 %v12355_v22  ;;  %7866 = vmatpush1.bf16.msra.mxu1 %v12356_v55 }
 0x910   :  { %7826 = vmatprep.subr.bf16.mxu0 %v12357_v60  ;;  %7867 = vmatprep.subr.bf16.mxu1 %v12358_v1 }
 0x913   :  { %7827 = vmatpush1.bf16.msra.mxu0 %v12359_v7  ;;  %7868 = vmatpush1.bf16.msra.mxu1 %v12360_v4 }
 0x914   :  { %7828 = vmatprep.subr.bf16.mxu0 %v12361_v18  ;;  %7869 = vmatprep.subr.bf16.mxu1 %v12362_v27 }
 0x917   :  { %7829 = vmatpush1.bf16.msra.mxu0 %v12363_v5  ;;  %7870 = vmatpush1.bf16.msra.mxu1 %v12364_v15 }
 0x918   :  { %7830 = vmatprep.subr.bf16.mxu0 %v12365_v35  ;;  %7871 = vmatprep.subr.bf16.mxu1 %v12366_v34 }
 0x91b   :  { %7831 = vmatpush1.bf16.msra.mxu0 %v12367_v52  ;;  %7872 = vmatpush1.bf16.msra.mxu1 %v12368_v61 }
 0x91c   :  { %7832 = vmatprep.subr.bf16.mxu0 %v12369_v8  ;;  %7873 = vmatprep.subr.bf16.mxu1 %v12370_v51 }
 0x91f   :  { %7833 = vmatpush1.bf16.msra.mxu0 %v12371_v29  ;;  %7874 = vmatpush1.bf16.msra.mxu1 %v12372_v17  ;;  %v6991_v17 = vld [vmem:[#allocation2 + $0x7] ss:$8 sm:$0xf] }
 0x920   :  { %7834 = vmatprep.subr.bf16.mxu0 %v12373_v14  ;;  %7875 = vmatprep.subr.bf16.mxu1 %v12374_v19  ;;  %v6993_v14 = vld [vmem:[#allocation2 + $0x27] ss:$8 sm:$0xf] }
 0x923   :  { %7835 = vmatpush1.bf16.msra.mxu0 %v12375_v16  ;;  %7876 = vmatpush1.bf16.msra.mxu1 %v12376_v62 }
 0x924   :  { %7836 = vmatprep.subr.bf16.mxu0 %v12377_v38  ;;  %7877 = vmatprep.subr.bf16.mxu1 %v12378_v56 }
 0x927   :  { %7837 = vmatpush1.bf16.msra.mxu0 %v12379_v2  ;;  %7878 = vmatpush1.bf16.msra.mxu1 %v12380_v37 }
 0x99d   :  { %v6891_v24 = vpop.f32.mrb[60].mxu0  ;;  %v6932_v0 = vpop.f32.mrb[60].mxu1 }
 0x99e   :  { %v6892_v25 = vadd.f32 %v6891_v24, %v6520_v21  ;;  %v6893_v23 = vpop.f32.mrb[61].mxu0  ;;  %v6934_v26 = vpop.f32.mrb[61].mxu1  ;;  %v6933_v33 = vadd.f32 %v6932_v0, %v6528_v57 }
 0x99f   :  { %v6894_v42 = vadd.f32 %v6893_v23, %v6524_v39  ;;  %v6895_v43 = vpop.f32.mrb[62].mxu0  ;;  %v6936_v45 = vpop.f32.mrb[62].mxu1  ;;  %v6935_v58 = vadd.f32 %v6934_v26, %v6532_v50 }
 0x9a0   :  { %v8690_v46 = vmul.f32 -1.442695, %v6892_v25  ;;  %v6896_v47 = vpop.f32.mrb[63].mxu0  ;;  %v6937_v48 = vpop.f32.mrb[63].mxu1 }
 0x9a1   :  { %v8691_v49 = vmul.f32 -1.442695, %v6894_v42  ;;  %v8692_v63 = vmul.f32 -1.442695, %v6935_v58 }
 0x9a2   :  { %9711 = vpow2.f32 %v8690_v46 }
 0x9a3   :  { %9713 = vpow2.f32 %v8691_v49 }
 0x9a4   :  { %9715 = vtanh.f32 %v6933_v33 }
 0x9a5   :  { %9717 = vpow2.f32 %v8692_v63 }
 0x9ac   :  { %v9712_v3 = vpop.eup %9711 }
 0x9ad   :  { %v9714_v10 = vpop.eup %9713  ;;  %v6942_v44 = vadd.f32 1.0, %v9712_v3 }
 0x9ae   :  { %v6948_v53 = vadd.f32 1.0, %v9714_v10  ;;  %v9716_v54 = vpop.eup %9715 }
 0x9af   :  { %9719 = vrcp.f32 %v6942_v44  ;;  %v9718_v59 = vpop.eup %9717 }
 0x9b0   :  { %9721 = vrcp.f32 %v6948_v53  ;;  %v6955_v22 = vadd.f32 1.0, %v9718_v59 }
 0x9b9   :  { %v9720_v41 = vpop.eup %9719 }
 0x9ba   :  { %v9722_v12 = vpop.eup %9721  ;;  %v6959_v6 = vmul.f32 %v9720_v41, %v9716_v54 }
 0x9bb   :  { %v6958_v11 = vmul.f32 %v9722_v12, %v11582_v28 }
 0x9bd   :  { %v11715_v55 = vadd.f32 %v6959_v6, %v6958_v11  ;;  %v7230_v60 = vpop.f32.mrb[64].mxu0  ;;  %v7271_v1 = vpop.f32.mrb[64].mxu1 }
 0x9be   :  { %v7232_v7 = vpop.f32.mrb[65].mxu0  ;;  %v7273_v4 = vpop.f32.mrb[65].mxu1 }
 0x9bf   :  { %v7282_v18 = vcombine.low %v7230_v60, %v7232_v7  ;;  %v7283_v27 = vcombine.low %v7271_v1, %v7273_v4  ;;  %v7234_v5 = vpop.f32.mrb[66].mxu0  ;;  %v7275_v15 = vpop.f32.mrb[66].mxu1  ;;  %9723 = vtanh.f32 %v11715_v55 }
 0x9c0   :  { %9725 = vrcp.f32 %v6955_v22  ;;  %v7235_v35 = vpop.f32.mrb[67].mxu0  ;;  %v7276_v34 = vpop.f32.mrb[67].mxu1 }
 0x9c1   :  { %v7290_v52 = vrot.slane %v7282_v18, %v10237_v20  ;;  %v7297_v28 = vrot.slane %v7283_v27, %v10237_v20 }
 0x9c3   :  { %v7298_v61 = vcombine.low %v7290_v52, %v7297_v28  ;;  %v7299_v8 = vcombine.high %v7290_v52, %v7297_v28 }
 0x9c5   :  { %v7306_v51 = vrot.slane %v7298_v61, %v10237_v20  ;;  %v7313_v29 = vrot.slane %v7299_v8, %v10237_v20 }
 0x9c7   :  { %v7316_v19 = vadd.f32 %v7306_v51, %v6991_v17  ;;  %v7317_v16 = vadd.f32 %v7313_v29, %v6993_v14 }
 0x9c9   :  { %v9724_v62 = vpop.eup %9723  ;;  %v8725_v38 = vmul.f32 -1.442695, %v7316_v19  ;;  %v8726_v56 = vmul.f32 -1.442695, %v7317_v16  ;;  %v7332_v2 = vrot.slane %v7316_v19, 1  ;;  %v7333_v37 = vrot.slane %v7317_v16, 1 }
 0x9ca   :  { %v9726_v32 = vpop.eup %9725  ;;  %v7354_v23 = vrot.slane %v7316_v19, 3  ;;  %v7355_v26 = vrot.slane %v7317_v16, 3  ;;  %v7348_v45 = vrot.slane %v7316_v19, 2  ;;  %v7349_v46 = vrot.slane %v7317_v16, 2 }
 0x9cb   :  { %9727 = vpow2.f32 %v8725_v38  ;;  %v8727_v21 = vmul.f32 -1.442695, %v7332_v2  ;;  %v8728_v39 = vmul.f32 -1.442695, %v7333_v37  ;;  %v6962_v24 = vmul.f32 %v9726_v32, %v9724_v62 }
 0x9cc   :  { %9729 = vpow2.f32 %v8726_v56  ;;  %v8729_v48 = vmul.f32 -1.442695, %v7354_v23  ;;  %v8730_v49 = vmul.f32 -1.442695, %v7355_v26 }
 0x9cd   :  { %9731 = vpow2.f32 %v8727_v21  ;;  %v6970_v0 = vrot.slane %v6962_v24, %v10237_v20  ;;  %v7399_v25 = vpack.c.bf16 %v6962_v24, %v6962_v24 }
 0x9ce   :  { %9733 = vpow2.f32 %v8728_v39 }
 0x9cf   :  { %v6971_v42 = vcombine.high %v6970_v0, %v6970_v0  ;;  %v6978_v43 = vrot.slane %v6970_v0, %v10237_v20  ;;  %7838 = vmatprep.mubr.bf16.mxu0 %v7399_v25  ;;  %7879 = vmatprep.mubr.bf16.mxu1 %v7399_v25  ;;  %9735 = vtanh.f32 %v7348_v45 }
 0x9d0   :  { %9737 = vtanh.f32 %v7349_v46 }
 0x9d1   :  { %v6985_v47 = vrot.slane %v6971_v42, %v10237_v20  ;;  %6988 = vst.msk [vmem:[%s11762_s6 + $0x6] sm:$0x1] %vm1292_vm2, %v6978_v43  ;;  %9739 = vpow2.f32 %v8729_v48 }
 0x9d2   :  { %9741 = vpow2.f32 %v8730_v49 }
 0x9d3   :  { %6989 = vst.msk [vmem:[%s11762_s6 + $0xe] sm:$0x1] %vm1292_vm2, %v6985_v47 }
 0x9d5   :  { %v9728_v50 = vpop.eup %9727 }
 0x9d6   :  { %v9730_v57 = vpop.eup %9729  ;;  %v7324_v58 = vadd.f32 1.0, %v9728_v50 }
 0x9d7   :  { %v9732_v33 = vpop.eup %9731  ;;  %v7325_v63 = vadd.f32 1.0, %v9730_v57 }
 0x9d8   :  { %v9734_v3 = vpop.eup %9733  ;;  %9743 = vrcp.f32 %v7324_v58  ;;  %v7342_v10 = vadd.f32 1.0, %v9732_v33 }
 0x9d9   :  { %9745 = vrcp.f32 %v7325_v63  ;;  %v7343_v44 = vadd.f32 1.0, %v9734_v3  ;;  %v9736_v53 = vpop.eup %9735 }
 0x9da   :  { %9747 = vrcp.f32 %v7342_v10  ;;  %v9738_v54 = vpop.eup %9737 }
 0x9db   :  { %9749 = vrcp.f32 %v7343_v44  ;;  %v9740_v59 = vpop.eup %9739 }
 0x9dc   :  { %v9742_v41 = vpop.eup %9741  ;;  %v7364_v11 = vadd.f32 1.0, %v9740_v59 }
 0x9dd   :  { %v7365_v60 = vadd.f32 1.0, %v9742_v41 }
 0x9de   :  { %9751 = vrcp.f32 %v7364_v11 }
 0x9df   :  { %9753 = vrcp.f32 %v7365_v60 }
 0x9e2   :  { %v9744_v12 = vpop.eup %9743 }
 0x9e3   :  { %v9746_v6 = vpop.eup %9745  ;;  %v7372_v4 = vmul.f32 %v9744_v12, %v9736_v53 }
 0x9e4   :  { %v9748_v22 = vpop.eup %9747  ;;  %v7373_v27 = vmul.f32 %v9746_v6, %v9738_v54 }
 0x9e5   :  { %v9750_v1 = vpop.eup %9749  ;;  %v7370_v7 = vmul.f32 %v9748_v22, %v11602_v9 }
 0x9e6   :  { %v7371_v18 = vmul.f32 %v9750_v1, %v11604_v13  ;;  %v7464_v13 = vld [vmem:[%s11761_s5] sm:$0xf] }
 0x9e7   :  { %v7374_v5 = vadd.f32 %v7372_v4, %v7370_v7  ;;  %v7469_v14 = vrot.slane %v7464_v13, %v12381_v31  ;;  %v7473_v19 = vrot.slane %v7464_v13, %v12382_v40  ;;  %v7481_v23 = vrot.slane %v7464_v13, %v12027_v36 }
 0x9e8   :  { %v7375_v15 = vadd.f32 %v7373_v27, %v7371_v18  ;;  %v9752_v35 = vpop.eup %9751  ;;  %v7477_v31 = vrot.slane %v7464_v13, %v12028_v30 }
 0x9e9   :  { %9755 = vtanh.f32 %v7374_v5  ;;  %v9754_v34 = vpop.eup %9753 }
 0x9ea   :  { %9757 = vtanh.f32 %v7375_v15 }
 0x9f3   :  { %v9756_v52 = vpop.eup %9755 }
 0x9f4   :  { %v9758_v28 = vpop.eup %9757  ;;  %v7378_v61 = vmul.f32 %v9756_v52, %v9752_v35 }
 0x9f5   :  { %v7379_v8 = vmul.f32 %v9758_v28, %v9754_v34 }
 0x9f7   :  { %v7382_v51 = vcombine.low %v7378_v61, %v7379_v8 }
 0x9f9   :  { %v7389_v29 = vrot.slane %v7382_v51, %v10237_v20 }
 0x9fb   :  { %v7396_v9 = vrot.slane %v7389_v29, %v10237_v20 }
 0x9fd   :  { %v7398_v17 = vpack.c.bf16 %v7396_v9, %v7396_v9 }
 0x9ff   :  { %7839 = vmatmul.mubr.bf16.vlgmr.msra.gmra.mrb[68].mxu0 %v7398_v17  ;;  %7880 = vmatmul.mubr.bf16.vlgmr.msra.gmra.mrb[68].mxu1 %v7398_v17 }
 0xad2   :  { %v7840_v16 = vpop.f32.mrb[68].mxu0  ;;  %v7881_v62 = vpop.f32.mrb[68].mxu1 }
 0xad3   :  { %v7841_v38 = vadd.f32 %v7840_v16, %v7469_v14  ;;  %v7842_v56 = vpop.f32.mrb[69].mxu0  ;;  %v7883_v2 = vpop.f32.mrb[69].mxu1  ;;  %v7882_v42 = vadd.f32 %v7881_v62, %v7477_v31 }
 0xad4   :  { %v7843_v37 = vadd.f32 %v7842_v56, %v7473_v19  ;;  %v7844_v32 = vpop.f32.mrb[70].mxu0  ;;  %v7885_v21 = vpop.f32.mrb[70].mxu1  ;;  %v7884_v26 = vadd.f32 %v7883_v2, %v7481_v23 }
 0xad5   :  { %v8795_v39 = vmul.f32 -1.442695, %v7841_v38  ;;  %v7845_v24 = vpop.f32.mrb[71].mxu0  ;;  %v7886_v0 = vpop.f32.mrb[71].mxu1 }
 0xad6   :  { %v8796_v25 = vmul.f32 -1.442695, %v7843_v37  ;;  %v8797_v40 = vmul.f32 -1.442695, %v7884_v26 }
 0xad7   :  { %9759 = vpow2.f32 %v8795_v39 }
 0xad8   :  { %9761 = vpow2.f32 %v8796_v25 }
 0xad9   :  { %9763 = vpow2.f32 %v8797_v40 }
 0xada   :  { %9765 = vtanh.f32 %v7882_v42 }
 0xae1   :  { %v9760_v43 = vpop.eup %9759 }
 0xae2   :  { %v9762_v45 = vpop.eup %9761  ;;  %v7891_v46 = vadd.f32 1.0, %v9760_v43 }
 0xae3   :  { %v7897_v47 = vadd.f32 1.0, %v9762_v45  ;;  %v9764_v48 = vpop.eup %9763 }
 0xae4   :  { %9767 = vrcp.f32 %v7891_v46  ;;  %v9766_v49 = vpop.eup %9765  ;;  %v7904_v58 = vadd.f32 1.0, %v9764_v48 }
 0xae5   :  { %9769 = vrcp.f32 %v7897_v47 }
 0xae6   :  { %9771 = vrcp.f32 %v7904_v58 }
 0xaee   :  { %v9768_v50 = vpop.eup %9767 }
 0xaef   :  { %v9770_v57 = vpop.eup %9769  ;;  %v7908_v36 = vmul.f32 %v9768_v50, %v9766_v49 }
 0xaf0   :  { %v7907_v33 = vmul.f32 %v9770_v57, %v11715_v55  ;;  %v9772_v30 = vpop.eup %9771 }
 0xaf2   :  { %v7909_v63 = vadd.f32 %v7908_v36, %v7907_v33 }
 0xaf4   :  { %9773 = vtanh.f32 %v7909_v63 }
 0xafe   :  { %v9774_v3 = vpop.eup %9773 }
 0xaff   :  { %v7911_v10 = vmul.f32 %v9774_v3, %v9772_v30 }
 0xb01   :  { %v7919_v44 = vrot.slane %v7911_v10, %v10237_v20 }
 0xb03   :  { %v7920_v53 = vcombine.high %v7919_v44, %v7919_v44  ;;  %v7927_v54 = vrot.slane %v7919_v44, %v10237_v20 }
 0xb05   :  { %v7934_v59 = vrot.slane %v7920_v53, %v10237_v20  ;;  %7937 = vst.msk [vmem:[%s11762_s6 + $0x7] sm:$0x1] %vm1292_vm2, %v7927_v54 }
 0xb07   :  { %7938 = vst.msk [vmem:[%s11762_s6 + $0xf] sm:$0x1] %vm1292_vm2, %v7934_v59 }
 0xb08   :  { %7943 = vsyncpa [#allocation4], 1 }
 0xb09   :  { %7944 = vsyncpa [#allocation6], 1 }
 0xb0a   :  { %7945 = vsyncpa [#allocation9], 1 }

</bundles_post_ra>
